<compile_context>
chip_gen: v6e
topology: v6e:2x2x1
jax: 0.10.0
libtpu: 0.0.40
codegen_flags: <defaults>
</compile_context>

<pallas_src>
import functools

import jax
import jax.numpy as jnp
import numpy as np
from jax.experimental import pallas as pl
from jax.experimental.pallas import tpu as pltpu

# keep the XLA reference and the in-kernel dots at the same (full f32) matmul precision
jax.config.update("jax_default_matmul_precision", "highest")


def _sigmoid(z):
    return 1.0 / (1.0 + jnp.exp(-z))


# ---------------------------------------------------------------------------
# Kernel 1: LSTM stack (num_layers >= 2) + post_linear, fused.
# Input projections and post_linear are hoisted out of the recurrence; only the
# h @ W_hh dot stays inside the serial fori_loop.  The output is written directly
# in the halo-padded, time-on-lanes (C, B*W0) layout that kernel 2 consumes.
# ---------------------------------------------------------------------------
def lstm_head_kernel(x_ref, wih0_ref, whh0_ref, b0_ref,
                     wihr_ref, whhr_ref, br_ref,
                     wlin_ref, blin_ref,
                     out_ref, hseq_ref, gx_ref):
    # x_ref    : (B, T, Din)   batch-major input sequence
    # wih0_ref : (Din, 4H)     layer-0 input weights (transposed)
    # whh0_ref : (H,   4H)     layer-0 recurrent weights (transposed)
    # b0_ref   : (1,   4H)     layer-0 bias (b_ih + b_hh)
    # wihr_ref : (L-1, H, 4H)  layers 1..L-1 input weights
    # whhr_ref : (L-1, H, 4H)  layers 1..L-1 recurrent weights
    # br_ref   : (L-1, 1, 4H)  layers 1..L-1 biases
    # wlin_ref : (C, H)        post_linear weight
    # blin_ref : (C, 1)        post_linear bias
    # out_ref  : (C, B*W0)     halo-padded, time-on-lanes slab (kernel 2's input)
    # hseq_ref : (T, B, H)     scratch: current layer's hidden sequence
    # gx_ref   : (T, B, 4H)    scratch: hoisted per-layer input-gate projections
    B, T, _ = x_ref.shape
    H = whh0_ref.shape[0]
    L_rest = wihr_ref.shape[0]
    W0 = out_ref.shape[1] // B
    halo = (W0 - T) // 2

    # ----- layer 0: x-projection hoisted out of the recurrence ----------------
    wih0 = wih0_ref[...]
    b0 = b0_ref[...]
    for b in range(B):
        gx_ref[:, b, :] = (jnp.dot(x_ref[b], wih0,
                                   preferred_element_type=jnp.float32) + b0)

    def run_layer(whh):
        zeros = jnp.zeros((B, H), jnp.float32)

        def step(t, carry):
            h, c = carry
            gates = gx_ref[t] + jnp.dot(h, whh, preferred_element_type=jnp.float32)
            s = _sigmoid(gates)                       # one full-width EUP pass
            i = s[:, 0 * H:1 * H]
            f = s[:, 1 * H:2 * H]
            o = s[:, 3 * H:4 * H]
            g = jnp.tanh(gates[:, 2 * H:3 * H])
            c_new = f * c + i * g
            h_new = o * jnp.tanh(c_new)
            hseq_ref[t] = h_new
            return (h_new, c_new)

        jax.lax.fori_loop(0, T, step, (zeros, zeros))

    run_layer(whh0_ref[...])

    # ----- layers 1..L-1: project the completed hseq in one matmul per batch row
    for l in range(L_rest):
        wih = wihr_ref[l]
        bl = br_ref[l]
        for b in range(B):
            gx_ref[:, b, :] = (jnp.dot(hseq_ref[:, b, :], wih,
                                       preferred_element_type=jnp.float32) + bl)
        run_layer(whhr_ref[l])

    # ----- post_linear hoisted out of the time loop, written straight into the
    #       halo-padded (C, B*W0) slab; halo zeroed once --------------------------
    out_ref[...] = jnp.zeros_like(out_ref)
    wlin = wlin_ref[...]           # (C, H)
    blin = blin_ref[...]           # (C, 1)
    for b in range(B):
        # (C, H) x (T, H)^T -> (C, T): transpose folded into the dot dimension numbers
        y_b = jax.lax.dot_general(
            wlin, hseq_ref[:, b, :],
            dimension_numbers=(((1,), (1,)), ((), ())),
            preferred_element_type=jnp.float32) + blin
        s = b * W0 + halo
        out_ref[:, s:s + T] = y_b.astype(out_ref.dtype)


# ---------------------------------------------------------------------------
# Kernel 2: the whole post-LSTM conv stack, fused, single invocation.
# 5 TimeConvResBlocks (2 channelwise convs + residual each) followed by the
# grouped resid_weighting conv.  All batch elements are concatenated along the
# lane axis with zero halos between them; every "same" conv is realized as a
# valid conv on the zero-halo buffer with its output masked back to zero outside
# the true T columns (masks hoisted and sliced per conv).
# ---------------------------------------------------------------------------
def conv_chain_kernel(x_ref, w1_ref, b1_ref, w2_ref, b2_ref, rww_ref, rwb_ref,
                      o_ref, *, n_batch, seq_len):
    # x_ref  : (C, B*W0)  halo-padded post_linear activations, batch b's true data
    #                     at lanes [b*W0 + halo, b*W0 + halo + T)
    # w1_ref : (R, C, K)  conv1 weights of each TimeConvResBlock (channelwise)
    # b1_ref : (R, C, 1)  conv1 biases
    # w2_ref : (R, C, K)  conv2 weights
    # b2_ref : (R, C, 1)  conv2 biases
    # rww_ref: (2, C, K)  resid_weighting taps: [0] = resblock chain, [1] = lstm output
    # rwb_ref: (C, 1)     resid_weighting bias
    # o_ref  : (C, B*T)
    C, Wfull = x_ref.shape
    R, _, K = w1_ref.shape
    pad = (K - 1) // 2
    halo = pad * (2 * R + 1)
    B, T = n_batch, seq_len
    W0 = T + 2 * halo

    x0 = x_ref[...]
    w1 = w1_ref[...]
    b1 = b1_ref[...]
    w2 = w2_ref[...]
    b2 = b2_ref[...]
    ww = rww_ref[...]
    wb = rwb_ref[...]

    # hoisted keep-mask over ORIGINAL columns: true-data lanes of any batch element
    col = jax.lax.broadcasted_iota(jnp.int32, (C, Wfull), 1)
    valid0 = None
    for b in range(B):
        lo = b * W0 + halo
        part = jnp.logical_and(col >= lo, col < lo + T)
        valid0 = part if valid0 is None else jnp.logical_or(valid0, part)

    def cw_conv(x, w, b, n_done):
        # channelwise "same" Conv1d as a valid conv on the zero-halo buffer; the
        # output column j corresponds to original column j + n_done*pad, so the
        # mask is a static slice of the hoisted valid0.  w: (C, K), b: (C, 1).
        Cc, W = x.shape
        Wout = W - (K - 1)
        keep = valid0[:, n_done * pad:n_done * pad + Wout]
        acc_a = jnp.broadcast_to(b, (Cc, Wout))         # bias folded into partial A
        acc_b = jnp.zeros((Cc, Wout), jnp.float32)
        for k in range(K):
            term = w[:, k:k + 1] * x[:, k:k + Wout]
            if k % 2 == 0:
                acc_a = acc_a + term
            else:
                acc_b = acc_b + term
        return jnp.where(keep, acc_a + acc_b, 0.0)

    cur = x0
    n_done = 0
    for r in range(R):              # TimeConvResBlocks (Identity pre/post activations)
        y1 = cw_conv(cur, w1[r], b1[r], n_done + 1)
        y2 = cw_conv(y1, w2[r], b2[r], n_done + 2)
        Wc = cur.shape[1]
        cur = y2 + cur[:, 2 * pad:Wc - 2 * pad]         # residual add
        n_done += 2

    # resid_weighting: grouped Conv1d(2C -> C, groups=C).  Output channel o mixes
    # (resblock_out[o], lstm_out[o]) -> the stack/cat interleave is free.
    Wc = cur.shape[1]
    lstm_part = x0[:, n_done * pad:n_done * pad + Wc]   # column-aligned with `cur`
    w_res = ww[0]
    w_lstm = ww[1]
    Wout = Wc - (K - 1)
    acc_a = jnp.broadcast_to(wb, (C, Wout))
    acc_b = jnp.zeros((C, Wout), jnp.float32)
    for k in range(K):
        acc_a = acc_a + w_res[:, k:k + 1] * cur[:, k:k + Wout]
        acc_b = acc_b + w_lstm[:, k:k + 1] * lstm_part[:, k:k + Wout]
    final = acc_a + acc_b           # batch b's result at columns [b*W0, b*W0 + T)
    for b in range(B):
        o_ref[:, b * T:(b + 1) * T] = final[:, b * W0:b * W0 + T].astype(o_ref.dtype)


# ---------------------------------------------------------------------------
# Host wrapper: SemVecToCpModel.forward
# ---------------------------------------------------------------------------
def sem_vec_to_cp_forward(x, params):
    """x: (B, T, input_size) float32 -> (B, T, output_size) float32."""
    B, T, _ = x.shape
    lstm_params = params["lstm"]                 # list of (w_ih, w_hh, b_ih, b_hh)
    L = len(lstm_params)
    assert L >= 2, "kernel assumes num_lstm_layers >= 2"
    w_lin, b_lin = params["linear"]              # (C, H), (C,)
    C, H = w_lin.shape
    resblocks = params["resblocks"]              # list of (w1, b1, w2, b2)
    R = len(resblocks)
    assert R >= 1, "kernel assumes resid_blocks >= 1 with lstm_resid=True"
    rw_w, rw_b = params["resid_weighting"]       # (C, 2, K), (C,)
    K = rw_w.shape[-1]
    pad = (K - 1) // 2
    halo = pad * (2 * R + 1)                     # halo covering all 2R+1 chained convs
    W0 = T + 2 * halo

    # ---- kernel 1: LSTM stack + post_linear, emitting the (C, B*W0) slab ----
    w_ih0, w_hh0, b_ih0, b_hh0 = lstm_params[0]
    wih0T = w_ih0.T                                               # (Din, 4H)
    whh0T = w_hh0.T                                               # (H, 4H)
    b0 = (b_ih0 + b_hh0).reshape(1, 4 * H)
    wihrT = jnp.stack([p[0].T for p in lstm_params[1:]])          # (L-1, H, 4H)
    whhrT = jnp.stack([p[1].T for p in lstm_params[1:]])          # (L-1, H, 4H)
    br = jnp.stack([(p[2] + p[3]).reshape(1, 4 * H) for p in lstm_params[1:]])
    wlin_ch = w_lin                                               # (C, H)
    blin_c1 = b_lin.reshape(C, 1)                                 # (C, 1)

    y_slab = pl.pallas_call(
        lstm_head_kernel,
        out_shape=jax.ShapeDtypeStruct((C, B * W0), jnp.float32),
        scratch_shapes=[pltpu.VMEM((T, B, H), jnp.float32),
                        pltpu.VMEM((T, B, 4 * H), jnp.float32)],
    )(x.astype(jnp.float32), wih0T, whh0T, b0, wihrT, whhrT, br, wlin_ch, blin_c1)

    # ---- kernel 2: residual conv blocks + resid_weighting, fused, one shot ----
    w1s = jnp.stack([rb[0][:, 0, :] for rb in resblocks])         # (R, C, K)
    b1s = jnp.stack([rb[1] for rb in resblocks])[..., None]       # (R, C, 1)
    w2s = jnp.stack([rb[2][:, 0, :] for rb in resblocks])         # (R, C, K)
    b2s = jnp.stack([rb[3] for rb in resblocks])[..., None]       # (R, C, 1)
    rwwt = jnp.transpose(rw_w, (1, 0, 2))                         # (2, C, K)
    rwb = rw_b.reshape(C, 1)

    out = pl.pallas_call(
        functools.partial(conv_chain_kernel, n_batch=B, seq_len=T),
        out_shape=jax.ShapeDtypeStruct((C, B * T), jnp.float32),
    )(y_slab, w1s, b1s, w2s, b2s, rwwt, rwb)

    # final permute to (B, T, C); output_activation is Identity
    return jnp.transpose(out.reshape(C, B, T), (1, 2, 0))


# ---------------------------------------------------------------------------
# Pure-JAX reference (mirrors the PyTorch forward) -- verification only.
# ---------------------------------------------------------------------------
def reference_forward(x, params):
    B, T, _ = x.shape
    w_lin, b_lin = params["linear"]
    C = w_lin.shape[0]

    h_seq = jnp.transpose(x, (1, 0, 2)).astype(jnp.float32)       # (T, B, Din)
    for (w_ih, w_hh, b_ih, b_hh) in params["lstm"]:
        H = w_hh.shape[1]

        def step(carry, x_t, w_ih=w_ih, w_hh=w_hh, b_ih=b_ih, b_hh=b_hh):
            h, c = carry
            gates = x_t @ w_ih.T + h @ w_hh.T + b_ih + b_hh
            i, f, g, o = jnp.split(gates, 4, axis=-1)
            c = _sigmoid(f) * c + _sigmoid(i) * jnp.tanh(g)
            h = _sigmoid(o) * jnp.tanh(c)
            return (h, c), h

        init = (jnp.zeros((B, H), jnp.float32), jnp.zeros((B, H), jnp.float32))
        _, h_seq = jax.lax.scan(step, init, h_seq)

    y = h_seq @ w_lin.T + b_lin                                   # (T, B, C)
    y = jnp.transpose(y, (1, 2, 0))                               # (B, C, T)
    lstm_out = y

    dn = ("NCH", "OIH", "NCH")
    K = params["resid_weighting"][0].shape[-1]
    p = (K - 1) // 2
    for (w1, b1, w2, b2) in params["resblocks"]:
        t1 = jax.lax.conv_general_dilated(y, w1, (1,), [(p, p)], dimension_numbers=dn,
                                          feature_group_count=C) + b1[None, :, None]
        t2 = jax.lax.conv_general_dilated(t1, w2, (1,), [(p, p)], dimension_numbers=dn,
                                          feature_group_count=C) + b2[None, :, None]
        y = t2 + y

    inter = jnp.stack([y, lstm_out], axis=2).reshape(B, 2 * C, T)
    rw_w, rw_b = params["resid_weighting"]
    y = jax.lax.conv_general_dilated(inter, rw_w, (1,), [(p, p)], dimension_numbers=dn,
                                     feature_group_count=C) + rw_b[None, :, None]
    return jnp.transpose(y, (0, 2, 1))


if __name__ == "__main__":
    # small shapes, structurally consistent with the module defaults
    # (4 LSTM layers, 5 residual conv blocks, time_filter_size=5)
    B, T = 2, 16
    input_size, hidden_size, output_size = 32, 32, 16
    num_lstm_layers, resid_blocks, K = 4, 5, 5

    key = jax.random.PRNGKey(0)
    keys = iter(jax.random.split(key, 64))

    def uniform(k, shape, fan_in):
        bound = 1.0 / np.sqrt(fan_in)
        return jax.random.uniform(k, shape, jnp.float32, -bound, bound)

    lstm_params = []
    for l in range(num_lstm_layers):
        din = input_size if l == 0 else hidden_size
        lstm_params.append((
            uniform(next(keys), (4 * hidden_size, din), hidden_size),
            uniform(next(keys), (4 * hidden_size, hidden_size), hidden_size),
            uniform(next(keys), (4 * hidden_size,), hidden_size),
            uniform(next(keys), (4 * hidden_size,), hidden_size),
        ))
    linear = (uniform(next(keys), (output_size, hidden_size), hidden_size),
              uniform(next(keys), (output_size,), hidden_size))
    resblock_params = []
    for _ in range(resid_blocks):
        resblock_params.append((
            uniform(next(keys), (output_size, 1, K), K),
            uniform(next(keys), (output_size,), K),
            uniform(next(keys), (output_size, 1, K), K),
            uniform(next(keys), (output_size,), K),
        ))
    rw = (uniform(next(keys), (output_size, 2, K), 2 * K),
          uniform(next(keys), (output_size,), 2 * K))

    params = {"lstm": lstm_params, "linear": linear,
              "resblocks": resblock_params, "resid_weighting": rw}

    x = jax.random.normal(next(keys), (B, T, input_size), dtype=jnp.float32)

    out = jax.block_until_ready(sem_vec_to_cp_forward(x, params))
    ref = jax.block_until_ready(reference_forward(x, params))

    assert out.shape == (B, T, output_size)
    np.testing.assert_allclose(np.asarray(out), np.asarray(ref), rtol=1e-3, atol=1e-3)
    print("KERNEL_OK")
</pallas_src>

<mosaic_0001>
module attributes {stable_mosaic.version = 11 : i64} {
  func.func @lstm_head_kernel(%arg0: memref<2x16x32xf32, #tpu.memory_space<vmem>>, %arg1: memref<32x128xf32, #tpu.memory_space<vmem>>, %arg2: memref<32x128xf32, #tpu.memory_space<vmem>>, %arg3: memref<1x128xf32, #tpu.memory_space<vmem>>, %arg4: memref<3x32x128xf32, #tpu.memory_space<vmem>>, %arg5: memref<3x32x128xf32, #tpu.memory_space<vmem>>, %arg6: memref<3x1x128xf32, #tpu.memory_space<vmem>>, %arg7: memref<16x32xf32, #tpu.memory_space<vmem>>, %arg8: memref<16x1xf32, #tpu.memory_space<vmem>>, %arg9: memref<16x120xf32, #tpu.memory_space<vmem>>, %arg10: memref<16x2x32xf32, #tpu.memory_space<vmem>>, %arg11: memref<16x2x128xf32, #tpu.memory_space<vmem>>) attributes {dimension_semantics = [], scalar_prefetch = 0 : i64, scratch_operands = 2 : i64, tpu.core_type = #tpu.core_type<tc>} {
    %c0 = arith.constant 0 : index
    %c0_0 = arith.constant 0 : index
    %0 = vector.load %arg1[%c0, %c0_0] : memref<32x128xf32, #tpu.memory_space<vmem>>, vector<32x128xf32>
    %c0_1 = arith.constant 0 : index
    %c0_2 = arith.constant 0 : index
    %1 = vector.load %arg3[%c0_1, %c0_2] : memref<1x128xf32, #tpu.memory_space<vmem>>, vector<1x128xf32>
    %c0_3 = arith.constant 0 : index
    %c0_4 = arith.constant 0 : index
    %c0_5 = arith.constant 0 : index
    %2 = vector.load %arg0[%c0_3, %c0_4, %c0_5] : memref<2x16x32xf32, #tpu.memory_space<vmem>>, vector<1x16x32xf32>
    %3 = vector.shape_cast %2 : vector<1x16x32xf32> to vector<16x32xf32>
    %cst = arith.constant dense<0.000000e+00> : vector<16x128xf32>
    %4 = tpu.matmul %3, %0, %cst {dimension_numbers = #tpu.dot_dimension_numbers<[1], [0], [0], [1], [0, 0, 1, 1], [], []>, precision = #tpu.contract_precision<fp32>} : vector<16x32xf32>, vector<32x128xf32>, vector<16x128xf32> -> vector<16x128xf32>
    %5 = vector.broadcast %1 : vector<1x128xf32> to vector<16x128xf32>
    %6 = arith.addf %4, %5 : vector<16x128xf32>
    %c0_6 = arith.constant 0 : index
    %c0_7 = arith.constant 0 : index
    %c0_8 = arith.constant 0 : index
    %7 = vector.load %arg11[%c0_6, %c0_7, %c0_8] : memref<16x2x128xf32, #tpu.memory_space<vmem>>, vector<16x1x128xf32>
    %8 = vector.shape_cast %7 : vector<16x1x128xf32> to vector<16x128xf32>
    %9 = vector.shape_cast %6 : vector<16x128xf32> to vector<16x1x128xf32>
    tpu.vector_store %arg11[%c0_6, %c0_7, %c0_8], %9 {strides = array<i32>} : memref<16x2x128xf32, #tpu.memory_space<vmem>>, vector<16x1x128xf32>,
    %c1 = arith.constant 1 : index
    %c0_9 = arith.constant 0 : index
    %c0_10 = arith.constant 0 : index
    %10 = vector.load %arg0[%c1, %c0_9, %c0_10] : memref<2x16x32xf32, #tpu.memory_space<vmem>>, vector<1x16x32xf32>
    %11 = vector.shape_cast %10 : vector<1x16x32xf32> to vector<16x32xf32>
    %cst_11 = arith.constant dense<0.000000e+00> : vector<16x128xf32>
    %12 = tpu.matmul %11, %0, %cst_11 {dimension_numbers = #tpu.dot_dimension_numbers<[1], [0], [0], [1], [0, 0, 1, 1], [], []>, precision = #tpu.contract_precision<fp32>} : vector<16x32xf32>, vector<32x128xf32>, vector<16x128xf32> -> vector<16x128xf32>
    %13 = vector.broadcast %1 : vector<1x128xf32> to vector<16x128xf32>
    %14 = arith.addf %12, %13 : vector<16x128xf32>
    %c0_12 = arith.constant 0 : index
    %c1_13 = arith.constant 1 : index
    %c0_14 = arith.constant 0 : index
    %15 = vector.load %arg11[%c0_12, %c1_13, %c0_14] : memref<16x2x128xf32, #tpu.memory_space<vmem>>, vector<16x1x128xf32>
    %16 = vector.shape_cast %15 : vector<16x1x128xf32> to vector<16x128xf32>
    %17 = vector.shape_cast %14 : vector<16x128xf32> to vector<16x1x128xf32>
    tpu.vector_store %arg11[%c0_12, %c1_13, %c0_14], %17 {strides = array<i32>} : memref<16x2x128xf32, #tpu.memory_space<vmem>>, vector<16x1x128xf32>,
    %c0_15 = arith.constant 0 : index
    %c0_16 = arith.constant 0 : index
    %18 = vector.load %arg2[%c0_15, %c0_16] : memref<32x128xf32, #tpu.memory_space<vmem>>, vector<32x128xf32>
    %cst_17 = arith.constant 0.000000e+00 : f32
    %19 = vector.broadcast %cst_17 : f32 to vector<2x32xf32>
    %c0_i32 = arith.constant 0 : i32
    %c16_i32 = arith.constant 16 : i32
    %20 = arith.addi %c0_i32, %c16_i32 : i32
    %c1_i32 = arith.constant 1 : i32
    %21:2 = scf.for %arg12 = %c0_i32 to %20 step %c1_i32 iter_args(%arg13 = %19, %arg14 = %19) -> (vector<2x32xf32>, vector<2x32xf32>)  : i32 {
      %113 = arith.index_cast %arg12 : i32 to index
      %c0_119 = arith.constant 0 : index
      %c0_120 = arith.constant 0 : index
      %114 = vector.load %arg11[%113, %c0_119, %c0_120] : memref<16x2x128xf32, #tpu.memory_space<vmem>>, vector<1x2x128xf32>
      %115 = vector.shape_cast %114 : vector<1x2x128xf32> to vector<2x128xf32>
      %cst_121 = arith.constant dense<0.000000e+00> : vector<2x128xf32>
      %116 = tpu.matmul %arg13, %18, %cst_121 {dimension_numbers = #tpu.dot_dimension_numbers<[1], [0], [0], [1], [0, 0, 1, 1], [], []>, precision = #tpu.contract_precision<fp32>} : vector<2x32xf32>, vector<32x128xf32>, vector<2x128xf32> -> vector<2x128xf32>
      %117 = arith.addf %115, %116 : vector<2x128xf32>
      %cst_122 = arith.constant 0.000000e+00 : f32
      %118 = vector.broadcast %cst_122 : f32 to vector<2x128xf32>
      %119 = arith.subf %118, %117 : vector<2x128xf32>
      %120 = math.exp %119 : vector<2x128xf32>
      %cst_123 = arith.constant 1.000000e+00 : f32
      %121 = vector.broadcast %cst_123 : f32 to vector<2x128xf32>
      %122 = arith.addf %121, %120 : vector<2x128xf32>
      %cst_124 = arith.constant 1.000000e+00 : f32
      %123 = vector.broadcast %cst_124 : f32 to vector<2x128xf32>
      %124 = arith.divf %123, %122 : vector<2x128xf32>
      %125 = vector.extract_strided_slice %124 {offsets = [0, 0], sizes = [2, 32], strides = [1, 1]} : vector<2x128xf32> to vector<2x32xf32>
      %126 = vector.extract_strided_slice %124 {offsets = [0, 32], sizes = [2, 32], strides = [1, 1]} : vector<2x128xf32> to vector<2x32xf32>
      %127 = vector.extract_strided_slice %124 {offsets = [0, 96], sizes = [2, 32], strides = [1, 1]} : vector<2x128xf32> to vector<2x32xf32>
      %128 = vector.extract_strided_slice %117 {offsets = [0, 64], sizes = [2, 32], strides = [1, 1]} : vector<2x128xf32> to vector<2x32xf32>
      %129 = math.tanh %128 : vector<2x32xf32>
      %130 = arith.mulf %126, %arg14 : vector<2x32xf32>
      %131 = arith.mulf %125, %129 : vector<2x32xf32>
      %132 = arith.addf %130, %131 : vector<2x32xf32>
      %133 = math.tanh %132 : vector<2x32xf32>
      %134 = arith.mulf %127, %133 : vector<2x32xf32>
      %135 = arith.index_cast %arg12 : i32 to index
      %c0_125 = arith.constant 0 : index
      %c0_126 = arith.constant 0 : index
      %136 = vector.load %arg10[%135, %c0_125, %c0_126] : memref<16x2x32xf32, #tpu.memory_space<vmem>>, vector<1x2x32xf32>
      %137 = vector.shape_cast %136 : vector<1x2x32xf32> to vector<2x32xf32>
      %138 = vector.shape_cast %134 : vector<2x32xf32> to vector<1x2x32xf32>
      tpu.vector_store %arg10[%135, %c0_125, %c0_126], %138 {strides = array<i32>} : memref<16x2x32xf32, #tpu.memory_space<vmem>>, vector<1x2x32xf32>,
      scf.yield %134, %132 : vector<2x32xf32>, vector<2x32xf32>
    }
    %c16_i32_18 = arith.constant 16 : i32
    %c0_19 = arith.constant 0 : index
    %c0_20 = arith.constant 0 : index
    %c0_21 = arith.constant 0 : index
    %22 = vector.load %arg4[%c0_19, %c0_20, %c0_21] : memref<3x32x128xf32, #tpu.memory_space<vmem>>, vector<1x32x128xf32>
    %23 = vector.shape_cast %22 : vector<1x32x128xf32> to vector<32x128xf32>
    %c0_22 = arith.constant 0 : index
    %c0_23 = arith.constant 0 : index
    %c0_24 = arith.constant 0 : index
    %24 = vector.load %arg6[%c0_22, %c0_23, %c0_24] : memref<3x1x128xf32, #tpu.memory_space<vmem>>, vector<1x1x128xf32>
    %25 = vector.shape_cast %24 : vector<1x1x128xf32> to vector<1x128xf32>
    %c0_25 = arith.constant 0 : index
    %c0_26 = arith.constant 0 : index
    %c0_27 = arith.constant 0 : index
    %26 = vector.load %arg10[%c0_25, %c0_26, %c0_27] : memref<16x2x32xf32, #tpu.memory_space<vmem>>, vector<16x1x32xf32>
    %27 = vector.shape_cast %26 : vector<16x1x32xf32> to vector<16x32xf32>
    %cst_28 = arith.constant dense<0.000000e+00> : vector<16x128xf32>
    %28 = tpu.matmul %27, %23, %cst_28 {dimension_numbers = #tpu.dot_dimension_numbers<[1], [0], [0], [1], [0, 0, 1, 1], [], []>, precision = #tpu.contract_precision<fp32>} : vector<16x32xf32>, vector<32x128xf32>, vector<16x128xf32> -> vector<16x128xf32>
    %29 = vector.broadcast %25 : vector<1x128xf32> to vector<16x128xf32>
    %30 = arith.addf %28, %29 : vector<16x128xf32>
    %c0_29 = arith.constant 0 : index
    %c0_30 = arith.constant 0 : index
    %c0_31 = arith.constant 0 : index
    %31 = vector.load %arg11[%c0_29, %c0_30, %c0_31] : memref<16x2x128xf32, #tpu.memory_space<vmem>>, vector<16x1x128xf32>
    %32 = vector.shape_cast %31 : vector<16x1x128xf32> to vector<16x128xf32>
    %33 = vector.shape_cast %30 : vector<16x128xf32> to vector<16x1x128xf32>
    tpu.vector_store %arg11[%c0_29, %c0_30, %c0_31], %33 {strides = array<i32>} : memref<16x2x128xf32, #tpu.memory_space<vmem>>, vector<16x1x128xf32>,
    %c0_32 = arith.constant 0 : index
    %c1_33 = arith.constant 1 : index
    %c0_34 = arith.constant 0 : index
    %34 = vector.load %arg10[%c0_32, %c1_33, %c0_34] : memref<16x2x32xf32, #tpu.memory_space<vmem>>, vector<16x1x32xf32>
    %35 = vector.shape_cast %34 : vector<16x1x32xf32> to vector<16x32xf32>
    %cst_35 = arith.constant dense<0.000000e+00> : vector<16x128xf32>
    %36 = tpu.matmul %35, %23, %cst_35 {dimension_numbers = #tpu.dot_dimension_numbers<[1], [0], [0], [1], [0, 0, 1, 1], [], []>, precision = #tpu.contract_precision<fp32>} : vector<16x32xf32>, vector<32x128xf32>, vector<16x128xf32> -> vector<16x128xf32>
    %37 = vector.broadcast %25 : vector<1x128xf32> to vector<16x128xf32>
    %38 = arith.addf %36, %37 : vector<16x128xf32>
    %c0_36 = arith.constant 0 : index
    %c1_37 = arith.constant 1 : index
    %c0_38 = arith.constant 0 : index
    %39 = vector.load %arg11[%c0_36, %c1_37, %c0_38] : memref<16x2x128xf32, #tpu.memory_space<vmem>>, vector<16x1x128xf32>
    %40 = vector.shape_cast %39 : vector<16x1x128xf32> to vector<16x128xf32>
    %41 = vector.shape_cast %38 : vector<16x128xf32> to vector<16x1x128xf32>
    tpu.vector_store %arg11[%c0_36, %c1_37, %c0_38], %41 {strides = array<i32>} : memref<16x2x128xf32, #tpu.memory_space<vmem>>, vector<16x1x128xf32>,
    %c0_39 = arith.constant 0 : index
    %c0_40 = arith.constant 0 : index
    %c0_41 = arith.constant 0 : index
    %42 = vector.load %arg5[%c0_39, %c0_40, %c0_41] : memref<3x32x128xf32, #tpu.memory_space<vmem>>, vector<1x32x128xf32>
    %43 = vector.shape_cast %42 : vector<1x32x128xf32> to vector<32x128xf32>
    %cst_42 = arith.constant 0.000000e+00 : f32
    %44 = vector.broadcast %cst_42 : f32 to vector<2x32xf32>
    %c0_i32_43 = arith.constant 0 : i32
    %c16_i32_44 = arith.constant 16 : i32
    %45 = arith.addi %c0_i32_43, %c16_i32_44 : i32
    %c1_i32_45 = arith.constant 1 : i32
    %46:2 = scf.for %arg12 = %c0_i32_43 to %45 step %c1_i32_45 iter_args(%arg13 = %44, %arg14 = %44) -> (vector<2x32xf32>, vector<2x32xf32>)  : i32 {
      %113 = arith.index_cast %arg12 : i32 to index
      %c0_119 = arith.constant 0 : index
      %c0_120 = arith.constant 0 : index
      %114 = vector.load %arg11[%113, %c0_119, %c0_120] : memref<16x2x128xf32, #tpu.memory_space<vmem>>, vector<1x2x128xf32>
      %115 = vector.shape_cast %114 : vector<1x2x128xf32> to vector<2x128xf32>
      %cst_121 = arith.constant dense<0.000000e+00> : vector<2x128xf32>
      %116 = tpu.matmul %arg13, %43, %cst_121 {dimension_numbers = #tpu.dot_dimension_numbers<[1], [0], [0], [1], [0, 0, 1, 1], [], []>, precision = #tpu.contract_precision<fp32>} : vector<2x32xf32>, vector<32x128xf32>, vector<2x128xf32> -> vector<2x128xf32>
      %117 = arith.addf %115, %116 : vector<2x128xf32>
      %cst_122 = arith.constant 0.000000e+00 : f32
      %118 = vector.broadcast %cst_122 : f32 to vector<2x128xf32>
      %119 = arith.subf %118, %117 : vector<2x128xf32>
      %120 = math.exp %119 : vector<2x128xf32>
      %cst_123 = arith.constant 1.000000e+00 : f32
      %121 = vector.broadcast %cst_123 : f32 to vector<2x128xf32>
      %122 = arith.addf %121, %120 : vector<2x128xf32>
      %cst_124 = arith.constant 1.000000e+00 : f32
      %123 = vector.broadcast %cst_124 : f32 to vector<2x128xf32>
      %124 = arith.divf %123, %122 : vector<2x128xf32>
      %125 = vector.extract_strided_slice %124 {offsets = [0, 0], sizes = [2, 32], strides = [1, 1]} : vector<2x128xf32> to vector<2x32xf32>
      %126 = vector.extract_strided_slice %124 {offsets = [0, 32], sizes = [2, 32], strides = [1, 1]} : vector<2x128xf32> to vector<2x32xf32>
      %127 = vector.extract_strided_slice %124 {offsets = [0, 96], sizes = [2, 32], strides = [1, 1]} : vector<2x128xf32> to vector<2x32xf32>
      %128 = vector.extract_strided_slice %117 {offsets = [0, 64], sizes = [2, 32], strides = [1, 1]} : vector<2x128xf32> to vector<2x32xf32>
      %129 = math.tanh %128 : vector<2x32xf32>
      %130 = arith.mulf %126, %arg14 : vector<2x32xf32>
      %131 = arith.mulf %125, %129 : vector<2x32xf32>
      %132 = arith.addf %130, %131 : vector<2x32xf32>
      %133 = math.tanh %132 : vector<2x32xf32>
      %134 = arith.mulf %127, %133 : vector<2x32xf32>
      %135 = arith.index_cast %arg12 : i32 to index
      %c0_125 = arith.constant 0 : index
      %c0_126 = arith.constant 0 : index
      %136 = vector.load %arg10[%135, %c0_125, %c0_126] : memref<16x2x32xf32, #tpu.memory_space<vmem>>, vector<1x2x32xf32>
      %137 = vector.shape_cast %136 : vector<1x2x32xf32> to vector<2x32xf32>
      %138 = vector.shape_cast %134 : vector<2x32xf32> to vector<1x2x32xf32>
      tpu.vector_store %arg10[%135, %c0_125, %c0_126], %138 {strides = array<i32>} : memref<16x2x32xf32, #tpu.memory_space<vmem>>, vector<1x2x32xf32>,
      scf.yield %134, %132 : vector<2x32xf32>, vector<2x32xf32>
    }
    %c16_i32_46 = arith.constant 16 : i32
    %c1_47 = arith.constant 1 : index
    %c0_48 = arith.constant 0 : index
    %c0_49 = arith.constant 0 : index
    %47 = vector.load %arg4[%c1_47, %c0_48, %c0_49] : memref<3x32x128xf32, #tpu.memory_space<vmem>>, vector<1x32x128xf32>
    %48 = vector.shape_cast %47 : vector<1x32x128xf32> to vector<32x128xf32>
    %c1_50 = arith.constant 1 : index
    %c0_51 = arith.constant 0 : index
    %c0_52 = arith.constant 0 : index
    %49 = vector.load %arg6[%c1_50, %c0_51, %c0_52] : memref<3x1x128xf32, #tpu.memory_space<vmem>>, vector<1x1x128xf32>
    %50 = vector.shape_cast %49 : vector<1x1x128xf32> to vector<1x128xf32>
    %c0_53 = arith.constant 0 : index
    %c0_54 = arith.constant 0 : index
    %c0_55 = arith.constant 0 : index
    %51 = vector.load %arg10[%c0_53, %c0_54, %c0_55] : memref<16x2x32xf32, #tpu.memory_space<vmem>>, vector<16x1x32xf32>
    %52 = vector.shape_cast %51 : vector<16x1x32xf32> to vector<16x32xf32>
    %cst_56 = arith.constant dense<0.000000e+00> : vector<16x128xf32>
    %53 = tpu.matmul %52, %48, %cst_56 {dimension_numbers = #tpu.dot_dimension_numbers<[1], [0], [0], [1], [0, 0, 1, 1], [], []>, precision = #tpu.contract_precision<fp32>} : vector<16x32xf32>, vector<32x128xf32>, vector<16x128xf32> -> vector<16x128xf32>
    %54 = vector.broadcast %50 : vector<1x128xf32> to vector<16x128xf32>
    %55 = arith.addf %53, %54 : vector<16x128xf32>
    %c0_57 = arith.constant 0 : index
    %c0_58 = arith.constant 0 : index
    %c0_59 = arith.constant 0 : index
    %56 = vector.load %arg11[%c0_57, %c0_58, %c0_59] : memref<16x2x128xf32, #tpu.memory_space<vmem>>, vector<16x1x128xf32>
    %57 = vector.shape_cast %56 : vector<16x1x128xf32> to vector<16x128xf32>
    %58 = vector.shape_cast %55 : vector<16x128xf32> to vector<16x1x128xf32>
    tpu.vector_store %arg11[%c0_57, %c0_58, %c0_59], %58 {strides = array<i32>} : memref<16x2x128xf32, #tpu.memory_space<vmem>>, vector<16x1x128xf32>,
    %c0_60 = arith.constant 0 : index
    %c1_61 = arith.constant 1 : index
    %c0_62 = arith.constant 0 : index
    %59 = vector.load %arg10[%c0_60, %c1_61, %c0_62] : memref<16x2x32xf32, #tpu.memory_space<vmem>>, vector<16x1x32xf32>
    %60 = vector.shape_cast %59 : vector<16x1x32xf32> to vector<16x32xf32>
    %cst_63 = arith.constant dense<0.000000e+00> : vector<16x128xf32>
    %61 = tpu.matmul %60, %48, %cst_63 {dimension_numbers = #tpu.dot_dimension_numbers<[1], [0], [0], [1], [0, 0, 1, 1], [], []>, precision = #tpu.contract_precision<fp32>} : vector<16x32xf32>, vector<32x128xf32>, vector<16x128xf32> -> vector<16x128xf32>
    %62 = vector.broadcast %50 : vector<1x128xf32> to vector<16x128xf32>
    %63 = arith.addf %61, %62 : vector<16x128xf32>
    %c0_64 = arith.constant 0 : index
    %c1_65 = arith.constant 1 : index
    %c0_66 = arith.constant 0 : index
    %64 = vector.load %arg11[%c0_64, %c1_65, %c0_66] : memref<16x2x128xf32, #tpu.memory_space<vmem>>, vector<16x1x128xf32>
    %65 = vector.shape_cast %64 : vector<16x1x128xf32> to vector<16x128xf32>
    %66 = vector.shape_cast %63 : vector<16x128xf32> to vector<16x1x128xf32>
    tpu.vector_store %arg11[%c0_64, %c1_65, %c0_66], %66 {strides = array<i32>} : memref<16x2x128xf32, #tpu.memory_space<vmem>>, vector<16x1x128xf32>,
    %c1_67 = arith.constant 1 : index
    %c0_68 = arith.constant 0 : index
    %c0_69 = arith.constant 0 : index
    %67 = vector.load %arg5[%c1_67, %c0_68, %c0_69] : memref<3x32x128xf32, #tpu.memory_space<vmem>>, vector<1x32x128xf32>
    %68 = vector.shape_cast %67 : vector<1x32x128xf32> to vector<32x128xf32>
    %cst_70 = arith.constant 0.000000e+00 : f32
    %69 = vector.broadcast %cst_70 : f32 to vector<2x32xf32>
    %c0_i32_71 = arith.constant 0 : i32
    %c16_i32_72 = arith.constant 16 : i32
    %70 = arith.addi %c0_i32_71, %c16_i32_72 : i32
    %c1_i32_73 = arith.constant 1 : i32
    %71:2 = scf.for %arg12 = %c0_i32_71 to %70 step %c1_i32_73 iter_args(%arg13 = %69, %arg14 = %69) -> (vector<2x32xf32>, vector<2x32xf32>)  : i32 {
      %113 = arith.index_cast %arg12 : i32 to index
      %c0_119 = arith.constant 0 : index
      %c0_120 = arith.constant 0 : index
      %114 = vector.load %arg11[%113, %c0_119, %c0_120] : memref<16x2x128xf32, #tpu.memory_space<vmem>>, vector<1x2x128xf32>
      %115 = vector.shape_cast %114 : vector<1x2x128xf32> to vector<2x128xf32>
      %cst_121 = arith.constant dense<0.000000e+00> : vector<2x128xf32>
      %116 = tpu.matmul %arg13, %68, %cst_121 {dimension_numbers = #tpu.dot_dimension_numbers<[1], [0], [0], [1], [0, 0, 1, 1], [], []>, precision = #tpu.contract_precision<fp32>} : vector<2x32xf32>, vector<32x128xf32>, vector<2x128xf32> -> vector<2x128xf32>
      %117 = arith.addf %115, %116 : vector<2x128xf32>
      %cst_122 = arith.constant 0.000000e+00 : f32
      %118 = vector.broadcast %cst_122 : f32 to vector<2x128xf32>
      %119 = arith.subf %118, %117 : vector<2x128xf32>
      %120 = math.exp %119 : vector<2x128xf32>
      %cst_123 = arith.constant 1.000000e+00 : f32
      %121 = vector.broadcast %cst_123 : f32 to vector<2x128xf32>
      %122 = arith.addf %121, %120 : vector<2x128xf32>
      %cst_124 = arith.constant 1.000000e+00 : f32
      %123 = vector.broadcast %cst_124 : f32 to vector<2x128xf32>
      %124 = arith.divf %123, %122 : vector<2x128xf32>
      %125 = vector.extract_strided_slice %124 {offsets = [0, 0], sizes = [2, 32], strides = [1, 1]} : vector<2x128xf32> to vector<2x32xf32>
      %126 = vector.extract_strided_slice %124 {offsets = [0, 32], sizes = [2, 32], strides = [1, 1]} : vector<2x128xf32> to vector<2x32xf32>
      %127 = vector.extract_strided_slice %124 {offsets = [0, 96], sizes = [2, 32], strides = [1, 1]} : vector<2x128xf32> to vector<2x32xf32>
      %128 = vector.extract_strided_slice %117 {offsets = [0, 64], sizes = [2, 32], strides = [1, 1]} : vector<2x128xf32> to vector<2x32xf32>
      %129 = math.tanh %128 : vector<2x32xf32>
      %130 = arith.mulf %126, %arg14 : vector<2x32xf32>
      %131 = arith.mulf %125, %129 : vector<2x32xf32>
      %132 = arith.addf %130, %131 : vector<2x32xf32>
      %133 = math.tanh %132 : vector<2x32xf32>
      %134 = arith.mulf %127, %133 : vector<2x32xf32>
      %135 = arith.index_cast %arg12 : i32 to index
      %c0_125 = arith.constant 0 : index
      %c0_126 = arith.constant 0 : index
      %136 = vector.load %arg10[%135, %c0_125, %c0_126] : memref<16x2x32xf32, #tpu.memory_space<vmem>>, vector<1x2x32xf32>
      %137 = vector.shape_cast %136 : vector<1x2x32xf32> to vector<2x32xf32>
      %138 = vector.shape_cast %134 : vector<2x32xf32> to vector<1x2x32xf32>
      tpu.vector_store %arg10[%135, %c0_125, %c0_126], %138 {strides = array<i32>} : memref<16x2x32xf32, #tpu.memory_space<vmem>>, vector<1x2x32xf32>,
      scf.yield %134, %132 : vector<2x32xf32>, vector<2x32xf32>
    }
    %c16_i32_74 = arith.constant 16 : i32
    %c2 = arith.constant 2 : index
    %c0_75 = arith.constant 0 : index
    %c0_76 = arith.constant 0 : index
    %72 = vector.load %arg4[%c2, %c0_75, %c0_76] : memref<3x32x128xf32, #tpu.memory_space<vmem>>, vector<1x32x128xf32>
    %73 = vector.shape_cast %72 : vector<1x32x128xf32> to vector<32x128xf32>
    %c2_77 = arith.constant 2 : index
    %c0_78 = arith.constant 0 : index
    %c0_79 = arith.constant 0 : index
    %74 = vector.load %arg6[%c2_77, %c0_78, %c0_79] : memref<3x1x128xf32, #tpu.memory_space<vmem>>, vector<1x1x128xf32>
    %75 = vector.shape_cast %74 : vector<1x1x128xf32> to vector<1x128xf32>
    %c0_80 = arith.constant 0 : index
    %c0_81 = arith.constant 0 : index
    %c0_82 = arith.constant 0 : index
    %76 = vector.load %arg10[%c0_80, %c0_81, %c0_82] : memref<16x2x32xf32, #tpu.memory_space<vmem>>, vector<16x1x32xf32>
    %77 = vector.shape_cast %76 : vector<16x1x32xf32> to vector<16x32xf32>
    %cst_83 = arith.constant dense<0.000000e+00> : vector<16x128xf32>
    %78 = tpu.matmul %77, %73, %cst_83 {dimension_numbers = #tpu.dot_dimension_numbers<[1], [0], [0], [1], [0, 0, 1, 1], [], []>, precision = #tpu.contract_precision<fp32>} : vector<16x32xf32>, vector<32x128xf32>, vector<16x128xf32> -> vector<16x128xf32>
    %79 = vector.broadcast %75 : vector<1x128xf32> to vector<16x128xf32>
    %80 = arith.addf %78, %79 : vector<16x128xf32>
    %c0_84 = arith.constant 0 : index
    %c0_85 = arith.constant 0 : index
    %c0_86 = arith.constant 0 : index
    %81 = vector.load %arg11[%c0_84, %c0_85, %c0_86] : memref<16x2x128xf32, #tpu.memory_space<vmem>>, vector<16x1x128xf32>
    %82 = vector.shape_cast %81 : vector<16x1x128xf32> to vector<16x128xf32>
    %83 = vector.shape_cast %80 : vector<16x128xf32> to vector<16x1x128xf32>
    tpu.vector_store %arg11[%c0_84, %c0_85, %c0_86], %83 {strides = array<i32>} : memref<16x2x128xf32, #tpu.memory_space<vmem>>, vector<16x1x128xf32>,
    %c0_87 = arith.constant 0 : index
    %c1_88 = arith.constant 1 : index
    %c0_89 = arith.constant 0 : index
    %84 = vector.load %arg10[%c0_87, %c1_88, %c0_89] : memref<16x2x32xf32, #tpu.memory_space<vmem>>, vector<16x1x32xf32>
    %85 = vector.shape_cast %84 : vector<16x1x32xf32> to vector<16x32xf32>
    %cst_90 = arith.constant dense<0.000000e+00> : vector<16x128xf32>
    %86 = tpu.matmul %85, %73, %cst_90 {dimension_numbers = #tpu.dot_dimension_numbers<[1], [0], [0], [1], [0, 0, 1, 1], [], []>, precision = #tpu.contract_precision<fp32>} : vector<16x32xf32>, vector<32x128xf32>, vector<16x128xf32> -> vector<16x128xf32>
    %87 = vector.broadcast %75 : vector<1x128xf32> to vector<16x128xf32>
    %88 = arith.addf %86, %87 : vector<16x128xf32>
    %c0_91 = arith.constant 0 : index
    %c1_92 = arith.constant 1 : index
    %c0_93 = arith.constant 0 : index
    %89 = vector.load %arg11[%c0_91, %c1_92, %c0_93] : memref<16x2x128xf32, #tpu.memory_space<vmem>>, vector<16x1x128xf32>
    %90 = vector.shape_cast %89 : vector<16x1x128xf32> to vector<16x128xf32>
    %91 = vector.shape_cast %88 : vector<16x128xf32> to vector<16x1x128xf32>
    tpu.vector_store %arg11[%c0_91, %c1_92, %c0_93], %91 {strides = array<i32>} : memref<16x2x128xf32, #tpu.memory_space<vmem>>, vector<16x1x128xf32>,
    %c2_94 = arith.constant 2 : index
    %c0_95 = arith.constant 0 : index
    %c0_96 = arith.constant 0 : index
    %92 = vector.load %arg5[%c2_94, %c0_95, %c0_96] : memref<3x32x128xf32, #tpu.memory_space<vmem>>, vector<1x32x128xf32>
    %93 = vector.shape_cast %92 : vector<1x32x128xf32> to vector<32x128xf32>
    %cst_97 = arith.constant 0.000000e+00 : f32
    %94 = vector.broadcast %cst_97 : f32 to vector<2x32xf32>
    %c0_i32_98 = arith.constant 0 : i32
    %c16_i32_99 = arith.constant 16 : i32
    %95 = arith.addi %c0_i32_98, %c16_i32_99 : i32
    %c1_i32_100 = arith.constant 1 : i32
    %96:2 = scf.for %arg12 = %c0_i32_98 to %95 step %c1_i32_100 iter_args(%arg13 = %94, %arg14 = %94) -> (vector<2x32xf32>, vector<2x32xf32>)  : i32 {
      %113 = arith.index_cast %arg12 : i32 to index
      %c0_119 = arith.constant 0 : index
      %c0_120 = arith.constant 0 : index
      %114 = vector.load %arg11[%113, %c0_119, %c0_120] : memref<16x2x128xf32, #tpu.memory_space<vmem>>, vector<1x2x128xf32>
      %115 = vector.shape_cast %114 : vector<1x2x128xf32> to vector<2x128xf32>
      %cst_121 = arith.constant dense<0.000000e+00> : vector<2x128xf32>
      %116 = tpu.matmul %arg13, %93, %cst_121 {dimension_numbers = #tpu.dot_dimension_numbers<[1], [0], [0], [1], [0, 0, 1, 1], [], []>, precision = #tpu.contract_precision<fp32>} : vector<2x32xf32>, vector<32x128xf32>, vector<2x128xf32> -> vector<2x128xf32>
      %117 = arith.addf %115, %116 : vector<2x128xf32>
      %cst_122 = arith.constant 0.000000e+00 : f32
      %118 = vector.broadcast %cst_122 : f32 to vector<2x128xf32>
      %119 = arith.subf %118, %117 : vector<2x128xf32>
      %120 = math.exp %119 : vector<2x128xf32>
      %cst_123 = arith.constant 1.000000e+00 : f32
      %121 = vector.broadcast %cst_123 : f32 to vector<2x128xf32>
      %122 = arith.addf %121, %120 : vector<2x128xf32>
      %cst_124 = arith.constant 1.000000e+00 : f32
      %123 = vector.broadcast %cst_124 : f32 to vector<2x128xf32>
      %124 = arith.divf %123, %122 : vector<2x128xf32>
      %125 = vector.extract_strided_slice %124 {offsets = [0, 0], sizes = [2, 32], strides = [1, 1]} : vector<2x128xf32> to vector<2x32xf32>
      %126 = vector.extract_strided_slice %124 {offsets = [0, 32], sizes = [2, 32], strides = [1, 1]} : vector<2x128xf32> to vector<2x32xf32>
      %127 = vector.extract_strided_slice %124 {offsets = [0, 96], sizes = [2, 32], strides = [1, 1]} : vector<2x128xf32> to vector<2x32xf32>
      %128 = vector.extract_strided_slice %117 {offsets = [0, 64], sizes = [2, 32], strides = [1, 1]} : vector<2x128xf32> to vector<2x32xf32>
      %129 = math.tanh %128 : vector<2x32xf32>
      %130 = arith.mulf %126, %arg14 : vector<2x32xf32>
      %131 = arith.mulf %125, %129 : vector<2x32xf32>
      %132 = arith.addf %130, %131 : vector<2x32xf32>
      %133 = math.tanh %132 : vector<2x32xf32>
      %134 = arith.mulf %127, %133 : vector<2x32xf32>
      %135 = arith.index_cast %arg12 : i32 to index
      %c0_125 = arith.constant 0 : index
      %c0_126 = arith.constant 0 : index
      %136 = vector.load %arg10[%135, %c0_125, %c0_126] : memref<16x2x32xf32, #tpu.memory_space<vmem>>, vector<1x2x32xf32>
      %137 = vector.shape_cast %136 : vector<1x2x32xf32> to vector<2x32xf32>
      %138 = vector.shape_cast %134 : vector<2x32xf32> to vector<1x2x32xf32>
      tpu.vector_store %arg10[%135, %c0_125, %c0_126], %138 {strides = array<i32>} : memref<16x2x32xf32, #tpu.memory_space<vmem>>, vector<1x2x32xf32>,
      scf.yield %134, %132 : vector<2x32xf32>, vector<2x32xf32>
    }
    %c16_i32_101 = arith.constant 16 : i32
    %cst_102 = arith.constant 0.000000e+00 : f32
    %97 = vector.broadcast %cst_102 : f32 to vector<16x120xf32>
    %c0_103 = arith.constant 0 : index
    %c0_104 = arith.constant 0 : index
    %98 = vector.load %arg9[%c0_103, %c0_104] : memref<16x120xf32, #tpu.memory_space<vmem>>, vector<16x120xf32>
    tpu.vector_store %arg9[%c0_103, %c0_104], %97 {strides = array<i32>} : memref<16x120xf32, #tpu.memory_space<vmem>>, vector<16x120xf32>,
    %c0_105 = arith.constant 0 : index
    %c0_106 = arith.constant 0 : index
    %99 = vector.load %arg7[%c0_105, %c0_106] : memref<16x32xf32, #tpu.memory_space<vmem>>, vector<16x32xf32>
    %c0_107 = arith.constant 0 : index
    %c0_108 = arith.constant 0 : index
    %100 = vector.load %arg8[%c0_107, %c0_108] : memref<16x1xf32, #tpu.memory_space<vmem>>, vector<16x1xf32>
    %c0_109 = arith.constant 0 : index
    %c0_110 = arith.constant 0 : index
    %c0_111 = arith.constant 0 : index
    %101 = vector.load %arg10[%c0_109, %c0_110, %c0_111] : memref<16x2x32xf32, #tpu.memory_space<vmem>>, vector<16x1x32xf32>
    %102 = vector.shape_cast %101 : vector<16x1x32xf32> to vector<16x32xf32>
    %cst_112 = arith.constant dense<0.000000e+00> : vector<16x16xf32>
    %103 = tpu.matmul %99, %102, %cst_112 {dimension_numbers = #tpu.dot_dimension_numbers<[1], [1], [0], [0], [0, 0, 1, 0], [], []>, precision = #tpu.contract_precision<fp32>} : vector<16x32xf32>, vector<16x32xf32>, vector<16x16xf32> -> vector<16x16xf32>
    %104 = vector.broadcast %100 : vector<16x1xf32> to vector<16x16xf32>
    %105 = arith.addf %103, %104 : vector<16x16xf32>
    %c0_113 = arith.constant 0 : index
    %c22 = arith.constant 22 : index
    %106 = vector.load %arg9[%c0_113, %c22] : memref<16x120xf32, #tpu.memory_space<vmem>>, vector<16x16xf32>
    tpu.vector_store %arg9[%c0_113, %c22], %105 {strides = array<i32>} : memref<16x120xf32, #tpu.memory_space<vmem>>, vector<16x16xf32>,
    %c0_114 = arith.constant 0 : index
    %c1_115 = arith.constant 1 : index
    %c0_116 = arith.constant 0 : index
    %107 = vector.load %arg10[%c0_114, %c1_115, %c0_116] : memref<16x2x32xf32, #tpu.memory_space<vmem>>, vector<16x1x32xf32>
    %108 = vector.shape_cast %107 : vector<16x1x32xf32> to vector<16x32xf32>
    %cst_117 = arith.constant dense<0.000000e+00> : vector<16x16xf32>
    %109 = tpu.matmul %99, %108, %cst_117 {dimension_numbers = #tpu.dot_dimension_numbers<[1], [1], [0], [0], [0, 0, 1, 0], [], []>, precision = #tpu.contract_precision<fp32>} : vector<16x32xf32>, vector<16x32xf32>, vector<16x16xf32> -> vector<16x16xf32>
    %110 = vector.broadcast %100 : vector<16x1xf32> to vector<16x16xf32>
    %111 = arith.addf %109, %110 : vector<16x16xf32>
    %c0_118 = arith.constant 0 : index
    %c82 = arith.constant 82 : index
    %112 = vector.load %arg9[%c0_118, %c82] : memref<16x120xf32, #tpu.memory_space<vmem>>, vector<16x16xf32>
    tpu.vector_store %arg9[%c0_118, %c82], %111 {strides = array<i32>} : memref<16x120xf32, #tpu.memory_space<vmem>>, vector<16x16xf32>,
    return
  }
}

</mosaic_0001>

<bundles_post_ra>
// kernel: tpu_custom_call.1
= control target key start
LH: loop header
LB: loop body
LE: loop exit
PB: predicated region body
PF: predicated region fallthrough
CT: control target
= control target key end

     0   :  { %14 = vsyncpa [#allocation5], 0  ;;  %s12762_s0 = inlined_call_operand.hbm [shape: f32[2,16,32], index: 0, kind: input, shape index: {}]   ;;  %s12763_s1 = inlined_call_operand.hbm [shape: f32[32,128], index: 1, kind: input, shape index: {}]   ;;  %s12764_s2 = inlined_call_operand.hbm [shape: f32[32,128], index: 2, kind: input, shape index: {}]   ;;  %s12765_s3 = inlined_call_operand.vmem [shape: f32[1,128], index: 3, kind: input, shape index: {}]   ;;  %s12766_s4 = inlined_call_operand.hbm [shape: f32[3,32,128], index: 4, kind: input, shape index: {}]   ;;  %s12767_s5 = inlined_call_operand.hbm [shape: f32[3,32,128], index: 5, kind: input, shape index: {}]   ;;  %s12768_s6 = inlined_call_operand.vmem [shape: f32[3,1,128], index: 6, kind: input, shape index: {}]   ;;  %s12769_s7 = inlined_call_operand.vmem [shape: f32[16,32], index: 7, kind: input, shape index: {}]   ;;  %s12770_s8 = inlined_call_operand.vmem [shape: f32[16,1], index: 8, kind: input, shape index: {}]   ;;  %s12771_s9 = inlined_call_operand.hbm [shape: f32[16,120], index: 9, kind: output, shape index: {}]  }
   0x1   :  { %15 = vsyncpa [#allocation8], 0 }
   0x2   :  { %16 = vsyncpa [#allocation11], 0 }
   0x3   :  { %17 = vsyncpa [#allocation6], 0  ;;  %s11032_s30 = smov [#allocation7]   ;;  %s11033_s11 = smov [#allocation10]  }
   0x4   :  { %s35_s10 = sshll.u32 %s11032_s30, 4  ;;  %s61_s12 = sshll.u32 %s11033_s11, 4  ;;  %s36_s10 = int_to_ptr.vmem [resolvable:$true] %s35_s10  ;;  %s62_s12 = int_to_ptr.vmem [resolvable:$true] %s61_s12 }
   0x5   :  { %s10816_s13 = scalar_lea.vmem %s36_s10, 512  ;;  %p10821_p1 = scmp.lt.s32.totalorder %s36_s10, %s36_s10 }
   0x6   :  { %p10817_p0 = scmp.ne.s32.totalorder %s36_s10, %s10816_s13  ;;  %p10822_p2 = scmp.lt.s32.totalorder %s10816_s13, %s10816_s13 }
   0x8   :  { %p10823_p3 = por %p10822_p2, %p10821_p1 }
   0xa   :  { %p10824_p4 = pnand %p10823_p3, %p10817_p0 }
   0xc   :  { %10827 = shalt.err (!%p10824_p4)
}
   0xd   :  { %s11034_s14 = smov 128   ;;  %s11035_s15 = smov 8  }
   0xe   :  { %41 = dma.hbm_to_vmem [thread:$0]  %s12763_s1, 512, %s36_s10, [#allocation8], %s11034_s14, %s11034_s14, %s11035_s15  }
   0xf   :  { %s10836_s18 = scalar_lea.vmem %s62_s12, 1536  ;;  %p10841_p6 = scmp.lt.s32.totalorder %s62_s12, %s62_s12 }
  0x10   :  { %p10837_p5 = scmp.ne.s32.totalorder %s62_s12, %s10836_s18  ;;  %p10842_p7 = scmp.lt.s32.totalorder %s10836_s18, %s10836_s18 }
  0x12   :  { %p10843_p8 = por %p10842_p7, %p10841_p6 }
  0x14   :  { %p10844_p9 = pnand %p10843_p8, %p10837_p5 }
  0x16   :  { %10847 = shalt.err (!%p10844_p9)
}
  0x17   :  { %67 = dma.hbm_to_vmem [thread:$0]  %s12766_s4, 1536, %s62_s12, [#allocation11], %s11034_s14, %s11034_s14, %s11035_s15  }
  0x18   :  { %s11036_s21 = smov [#allocation4]   ;;  %s11037_s23 = smov [#allocation9]  }
  0x19   :  { %s23_s22 = sshll.u32 %s11036_s21, 4  ;;  %s47_s24 = sshll.u32 %s11037_s23, 4  ;;  %s24_s22 = int_to_ptr.vmem [resolvable:$true] %s23_s22  ;;  %s48_s24 = int_to_ptr.vmem [resolvable:$true] %s47_s24 }
  0x1a   :  { %s10856_s1 = scalar_lea.vmem %s24_s22, 512  ;;  %p10861_p11 = scmp.lt.s32.totalorder %s24_s22, %s24_s22 }
  0x1b   :  { %p10857_p10 = scmp.ne.s32.totalorder %s24_s22, %s10856_s1  ;;  %p10862_p12 = scmp.lt.s32.totalorder %s10856_s1, %s10856_s1 }
  0x1d   :  { %p10863_p13 = por %p10862_p12, %p10861_p11 }
  0x1f   :  { %p10864_p0 = pnand %p10863_p13, %p10857_p10 }
  0x21   :  { %10867 = shalt.err (!%p10864_p0)
}
  0x22   :  { %29 = dma.hbm_to_vmem [thread:$0]  %s12762_s0, 512, %s24_s22, [#allocation5], %s11034_s14, %s11034_s14, %s11035_s15  }
  0x23   :  { %s10876_s4 = scalar_lea.vmem %s48_s24, 512  ;;  %p10881_p2 = scmp.lt.s32.totalorder %s48_s24, %s48_s24 }
  0x24   :  { %p10877_p1 = scmp.ne.s32.totalorder %s48_s24, %s10876_s4  ;;  %p10882_p3 = scmp.lt.s32.totalorder %s10876_s4, %s10876_s4 }
  0x26   :  { %p10883_p4 = por %p10882_p3, %p10881_p2 }
  0x28   :  { %p10884_p5 = pnand %p10883_p4, %p10877_p1 }
  0x2a   :  { %10887 = shalt.err (!%p10884_p5)
}
  0x2b   :  { %53 = dma.hbm_to_vmem [thread:$0]  %s12764_s2, 512, %s48_s24, [#allocation8], %s11034_s14, %s11034_s14, %s11035_s15  }
  0x2c   :  { %s11038_s29 = smov [#allocation12]  }
  0x2d   :  { %s73_s30 = sshll.u32 %s11038_s29, 4  ;;  %s74_s30 = int_to_ptr.vmem [resolvable:$true] %s73_s30 }
  0x2e   :  { %s10896_s10 = scalar_lea.vmem %s74_s30, 1536  ;;  %p10901_p7 = scmp.lt.s32.totalorder %s74_s30, %s74_s30 }
  0x2f   :  { %p10897_p6 = scmp.ne.s32.totalorder %s74_s30, %s10896_s10  ;;  %p10902_p8 = scmp.lt.s32.totalorder %s10896_s10, %s10896_s10 }
  0x31   :  { %p10903_p9 = por %p10902_p8, %p10901_p7 }
  0x33   :  { %p10904_p10 = pnand %p10903_p9, %p10897_p6 }
  0x35   :  { %10907 = shalt.err (!%p10904_p10)
}
  0x36   :  { %79 = dma.hbm_to_vmem [thread:$0]  %s12767_s5, 1536, %s74_s30, [#allocation11], %s11034_s14, %s11034_s14, %s11035_s15  }
  0x37   :  { %10976 = dma.done.wait [#allocation5], 512  }
  0x38   :  { %10977 = vsyncadd [#allocation5], 4294966784 }
  0x39   :  { %10978 = dma.done.wait [#allocation8], 1024  }
  0x3a   :  { %10979 = vsyncadd [#allocation8], 4294966272 }
  0x3b   :  { %10980 = dma.done.wait [#allocation11], 3072  }
  0x3c   :  { %10981 = vsyncadd [#allocation11], 4294964224  ;;  %v11141_v0 = vld [vmem:[#allocation9] sm:$0xff]  ;;  %v11143_v1 = vld [vmem:[#allocation9 + $0x8] sm:$0xff]  ;;  %vm114_vm0 = vcmask 261120  }
  0x3d   :  { %v11145_v2 = vld [vmem:[#allocation9 + $0x10] sm:$0xff]  ;;  %v11147_v3 = vld [vmem:[#allocation9 + $0x18] sm:$0xff]  ;;  %v102_v8 = vld [vmem:[#allocation7 + $0x8] sm:$0xff] }
  0x3e   :  { %v104_v4 = vld [vmem:[#allocation7 + $0x18] sm:$0xff]  ;;  %v103_v5 = vld [vmem:[#allocation7 + $0x10] sm:$0xff]  ;;  %v101_v9 = vld [vmem:[#allocation7] sm:$0xff]  ;;  %v11153_v11 = vand.u32 4294901760, %v102_v8 }
  0x3f   :  { %v11149_v6 = vand.u32 4294901760, %v104_v4  ;;  %v11151_v7 = vand.u32 4294901760, %v103_v5  ;;  %v106_v10 = vld [vmem:[#allocation4] sm:$0xff]  ;;  %v11155_v12 = vand.u32 4294901760, %v101_v9  ;;  %v107_v14 = vld [vmem:[#allocation4 + $0x8] sm:$0xff]  ;;  %v782_v42 = vld [vmem:[#allocation4 + $0x10] sm:$0xff] }
  0x40   :  { %v116_v13 = vsel %vm114_vm0, %v106_v10, 0  ;;  %v119_v18 = vsel %vm114_vm0, %v107_v14, 0  ;;  %v11172_v20 = vsub.f32 %v102_v8, %v11153_v11  ;;  %v783_v43 = vld [vmem:[#allocation4 + $0x18] sm:$0xff]  ;;  %v785_v44 = vsel %vm114_vm0, %v782_v42, 0  ;;  %v11344_v57 = vld [vmem:[%s12765_s3] ss:$0 sm:$0xff] }
  0x41   :  { %9774 = vmatprep.subr.mxu0 %v11149_v6  ;;  %v11160_v15 = vsub.f32 %v104_v4, %v11149_v6  ;;  %v11162_v16 = vand.u32 4294901760, %v116_v13  ;;  %v11165_v17 = vsub.f32 %v103_v5, %v11151_v7  ;;  %v11169_v19 = vand.u32 4294901760, %v119_v18  ;;  %s11380_s3 = smov 0  }
  0x42   :  { %9775 = vmatpush3.msra.mxu0 %v11149_v6  ;;  %v11175_v21 = vsub.f32 %v101_v9, %v11155_v12  ;;  %v11193_v26 = vand.u32 4294901760, %v11172_v20  ;;  %v788_v45 = vsel %vm114_vm0, %v783_v43, 0  ;;  %v11245_v46 = vand.u32 4294901760, %v785_v44 }
  0x43   :  { %9776 = vmatprep.subr.mxu0 %v11151_v7  ;;  %v11179_v22 = vand.u32 4294901760, %v11160_v15  ;;  %v11182_v23 = vsub.f32 %v116_v13, %v11162_v16  ;;  %v11185_v24 = vand.u32 4294901760, %v11165_v17  ;;  %9793 = vmatprep.mubr.f32.mxu1 %v11162_v16  ;;  %v11190_v25 = vsub.f32 %v119_v18, %v11169_v19 }
  0x44   :  { %9777 = vmatpush3.msra.mxu0 %v11151_v7  ;;  %v11196_v27 = vand.u32 4294901760, %v11175_v21  ;;  %v252_v32 = vsub.f32 %v11172_v20, %v11193_v26  ;;  %v11249_v47 = vand.u32 4294901760, %v788_v45  ;;  %v11258_v48 = vsub.f32 %v785_v44, %v11245_v46 }
  0x45   :  { %9778 = vmatprep.subr.mxu0 %v11153_v11  ;;  %v238_v28 = vsub.f32 %v11160_v15, %v11179_v22  ;;  %v192_v29 = vand.u32 4294901760, %v11182_v23  ;;  %v245_v30 = vsub.f32 %v11165_v17, %v11185_v24  ;;  %v202_v31 = vand.u32 4294901760, %v11190_v25 }
  0x46   :  { %9779 = vmatpush3.msra.mxu0 %v11153_v11  ;;  %v259_v36 = vsub.f32 %v11175_v21, %v11196_v27  ;;  %v11220_v39 = vand.u32 4294901760, %v252_v32  ;;  %v11263_v49 = vsub.f32 %v788_v45, %v11249_v47  ;;  %v861_v50 = vand.u32 4294901760, %v11258_v48 }
  0x47   :  { %9780 = vmatprep.subr.mxu0 %v11155_v12  ;;  %v11209_v33 = vand.u32 4294901760, %v238_v28  ;;  %v193_v34 = vsub.f32 %v11182_v23, %v192_v29  ;;  %v11212_v35 = vand.u32 4294901760, %v245_v30  ;;  %v203_v37 = vsub.f32 %v11190_v25, %v202_v31 }
  0x48   :  { %9781 = vmatpush3.msra.mxu0 %v11155_v12  ;;  %v11224_v41 = vand.u32 4294901760, %v259_v36  ;;  %v871_v51 = vand.u32 4294901760, %v11263_v49  ;;  %v862_v52 = vsub.f32 %v11258_v48, %v861_v50  ;;  %v655_v9 = vlaneseq }
  0x49   :  { %9785 = vmatprep.subr.mxu1 %v11209_v33  ;;  %v194_v38 = vand.u32 4294901760, %v193_v34  ;;  %9796 = vmatprep.subr.mxu0 %v11160_v15  ;;  %v204_v40 = vand.u32 4294901760, %v203_v37 }
  0x4a   :  { %9786 = vmatpush3.msra.mxu1 %v11209_v33  ;;  %v872_v53 = vsub.f32 %v11263_v49, %v871_v51  ;;  %v863_v54 = vand.u32 4294901760, %v862_v52 }
  0x4b   :  { %9782 = vmatprep.mubr.f32.mxu0 %v194_v38  ;;  %9787 = vmatprep.subr.mxu1 %v11212_v35 }
  0x4c   :  { %9783 = vmatmul.mubr.f32.vlgmr.msra.gmra.mxu0 %v204_v40  ;;  %9788 = vmatpush3.msra.mxu1 %v11212_v35  ;;  %v873_v55 = vand.u32 4294901760, %v872_v53 }
  0x4d   :  { %9797 = vmatpush3.msra.mxu0 %v11160_v15  ;;  %9789 = vmatprep.subr.mxu1 %v11220_v39 }
  0x4e   :  { %9798 = vmatprep.subr.mxu0 %v11165_v17  ;;  %9790 = vmatpush3.msra.mxu1 %v11220_v39 }
  0x4f   :  { %9799 = vmatpush3.msra.mxu0 %v11165_v17  ;;  %9791 = vmatprep.subr.mxu1 %v11224_v41 }
  0x50   :  { %9800 = vmatprep.subr.mxu0 %v11172_v20  ;;  %9792 = vmatpush3.msra.mxu1 %v11224_v41 }
  0x51   :  { %9801 = vmatpush3.msra.mxu0 %v11172_v20  ;;  %9794 = vmatmul.mubr.f32.vlgmr.msra.gmra.mxu1 %v11169_v19 }
  0x52   :  { %9802 = vmatprep.subr.mxu0 %v11175_v21  ;;  %9807 = vmatprep.subr.mxu1 %v11149_v6 }
  0x53   :  { %9803 = vmatpush3.msra.mxu0 %v11175_v21  ;;  %9804 = vmatprep.mubr.f32.mxu0 %v11182_v23 }
  0x54   :  { %9808 = vmatpush3.msra.mxu1 %v11149_v6  ;;  %9805 = vmatmul.mubr.f32.vlgmr.msra.gmra.mxu0 %v11190_v25 }
  0x55   :  { %9809 = vmatprep.subr.mxu1 %v11151_v7  ;;  %9818 = vmatprep.subr.mxu0 %v11179_v22 }
  0x56   :  { %9810 = vmatpush3.msra.mxu1 %v11151_v7  ;;  %9819 = vmatpush3.msra.mxu0 %v11179_v22 }
  0x57   :  { %9811 = vmatprep.subr.mxu1 %v11153_v11  ;;  %9820 = vmatprep.subr.mxu0 %v11185_v24 }
  0x58   :  { %9812 = vmatpush3.msra.mxu1 %v11153_v11  ;;  %9821 = vmatpush3.msra.mxu0 %v11185_v24 }
  0x59   :  { %9813 = vmatprep.subr.mxu1 %v11155_v12  ;;  %9822 = vmatprep.subr.mxu0 %v11193_v26 }
  0x5a   :  { %9814 = vmatpush3.msra.mxu1 %v11155_v12  ;;  %9815 = vmatprep.mubr.f32.mxu1 %v192_v29 }
  0x5b   :  { %9823 = vmatpush3.msra.mxu0 %v11193_v26  ;;  %9816 = vmatmul.mubr.f32.vlgmr.msra.gmra.mxu1 %v202_v31 }
  0x5c   :  { %9824 = vmatprep.subr.mxu0 %v11196_v27  ;;  %9829 = vmatprep.subr.mxu1 %v11149_v6 }
  0x5d   :  { %9825 = vmatpush3.msra.mxu0 %v11196_v27  ;;  %9826 = vmatprep.mubr.f32.mxu0 %v11162_v16 }
  0x5e   :  { %9830 = vmatpush3.msra.mxu1 %v11149_v6  ;;  %9827 = vmatmul.mubr.f32.vlgmr.msra.gmra.mxu0 %v11169_v19 }
  0x5f   :  { %9831 = vmatprep.subr.mxu1 %v11151_v7  ;;  %9840 = vmatprep.subr.mxu0 %v11149_v6 }
  0x60   :  { %9832 = vmatpush3.msra.mxu1 %v11151_v7  ;;  %9841 = vmatpush3.msra.mxu0 %v11149_v6 }
  0x61   :  { %9833 = vmatprep.subr.mxu1 %v11153_v11  ;;  %9842 = vmatprep.subr.mxu0 %v11151_v7 }
  0x62   :  { %9834 = vmatpush3.msra.mxu1 %v11153_v11  ;;  %9843 = vmatpush3.msra.mxu0 %v11151_v7 }
  0x63   :  { %9835 = vmatprep.subr.mxu1 %v11155_v12  ;;  %9844 = vmatprep.subr.mxu0 %v11153_v11 }
  0x64   :  { %9836 = vmatpush3.msra.mxu1 %v11155_v12  ;;  %9837 = vmatprep.mubr.f32.mxu1 %v11162_v16 }
  0x65   :  { %9845 = vmatpush3.msra.mxu0 %v11153_v11  ;;  %9838 = vmatmul.mubr.f32.vlgmr.msra.gmra.mxu1 %v11169_v19 }
  0x66   :  { %9846 = vmatprep.subr.mxu0 %v11155_v12  ;;  %9851 = vmatprep.subr.mxu1 %v11209_v33 }
  0x67   :  { %9847 = vmatpush3.msra.mxu0 %v11155_v12  ;;  %9852 = vmatpush3.msra.mxu1 %v11209_v33 }
  0x68   :  { %9848 = vmatprep.mubr.f32.mxu0 %v863_v54  ;;  %9853 = vmatprep.subr.mxu1 %v11212_v35 }
  0x69   :  { %9862 = vmatprep.subr.mxu0 %v11160_v15  ;;  %9849 = vmatmul.mubr.f32.vlgmr.msra.gmra.mxu0 %v873_v55 }
  0x6a   :  { %9854 = vmatpush3.msra.mxu1 %v11212_v35  ;;  %9863 = vmatpush3.msra.mxu0 %v11160_v15 }
  0x6b   :  { %9855 = vmatprep.subr.mxu1 %v11220_v39  ;;  %9864 = vmatprep.subr.mxu0 %v11165_v17 }
  0x6c   :  { %9856 = vmatpush3.msra.mxu1 %v11220_v39  ;;  %9865 = vmatpush3.msra.mxu0 %v11165_v17  ;;  %v656_v17 = vshrl.u32 %v655_v9, 7 }
  0x6d   :  { %9857 = vmatprep.subr.mxu1 %v11224_v41  ;;  %9866 = vmatprep.subr.mxu0 %v11172_v20 }
  0x6e   :  { %9858 = vmatpush3.msra.mxu1 %v11224_v41  ;;  %9859 = vmatprep.mubr.f32.mxu1 %v11245_v46 }
  0x6f   :  { %9867 = vmatpush3.msra.mxu0 %v11172_v20  ;;  %9860 = vmatmul.mubr.f32.vlgmr.msra.gmra.mxu1 %v11249_v47 }
  0x70   :  { %9868 = vmatprep.subr.mxu0 %v11175_v21  ;;  %9873 = vmatprep.subr.mxu1 %v11149_v6 }
  0x71   :  { %9869 = vmatpush3.msra.mxu0 %v11175_v21  ;;  %9870 = vmatprep.mubr.f32.mxu0 %v11258_v48 }
  0x72   :  { %9874 = vmatpush3.msra.mxu1 %v11149_v6  ;;  %9871 = vmatmul.mubr.f32.vlgmr.msra.gmra.mxu0 %v11263_v49 }
  0x73   :  { %9875 = vmatprep.subr.mxu1 %v11151_v7  ;;  %9884 = vmatprep.subr.mxu0 %v11179_v22 }
  0x74   :  { %9876 = vmatpush3.msra.mxu1 %v11151_v7  ;;  %9885 = vmatpush3.msra.mxu0 %v11179_v22 }
  0x75   :  { %9877 = vmatprep.subr.mxu1 %v11153_v11  ;;  %9886 = vmatprep.subr.mxu0 %v11185_v24 }
  0x76   :  { %9878 = vmatpush3.msra.mxu1 %v11153_v11  ;;  %9887 = vmatpush3.msra.mxu0 %v11185_v24 }
  0x77   :  { %9879 = vmatprep.subr.mxu1 %v11155_v12  ;;  %9888 = vmatprep.subr.mxu0 %v11193_v26 }
  0x78   :  { %9880 = vmatpush3.msra.mxu1 %v11155_v12  ;;  %9881 = vmatprep.mubr.f32.mxu1 %v861_v50 }
  0x79   :  { %9889 = vmatpush3.msra.mxu0 %v11193_v26  ;;  %9882 = vmatmul.mubr.f32.vlgmr.msra.gmra.mxu1 %v871_v51 }
  0x7a   :  { %9890 = vmatprep.subr.mxu0 %v11196_v27  ;;  %9895 = vmatprep.subr.mxu1 %v11149_v6 }
  0x7b   :  { %9891 = vmatpush3.msra.mxu0 %v11196_v27  ;;  %9892 = vmatprep.mubr.f32.mxu0 %v11245_v46 }
  0x7c   :  { %9896 = vmatpush3.msra.mxu1 %v11149_v6  ;;  %9893 = vmatmul.mubr.f32.vlgmr.msra.gmra.mxu0 %v11249_v47 }
  0x7d   :  { %9897 = vmatprep.subr.mxu1 %v11151_v7  ;;  %9903 = vmatprep.mubr.f32.mxu1 %v11245_v46 }
  0x7e   :  { %9898 = vmatpush3.msra.mxu1 %v11151_v7  ;;  %v11039_v7 = vmov 1966171168  }
  0x7f   :  { %9899 = vmatprep.subr.mxu1 %v11153_v11  ;;  %v653_v8 = vunpack.c.l.s4 %v11039_v7 }
  0x80   :  { %9900 = vmatpush3.msra.mxu1 %v11153_v11 }
  0x81   :  { %9901 = vmatprep.subr.mxu1 %v11155_v12  ;;  %v654_v16 = vunpack.c.0.s8 %v653_v8 }
  0x82   :  { %9902 = vmatpush3.msra.mxu1 %v11155_v12 }
  0x83   :  { %9904 = vmatmul.mubr.f32.vlgmr.msra.gmra.mxu1 %v11249_v47  ;;  %v11348_v21 = vsub.s32 %v654_v16, %v656_v17 }
 0x10c   :  { %v9784_v56 = vpop.f32.mrf.mxu0 }
 0x10d   :  { %v207_v60 = vadd.f32 %v9784_v56, %v11344_v57 }
 0x10e   :  { %v196_v58 = vpop.f32.mrf.mxu0 }
 0x10f   :  { %v197_v61 = vadd.f32 %v11344_v57, %v196_v58 }
 0x111   :  { %v9795_v59 = vpop.f32.mrf.mxu1 }
 0x112   :  { %v304_v4 = vadd.f32 %v9795_v59, %v207_v60 }
 0x113   :  { %v297_v62 = vpop.f32.mrf.mxu1 }
 0x114   :  { %v9806_v63 = vpop.f32.mrf.mxu0  ;;  %v298_v6 = vadd.f32 %v297_v62, %v197_v61 }
 0x115   :  { %v391_v11 = vadd.f32 %v9806_v63, %v304_v4 }
 0x116   :  { %v383_v10 = vpop.f32.mrf.mxu0 }
 0x117   :  { %v384_v14 = vadd.f32 %v383_v10, %v298_v6 }
 0x11b   :  { %v9817_v5 = vpop.f32.mrf.mxu1 }
 0x11c   :  { %v476_v15 = vadd.f32 %v9817_v5, %v391_v11 }
 0x11d   :  { %v467_v12 = vpop.f32.mrf.mxu1 }
 0x11e   :  { %v9828_v13 = vpop.f32.mrf.mxu0  ;;  %v468_v18 = vadd.f32 %v467_v12, %v384_v14 }
 0x11f   :  { %v565_v20 = vadd.f32 %v9828_v13, %v476_v15 }
 0x120   :  { %v558_v19 = vpop.f32.mrf.mxu0 }
 0x121   :  { %v559_v23 = vadd.f32 %v558_v19, %v468_v18 }
 0x125   :  { %v9839_v22 = vpop.f32.mrf.mxu1 }
 0x126   :  { %v646_v24 = vadd.f32 %v9839_v22, %v565_v20 }
 0x127   :  { %v639_v25 = vpop.f32.mrf.mxu1 }
 0x128   :  { %v700_v26 = vcombine.high %v646_v24, %v646_v24  ;;  %v707_v27 = vrot.slane %v646_v24, %v11348_v21  ;;  %v640_v28 = vadd.f32 %v639_v25, %v559_v23 }
 0x129   :  { %v9850_v48 = vpop.f32.mrf.mxu0 }
 0x12a   :  { %v714_v29 = vrot.slane %v700_v26, %v11348_v21  ;;  %v715_v30 = vcombine.high %v707_v27, %v707_v27  ;;  %v723_v31 = vrot.slane %v707_v27, %v11348_v21  ;;  %9249 = vst.sshfl [vmem:[#allocation3 + $0x10] sm:$0x1 pattern:$0x73625140] %v707_v27  ;;  %v651_v32 = vcombine.high %v640_v28, %v640_v28 }
 0x12b   :  { %v658_v33 = vrot.slane %v640_v28, %v11348_v21  ;;  %v865_v54 = vpop.f32.mrf.mxu0  ;;  %v876_v56 = vadd.f32 %v9850_v48, %v11344_v57 }
 0x12c   :  { %v716_v34 = vcombine.high %v714_v29, %v714_v29  ;;  %v730_v35 = vrot.slane %v714_v29, %v11348_v21  ;;  %v737_v36 = vrot.slane %v715_v30, %v11348_v21  ;;  %v745_v37 = vcombine.high %v723_v31, %v723_v31  ;;  %9250 = vst.sshfl [vmem:[#allocation3 + $0x12] sm:$0x1 pattern:$0x73625140] %v715_v30 }
 0x12d   :  { %9251 = vst.sshfl [vmem:[#allocation3 + $0x18] sm:$0x1 pattern:$0x73625140] %v714_v29  ;;  %v665_v38 = vrot.slane %v651_v32, %v11348_v21  ;;  %v666_v39 = vcombine.high %v658_v33, %v658_v33  ;;  %v674_v40 = vrot.slane %v658_v33, %v11348_v21  ;;  %v866_v58 = vadd.f32 %v11344_v57, %v865_v54 }
 0x12e   :  { %9245 = vst.sshfl [vmem:[#allocation3] sm:$0x1 pattern:$0x73625140] %v658_v33  ;;  %v744_v41 = vrot.slane %v716_v34, %v11348_v21  ;;  %v746_v42 = vcombine.high %v730_v35, %v730_v35  ;;  %v747_v43 = vcombine.high %v737_v36, %v737_v36  ;;  %775 = vst [vmem:[#allocation3 + $0x14] sm:$0x1] %v745_v37 }
 0x12f   :  { %9252 = vst.sshfl [vmem:[#allocation3 + $0x1a] sm:$0x1 pattern:$0x73625140] %v716_v34  ;;  %v667_v44 = vcombine.high %v665_v38, %v665_v38  ;;  %v681_v45 = vrot.slane %v665_v38, %v11348_v21  ;;  %v688_v46 = vrot.slane %v666_v39, %v11348_v21  ;;  %v696_v47 = vcombine.high %v674_v40, %v674_v40  ;;  %v9861_v55 = vpop.f32.mrf.mxu1 }
 0x130   :  { %9246 = vst.sshfl [vmem:[#allocation3 + $0x2] sm:$0x1 pattern:$0x73625140] %v666_v39  ;;  %v748_v49 = vcombine.high %v744_v41, %v744_v41  ;;  %776 = vst [vmem:[#allocation3 + $0x16] sm:$0x1] %v747_v43  ;;  %v973_v61 = vadd.f32 %v9861_v55, %v876_v56 }
 0x131   :  { %9247 = vst.sshfl [vmem:[#allocation3 + $0x8] sm:$0x1 pattern:$0x73625140] %v665_v38  ;;  %779 = vst [vmem:[#allocation3 + $0x1c] sm:$0x1] %v746_v42  ;;  %v695_v50 = vrot.slane %v667_v44, %v11348_v21  ;;  %v697_v51 = vcombine.high %v681_v45, %v681_v45  ;;  %v698_v52 = vcombine.high %v688_v46, %v688_v46  ;;  %v966_v59 = vpop.f32.mrf.mxu1 }
 0x132   :  { %767 = vst [vmem:[#allocation3 + $0x4] sm:$0x1] %v696_v47  ;;  %9248 = vst.sshfl [vmem:[#allocation3 + $0xa] sm:$0x1 pattern:$0x73625140] %v667_v44  ;;  %v9872_v60 = vpop.f32.mrf.mxu0  ;;  %v967_v63 = vadd.f32 %v966_v59, %v866_v58 }
 0x133   :  { %780 = vst [vmem:[#allocation3 + $0x1e] sm:$0x1] %v748_v49  ;;  %v699_v53 = vcombine.high %v695_v50, %v695_v50  ;;  %768 = vst [vmem:[#allocation3 + $0x6] sm:$0x1] %v698_v52  ;;  %v1060_v5 = vadd.f32 %v9872_v60, %v973_v61  ;;  %v11376_v44 = vmov 0.0   ;;  %v11378_v45 = vmov 0.0  }
 0x134   :  { %771 = vst [vmem:[#allocation3 + $0xc] sm:$0x1] %v697_v51  ;;  %v1052_v4 = vpop.f32.mrf.mxu0 }
 0x135   :  { %772 = vst [vmem:[#allocation3 + $0xe] sm:$0x1] %v699_v53  ;;  %v1053_v8 = vadd.f32 %v1052_v4, %v967_v63 }
 0x139   :  { %v9883_v62 = vpop.f32.mrf.mxu1 }
 0x13a   :  { %v1145_v9 = vadd.f32 %v9883_v62, %v1060_v5 }
 0x13b   :  { %v1136_v6 = vpop.f32.mrf.mxu1 }
 0x13c   :  { %v9894_v7 = vpop.f32.mrf.mxu0  ;;  %v1137_v10 = vadd.f32 %v1136_v6, %v1053_v8 }
 0x13d   :  { %v1234_v12 = vadd.f32 %v9894_v7, %v1145_v9 }
 0x13e   :  { %v1227_v11 = vpop.f32.mrf.mxu0 }
 0x13f   :  { %v1228_v14 = vadd.f32 %v1227_v11, %v1137_v10 }
 0x143   :  { %v9905_v13 = vpop.f32.mrf.mxu1 }
 0x144   :  { %v1315_v15 = vadd.f32 %v9905_v13, %v1234_v12 }
 0x145   :  { %v1308_v16 = vpop.f32.mrf.mxu1 }
 0x146   :  { %v1369_v17 = vcombine.high %v1315_v15, %v1315_v15  ;;  %v1376_v57 = vrot.slane %v1315_v15, %v11348_v21  ;;  %v1309_v18 = vadd.f32 %v1308_v16, %v1228_v14 }
 0x148   :  { %v1383_v19 = vrot.slane %v1369_v17, %v11348_v21  ;;  %v1384_v20 = vcombine.high %v1376_v57, %v1376_v57  ;;  %v1392_v22 = vrot.slane %v1376_v57, %v11348_v21  ;;  %9257 = vst.sshfl [vmem:[#allocation3 + $0x11] sm:$0x1 pattern:$0x73625140] %v1376_v57  ;;  %v1320_v23 = vcombine.high %v1309_v18, %v1309_v18 }
 0x149   :  { %v1327_v24 = vrot.slane %v1309_v18, %v11348_v21 }
 0x14a   :  { %v1385_v25 = vcombine.high %v1383_v19, %v1383_v19  ;;  %v1399_v26 = vrot.slane %v1383_v19, %v11348_v21  ;;  %v1406_v27 = vrot.slane %v1384_v20, %v11348_v21  ;;  %v1414_v28 = vcombine.high %v1392_v22, %v1392_v22  ;;  %9258 = vst.sshfl [vmem:[#allocation3 + $0x13] sm:$0x1 pattern:$0x73625140] %v1384_v20 }
 0x14b   :  { %9259 = vst.sshfl [vmem:[#allocation3 + $0x19] sm:$0x1 pattern:$0x73625140] %v1383_v19  ;;  %v1334_v29 = vrot.slane %v1320_v23, %v11348_v21  ;;  %v1335_v30 = vcombine.high %v1327_v24, %v1327_v24  ;;  %v1343_v31 = vrot.slane %v1327_v24, %v11348_v21 }
 0x14c   :  { %9253 = vst.sshfl [vmem:[#allocation3 + $0x1] sm:$0x1 pattern:$0x73625140] %v1327_v24  ;;  %v1413_v32 = vrot.slane %v1385_v25, %v11348_v21  ;;  %v1415_v33 = vcombine.high %v1399_v26, %v1399_v26  ;;  %v1416_v34 = vcombine.high %v1406_v27, %v1406_v27  ;;  %1444 = vst [vmem:[#allocation3 + $0x15] sm:$0x1] %v1414_v28 }
 0x14d   :  { %9260 = vst.sshfl [vmem:[#allocation3 + $0x1b] sm:$0x1 pattern:$0x73625140] %v1385_v25  ;;  %v1336_v35 = vcombine.high %v1334_v29, %v1334_v29  ;;  %v1350_v36 = vrot.slane %v1334_v29, %v11348_v21  ;;  %v1357_v37 = vrot.slane %v1335_v30, %v11348_v21  ;;  %v1365_v38 = vcombine.high %v1343_v31, %v1343_v31 }
 0x14e   :  { %9254 = vst.sshfl [vmem:[#allocation3 + $0x3] sm:$0x1 pattern:$0x73625140] %v1335_v30  ;;  %v1417_v39 = vcombine.high %v1413_v32, %v1413_v32  ;;  %1445 = vst [vmem:[#allocation3 + $0x17] sm:$0x1] %v1416_v34 }
 0x14f   :  { %9255 = vst.sshfl [vmem:[#allocation3 + $0x9] sm:$0x1 pattern:$0x73625140] %v1334_v29  ;;  %1448 = vst [vmem:[#allocation3 + $0x1d] sm:$0x1] %v1415_v33  ;;  %v1364_v40 = vrot.slane %v1336_v35, %v11348_v21  ;;  %v1366_v41 = vcombine.high %v1350_v36, %v1350_v36  ;;  %v1367_v42 = vcombine.high %v1357_v37, %v1357_v37 }
 0x150   :  { %1436 = vst [vmem:[#allocation3 + $0x5] sm:$0x1] %v1365_v38  ;;  %9256 = vst.sshfl [vmem:[#allocation3 + $0xb] sm:$0x1 pattern:$0x73625140] %v1336_v35 }
 0x151   :  { %1449 = vst [vmem:[#allocation3 + $0x1f] sm:$0x1] %v1417_v39  ;;  %v1368_v43 = vcombine.high %v1364_v40, %v1364_v40  ;;  %1437 = vst [vmem:[#allocation3 + $0x7] sm:$0x1] %v1367_v42 }
 0x152   :  { %1440 = vst [vmem:[#allocation3 + $0xd] sm:$0x1] %v1366_v41 }
 0x153   :  { %1441 = vst [vmem:[#allocation3 + $0xf] sm:$0x1] %v1368_v43 }
 0x154 LB: > { %v1495_v46 = vand.u32 4294901760, %v11147_v3  ;;  %v11391_v47 = vand.u32 4294901760, %v11145_v2  ;;  %v11040_v48 = vmov 0.0   ;;  %v11395_v49 = vand.u32 4294901760, %v11143_v1  ;;  %s11041_s12 = smov 32   ;;  %s9261_s13 = sshll.u32 %s10994_s3, 1  ;;  %s10994_s3 = sphi %s11380_s3, %s1459_s3   ;;  %v10990_v45 = vphi %v11378_v45, %v1979_v45   ;;  %v10986_v44 = vphi %v11376_v44, %v1973_v44  }
 0x155   : > { %9917 = vmatprep.subr.mxu1 %v11040_v48  ;;  %v11398_v50 = vand.u32 4294901760, %v11141_v0  ;;  %9906 = vmatprep.subr.mxu0 %v11040_v48  ;;  %vm11042_vm1 = vmmov 0   ;;  %s1463_s16 = scalar_lea.vmem [#allocation3], %s9261_s13  ;;  %s11043_s17 = smov 64   ;;  %vm1985_vm2 = vcmask 254976  }
 0x156   : > { %1466 = vrot.lane.b32.xlu0 %v10990_v45, %s11041_s12  ;;  %v11403_v51 = vsub.f32 %v11147_v3, %v1495_v46  ;;  %v11407_v52 = vsub.f32 %v11145_v2, %v11391_v47  ;;  %9925 = vmatprep.mubr.msk.f32.mxu1 %vm11042_vm1, %v11040_v48  ;;  %v11413_v53 = vsub.f32 %v11143_v1, %v11395_v49  ;;  %s1984_s18 = scalar_lea.vmem [#allocation2], %s9261_s13  ;;  %s1459_s3 = sadd.s32 1, %s10994_s3  }
 0x157   : > { %v11417_v54 = vsub.f32 %v11141_v0, %v11398_v50  ;;  %9907 = vmatpush3.msra.mxu0 %v1495_v46  ;;  %9914 = vmatprep.mubr.msk.f32.mxu0 %vm11042_vm1, %v11040_v48  ;;  %p1456_p11 = scmp.ge.s32.totalorder %s1459_s3, 16  }
 0x158   : > { %v1576_v55 = vand.u32 4294901760, %v11403_v51  ;;  %v1583_v56 = vand.u32 4294901760, %v11407_v52  ;;  %9908 = vmatprep.subr.mxu0 %v11040_v48  ;;  %v1590_v58 = vand.u32 4294901760, %v11413_v53  ;;  %vm2031_vm3 = vcmask (%p1456_p11), 1041409   ;;  %s11760_s21 = smov (%p1456_p11), 0  }
 0x159   : > { %v1597_v59 = vand.u32 4294901760, %v11417_v54  ;;  %9909 = vmatpush3.msra.mxu0 %v11391_v47  ;;  %vm2034_vm4 = vcmask (%p1456_p11), 1042434   ;;  %vm2037_vm5 = vcmask (%p1456_p11), 1043459   ;;  %vm2040_vm6 = vcmask (%p1456_p11), 1044484  }
 0x15a   : > { %v1577_v60 = vsub.f32 %v11403_v51, %v1576_v55  ;;  %v1584_v61 = vsub.f32 %v11407_v52, %v1583_v56  ;;  %9910 = vmatprep.subr.mxu0 %v11040_v48  ;;  %v1591_v62 = vsub.f32 %v11413_v53, %v1590_v58  ;;  %v1464_v30 = vld [vmem:[%s1463_s16] sm:$0x3]  ;;  %vm2043_vm7 = vcmask (%p1456_p11), 1045509  }
 0x15b   : > { %9911 = vmatpush3.msra.mxu0 %v11395_v49  ;;  %v1598_v5 = vsub.f32 %v11417_v54, %v1597_v59  ;;  %vm2046_vm8 = vcmask (%p1456_p11), 1046534   ;;  %vm2049_vm9 = vcmask (%p1456_p11), 1047559  }
 0x15c   : > { %v1578_v63 = vand.u32 4294901760, %v1577_v60  ;;  %v1585_v4 = vand.u32 4294901760, %v1584_v61  ;;  %9912 = vmatprep.subr.mxu0 %v11040_v48  ;;  %v1592_v6 = vand.u32 4294901760, %v1591_v62 }
 0x15d   : > { %9913 = vmatpush3.msra.mxu0 %v11398_v50  ;;  %v1599_v7 = vand.u32 4294901760, %v1598_v5 }
 0x15e   : > { %9918 = vmatpush3.msra.mxu1 %v1578_v63  ;;  %9928 = vmatprep.subr.mxu0 %v11040_v48 }
 0x15f   : > { %9919 = vmatprep.subr.mxu1 %v11040_v48 }
 0x160   : > { %9920 = vmatpush3.msra.mxu1 %v1585_v4 }
 0x161   : > { %9921 = vmatprep.subr.mxu1 %v11040_v48 }
 0x162   : > { %9922 = vmatpush3.msra.mxu1 %v1592_v6 }
 0x163   : > { %9923 = vmatprep.subr.mxu1 %v11040_v48 }
 0x164   : > { %9924 = vmatpush3.msra.mxu1 %v1599_v7 }
 0x165   : > { %9939 = vmatprep.subr.mxu1 %v11040_v48 }
 0x1c8   : > { %v1467_v8 = vpop.permute.xlu0 %1466 }
 0x1c9   : > { %v1468_v9 = vsel %vm114_vm0, %v1467_v8, 0 }
 0x1ca   : > { %v1539_v10 = vand.u32 4294901760, %v1468_v9 }
 0x1cc   : > { %v1540_v11 = vsub.f32 %v1468_v9, %v1539_v10  ;;  %9926 = vmatmul.mubr.f32.vlgmr.msra.gmra.mxu1 %v1539_v10 }
 0x1cd   : > { %9940 = vmatpush3.msra.mxu1 %v1495_v46  ;;  %9947 = vmatprep.mubr.msk.f32.mxu1 %vm11042_vm1, %v11040_v48 }
 0x1ce   : > { %v1541_v12 = vand.u32 4294901760, %v1540_v11  ;;  %9941 = vmatprep.subr.mxu1 %v11040_v48 }
 0x1cf   : > { %9942 = vmatpush3.msra.mxu1 %v11391_v47 }
 0x1d0   : > { %9943 = vmatprep.subr.mxu1 %v11040_v48  ;;  %v1542_v13 = vsub.f32 %v1540_v11, %v1541_v12 }
 0x1d1   : > { %9944 = vmatpush3.msra.mxu1 %v11395_v49 }
 0x1d2   : > { %9945 = vmatprep.subr.mxu1 %v11040_v48  ;;  %v1543_v14 = vand.u32 4294901760, %v1542_v13 }
 0x1d3   : > { %9946 = vmatpush3.msra.mxu1 %v11398_v50 }
 0x1d4   : > { %9948 = vmatmul.mubr.f32.vlgmr.msra.gmra.mxu1 %v1541_v12  ;;  %9961 = vmatprep.subr.mxu1 %v11040_v48 }
 0x1d5   : > { %9915 = vmatmul.mubr.f32.vlgmr.msra.gmra.mxu0 %v1543_v14  ;;  %9962 = vmatpush3.msra.mxu1 %v1495_v46 }
 0x1d6   : > { %9929 = vmatpush3.msra.mxu0 %v11403_v51  ;;  %9963 = vmatprep.subr.mxu1 %v11040_v48 }
 0x1d7   : > { %9930 = vmatprep.subr.mxu0 %v11040_v48  ;;  %9964 = vmatpush3.msra.mxu1 %v11391_v47 }
 0x1d8   : > { %9931 = vmatpush3.msra.mxu0 %v11407_v52  ;;  %9965 = vmatprep.subr.mxu1 %v11040_v48 }
 0x1d9   : > { %9932 = vmatprep.subr.mxu0 %v11040_v48  ;;  %9966 = vmatpush3.msra.mxu1 %v11395_v49  ;;  %v1989_v49 = vld [vmem:[#allocation10 + $0x10] sm:$0xff] (%p1456_p11) }
 0x1da   : > { %9933 = vmatpush3.msra.mxu0 %v11413_v53  ;;  %9967 = vmatprep.subr.mxu1 %v11040_v48  ;;  %v11507_v52 = vand.u32 (%p1456_p11), 4294901760, %v1989_v49 }
 0x1db   : > { %9934 = vmatprep.subr.mxu0 %v11040_v48  ;;  %9936 = vmatprep.mubr.msk.f32.mxu0 %vm11042_vm1, %v11040_v48 }
 0x1dc   : > { %9935 = vmatpush3.msra.mxu0 %v11417_v54  ;;  %9968 = vmatpush3.msra.mxu1 %v11398_v50  ;;  %v1988_v50 = vld [vmem:[#allocation10 + $0x8] sm:$0xff] (%p1456_p11)  ;;  %v1987_v54 = vld [vmem:[#allocation10] sm:$0xff] (%p1456_p11)  ;;  %v11518_v1 = vsub.f32 (%p1456_p11), %v1989_v49, %v11507_v52 }
 0x1dd   : > { %9969 = vmatprep.mubr.msk.f32.mxu1 %vm11042_vm1, %v11040_v48  ;;  %9937 = vmatmul.mubr.f32.vlgmr.msra.gmra.mxu0 %v1540_v11  ;;  %v11509_v53 = vand.u32 (%p1456_p11), 4294901760, %v1988_v50 }
 0x1de   : > { %9950 = vmatprep.subr.mxu0 %v11040_v48  ;;  %9970 = vmatmul.mubr.f32.vlgmr.msra.gmra.mxu1 %v1539_v10  ;;  %v11532_v5 = vand.u32 (%p1456_p11), 4294901760, %v11518_v1 }
 0x1df   : > { %9951 = vmatpush3.msra.mxu0 %v1576_v55  ;;  %9958 = vmatprep.mubr.msk.f32.mxu0 %vm11042_vm1, %v11040_v48  ;;  %v11521_v2 = vsub.f32 (%p1456_p11), %v1988_v50, %v11509_v53 }
 0x1e0   : > { %9952 = vmatprep.subr.mxu0 %v11040_v48 }
 0x1e1   : > { %9953 = vmatpush3.msra.mxu0 %v1583_v56  ;;  %v11511_v56 = vand.u32 (%p1456_p11), 4294901760, %v1987_v54  ;;  %v11535_v6 = vand.u32 (%p1456_p11), 4294901760, %v11521_v2 }
 0x1e2   : > { %9954 = vmatprep.subr.mxu0 %v11040_v48 }
 0x1e3   : > { %9955 = vmatpush3.msra.mxu0 %v1590_v58  ;;  %v11525_v61 = vsub.f32 (%p1456_p11), %v1987_v54, %v11511_v56 }
 0x1e4   : > { %9956 = vmatprep.subr.mxu0 %v11040_v48  ;;  %v1990_v48 = vld [vmem:[#allocation10 + $0x18] sm:$0xff] (%p1456_p11) }
 0x1e5   : > { %9957 = vmatpush3.msra.mxu0 %v1597_v59  ;;  %v11505_v51 = vand.u32 (%p1456_p11), 4294901760, %v1990_v48  ;;  %v11539_v9 = vand.u32 (%p1456_p11), 4294901760, %v11525_v61 }
 0x1e6   : > { %9959 = vmatmul.mubr.f32.vlgmr.msra.gmra.mxu0 %v1539_v10 }
 0x1e7   :  { %9972 = vmatprep.subr.mxu0 (%p1456_p11), %v11505_v51  ;;  %v11515_v0 = vsub.f32 (%p1456_p11), %v1990_v48, %v11505_v51 }
 0x1e8   :  { %9973 = vmatpush3.msra.mxu0 (%p1456_p11), %v11505_v51 }
 0x1e9   :  { %v11528_v4 = vand.u32 (%p1456_p11), 4294901760, %v11515_v0  ;;  %9974 = vmatprep.subr.mxu0 (%p1456_p11), %v11507_v52 }
 0x1ea   :  { %9975 = vmatpush3.msra.mxu0 (%p1456_p11), %v11507_v52 }
 0x1eb   :  { %v2186_v14 = vsub.f32 (%p1456_p11), %v11515_v0, %v11528_v4  ;;  %9976 = vmatprep.subr.mxu0 (%p1456_p11), %v11509_v53 }
 0x1ec   :  { %9977 = vmatpush3.msra.mxu0 (%p1456_p11), %v11509_v53 }
 0x1ed   :  { %9978 = vmatprep.subr.mxu0 (%p1456_p11), %v11511_v56 }
 0x1ee   :  { %9979 = vmatpush3.msra.mxu0 (%p1456_p11), %v11511_v56 }
 0x1ef   :  { %9994 = vmatprep.subr.mxu0 (%p1456_p11), %v11515_v0 }
 0x28c   : > { %v1636_v15 = vpop.f32.mrf.mxu1 }
 0x28e   : > { %v9927_v16 = vpop.f32.mrf.mxu1 }
 0x28f   :  { %v2200_v16 = vsub.f32 (%p1456_p11), %v11521_v2, %v11535_v6 }
 0x294   : > { %v1793_v17 = vpop.f32.mrf.mxu1 }
 0x295   : > { %v1545_v57 = vpop.f32.mrf.mxu0 }
 0x296   : > { %v9949_v18 = vpop.f32.mrf.mxu1  ;;  %v1637_v23 = vadd.f32 %v1636_v15, %v1545_v57  ;;  %v2193_v15 = vsub.f32 (%p1456_p11), %v11518_v1, %v11532_v5 }
 0x297   : > { %v9916_v19 = vpop.f32.mrf.mxu0 }
 0x29d   : > { %v1716_v20 = vpop.f32.mrf.mxu0 }
 0x29e   : > { %v1951_v22 = vpop.f32.mrf.mxu1  ;;  %v1717_v26 = vadd.f32 %v1716_v20, %v1637_v23  ;;  %v2207_v20 = vsub.f32 (%p1456_p11), %v11525_v61, %v11539_v9 }
 0x29f   : > { %v9938_v24 = vpop.f32.mrf.mxu0 }
 0x2a0   : > { %v9971_v25 = vpop.f32.mrf.mxu1  ;;  %v1794_v27 = vadd.f32 %v1793_v17, %v1717_v26 }
 0x2a6   : > { %v1876_v28 = vpop.f32.mrf.mxu0 }
 0x2a7   : > { %v1877_v29 = vadd.f32 %v1876_v28, %v1794_v27  ;;  %v11554_v27 = vand.u32 (%p1456_p11), 4294901760, %v2186_v14  ;;  %v11556_v28 = vand.u32 (%p1456_p11), 4294901760, %v2193_v15 }
 0x2a8   : > { %v9960_v31 = vpop.f32.mrf.mxu0 }
 0x2a9   : > { %v1952_v32 = vadd.f32 %v1951_v22, %v1877_v29  ;;  %v11558_v29 = vand.u32 (%p1456_p11), 4294901760, %v2200_v16  ;;  %9983 = vmatprep.subr.mxu1 (%p1456_p11), %v11554_v27 }
 0x2aa   :  { %9984 = vmatpush3.msra.mxu1 (%p1456_p11), %v11554_v27 }
 0x2ab   : > { %v1955_v33 = vadd.f32 %v1952_v32, %v1464_v30  ;;  %v11562_v32 = vand.u32 (%p1456_p11), 4294901760, %v2207_v20  ;;  %9985 = vmatprep.subr.mxu1 (%p1456_p11), %v11556_v28 }
 0x2ac   :  { %9986 = vmatpush3.msra.mxu1 (%p1456_p11), %v11556_v28 }
 0x2ad   : > { %10775 = vtanh.f32 %v1955_v33  ;;  %v1956_v35 = vsub.f32 0.0, %v1955_v33  ;;  %9987 = vmatprep.subr.mxu1 (%p1456_p11), %v11558_v29 }
 0x2ae   :  { %9988 = vmatpush3.msra.mxu1 (%p1456_p11), %v11558_v29 }
 0x2af   : > { %v1957_v36 = vmul.f32 1.442695, %v1956_v35  ;;  %9989 = vmatprep.subr.mxu1 (%p1456_p11), %v11562_v32 }
 0x2b0   :  { %9990 = vmatpush3.msra.mxu1 (%p1456_p11), %v11562_v32 }
 0x2b1   : > { %10777 = vpow2.f32 %v1957_v36  ;;  %10005 = vmatprep.subr.mxu1 (%p1456_p11), %v11505_v51 }
 0x2ba   : > { %v10776_v34 = vpop.eup %10775 }
 0x2bb   : > { %1965 = vrot.lane.b32.xlu0 %v10776_v34, %s11043_s17 }
 0x2be   : > { %v10778_v37 = vpop.eup %10777 }
 0x2bf   : > { %v1959_v38 = vadd.f32 1.0, %v10778_v37 }
 0x2c1   : > { %10779 = vrcp.f32 %v1959_v38 }
 0x2ce   : > { %v10780_v39 = vpop.eup %10779 }
 0x2cf   : > { %v1963_v42 = vmul.f32 %v10986_v44, %v10780_v39 }
 0x32d   : > { %v1966_v40 = vpop.permute.xlu0 %1965 }
 0x32e   : > { %v1968_v41 = vmul.f32 %v10780_v39, %v1966_v40 }
 0x330   : > { %1970 = vrot.lane.b32.xlu1 %v1968_v41, %s11041_s12 }
 0x3a2   : > { %v1971_v43 = vpop.permute.xlu1 %1970 }
 0x3a3   : > { %v1973_v44 = vadd.f32 %v1971_v43, %v1963_v42  }
 0x3a5   : > { %10781 = vtanh.f32 %v1973_v44 }
 0x3b2   : > { %v10782_v45 = vpop.eup %10781 }
 0x3b3   : > { %1976 = vrot.lane.b32.xlu1 %v10782_v45, %s11043_s17 }
 0x425   : > { %v1977_v46 = vpop.permute.xlu1 %1976 }
 0x426   : > { %v1979_v45 = vmul.f32 %v10780_v39, %v1977_v46  }
 0x428   : > { %1981 = vrot.lane.b32.xlu0 %v1979_v45, %s11041_s12 }
 0x497   :  { %1458 = sbr.rel (!%p1456_p11) target bundleno = 340 (0x154), region = 119 }
 0x49a   : > { %v1982_v47 = vpop.permute.xlu0 %1981 }
 0x49b   : > { %1986 = vst.msk [vmem:[%s1984_s18] sm:$0x3] %vm1985_vm2, %v1982_v47 }
 0x4a2   :  { %v1992_v55 = vld [vmem:[#allocation2] sm:$0x1]  ;;  %v1993_v58 = vld [vmem:[#allocation2 + $0x2] sm:$0x1]  ;;  %v1994_v59 = vld [vmem:[#allocation2 + $0x4] sm:$0x1] }
 0x4a3   :  { %v1995_v3 = vld [vmem:[#allocation2 + $0x6] sm:$0x1]  ;;  %v1996_v44 = vld [vmem:[#allocation2 + $0x8] sm:$0x1]  ;;  %v1997_v60 = vld [vmem:[#allocation2 + $0xa] sm:$0x1] }
 0x4a4   :  { %v2030_v62 = vrot.slane %v1993_v58, 7  ;;  %v2033_v63 = vrot.slane %v1994_v59, 6  ;;  %v1998_v7 = vld [vmem:[#allocation2 + $0xc] sm:$0x1]  ;;  %v2036_v8 = vrot.slane %v1995_v3, 5  ;;  %v2039_v12 = vrot.slane %v1996_v44, 4 }
 0x4a5   :  { %v1999_v10 = vld [vmem:[#allocation2 + $0xe] sm:$0x1]  ;;  %v2042_v13 = vrot.slane %v1997_v60, 3  ;;  %v2001_v57 = vld [vmem:[#allocation2 + $0x12] sm:$0x1]  ;;  %v2045_v23 = vrot.slane %v1998_v7, 2 }
 0x4a6   :  { %v2032_v11 = vsel %vm2031_vm3, %v2030_v62, %v1992_v55  ;;  %v2002_v18 = vld [vmem:[#allocation2 + $0x14] sm:$0x1]  ;;  %v2003_v19 = vld [vmem:[#allocation2 + $0x16] sm:$0x1]  ;;  %v2000_v24 = vld [vmem:[#allocation2 + $0x10] sm:$0x1] }
 0x4a7   :  { %v2035_v17 = vsel %vm2034_vm4, %v2033_v63, %v2032_v11  ;;  %v2004_v25 = vld [vmem:[#allocation2 + $0x18] sm:$0x1]  ;;  %v2005_v26 = vld [vmem:[#allocation2 + $0x1a] sm:$0x1]  ;;  %v2006_v31 = vld [vmem:[#allocation2 + $0x1c] sm:$0x1] }
 0x4a8   :  { %v2038_v22 = vsel %vm2037_vm5, %v2036_v8, %v2035_v17  ;;  %v2048_v34 = vrot.slane %v1999_v10, 1  ;;  %v2007_v35 = vld [vmem:[#allocation2 + $0x1e] sm:$0x1]  ;;  %v2051_v37 = vrot.slane %v2001_v57, 7  ;;  %v2053_v38 = vrot.slane %v2002_v18, 6 }
 0x4a9   :  { %v2041_v30 = vsel %vm2040_vm6, %v2039_v12, %v2038_v22  ;;  %v2730_v39 = vld [vmem:[#allocation2 + $0x3] sm:$0x1]  ;;  %v2055_v41 = vrot.slane %v2003_v19, 5  ;;  %v2057_v42 = vrot.slane %v2004_v25, 4  ;;  %v2729_v43 = vld [vmem:[#allocation2 + $0x1] sm:$0x1] }
 0x4aa   :  { %v2044_v33 = vsel %vm2043_vm7, %v2042_v13, %v2041_v30  ;;  %v2731_v45 = vld [vmem:[#allocation2 + $0x5] sm:$0x1]  ;;  %v2052_v47 = vsel %vm2031_vm3, %v2051_v37, %v2000_v24  ;;  %v2059_v48 = vrot.slane %v2005_v26, 3  ;;  %v2061_v49 = vrot.slane %v2006_v31, 2  ;;  %v2732_v50 = vld [vmem:[#allocation2 + $0x7] sm:$0x1] }
 0x4ab   :  { %v2047_v36 = vsel %vm2046_vm8, %v2045_v23, %v2044_v33  ;;  %v2054_v55 = vsel %vm2034_vm4, %v2053_v38, %v2052_v47  ;;  %v2733_v58 = vld [vmem:[#allocation2 + $0x9] sm:$0x1]  ;;  %v2734_v59 = vld [vmem:[#allocation2 + $0xb] sm:$0x1]  ;;  %v2761_v3 = vrot.slane %v2730_v39, 7  ;;  %v2063_v60 = vrot.slane %v2007_v35, 1 }
 0x4ac   :  { %v2050_v40 = vsel %vm2049_vm9, %v2048_v34, %v2047_v36  ;;  %v2056_v44 = vsel %vm2037_vm5, %v2055_v41, %v2054_v55  ;;  %v2763_v62 = vrot.slane %v2731_v45, 6  ;;  %v2765_v63 = vrot.slane %v2732_v50, 5  ;;  %v2735_v10 = vld [vmem:[#allocation2 + $0xd] sm:$0x1]  ;;  %v2738_v13 = vld [vmem:[#allocation2 + $0x13] sm:$0x1] }
 0x4ad   :  { %v2065_v46 = vsel %vm114_vm0, %v2050_v40, 0  ;;  %v2058_v8 = vsel %vm2040_vm6, %v2057_v42, %v2056_v44  ;;  %v2762_v11 = vsel %vm2031_vm3, %v2761_v3, %v2729_v43  ;;  %v2767_v12 = vrot.slane %v2733_v58, 4  ;;  %v2739_v17 = vld [vmem:[#allocation2 + $0x15] sm:$0x1]  ;;  %v2740_v57 = vld [vmem:[#allocation2 + $0x17] sm:$0x1] }
 0x4ae   :  { %v11575_v54 = vand.u32 4294901760, %v2065_v46  ;;  %v2060_v14 = vsel %vm2043_vm7, %v2059_v48, %v2058_v8  ;;  %v2764_v15 = vsel %vm2034_vm4, %v2763_v62, %v2762_v11  ;;  %v2769_v16 = vrot.slane %v2734_v59, 3  ;;  %v2737_v22 = vld [vmem:[#allocation2 + $0x11] sm:$0x1]  ;;  %v2741_v23 = vld [vmem:[#allocation2 + $0x19] sm:$0x1] }
 0x4af   :  { %v2062_v19 = vsel %vm2046_vm8, %v2061_v49, %v2060_v14  ;;  %v2766_v20 = vsel %vm2037_vm5, %v2765_v63, %v2764_v15  ;;  %v2736_v25 = vld [vmem:[#allocation2 + $0xf] sm:$0x1]  ;;  %v2742_v30 = vld [vmem:[#allocation2 + $0x1b] sm:$0x1]  ;;  %v2775_v31 = vrot.slane %v2738_v13, 7  ;;  %v2777_v33 = vrot.slane %v2739_v17, 6 }
 0x4b0   :  { %v11582_v7 = vsub.f32 %v2065_v46, %v11575_v54  ;;  %9991 = vmatprep.mubr.f32.mxu1 %v11575_v54  ;;  %v2064_v24 = vsel %vm2049_vm9, %v2063_v60, %v2062_v19  ;;  %v2768_v26 = vsel %vm2040_vm6, %v2767_v12, %v2766_v20  ;;  %v2771_v36 = vrot.slane %v2735_v10, 2  ;;  %v2743_v37 = vld [vmem:[#allocation2 + $0x1d] sm:$0x1]  ;;  %v2744_v45 = vld [vmem:[#allocation2 + $0x1f] sm:$0x1] }
 0x4b1   :  { %v2067_v35 = vsel %vm114_vm0, %v2064_v24, 0  ;;  %v2779_v38 = vrot.slane %v2740_v57, 5  ;;  %v2770_v40 = vsel %vm2043_vm7, %v2769_v16, %v2768_v26  ;;  %v2776_v41 = vsel %vm2031_vm3, %v2775_v31, %v2737_v22 }
 0x4b2   :  { %v2140_v18 = vand.u32 4294901760, %v11582_v7  ;;  %v11599_v39 = vand.u32 4294901760, %v2067_v35  ;;  %v2781_v42 = vrot.slane %v2741_v23, 4  ;;  %v2778_v46 = vsel %vm2034_vm4, %v2777_v33, %v2776_v41 }
 0x4b3   :  { %v2783_v47 = vrot.slane %v2742_v30, 3  ;;  %v2773_v49 = vrot.slane %v2736_v25, 1  ;;  %v2780_v50 = vsel %vm2037_vm5, %v2779_v38, %v2778_v46  ;;  %v2785_v55 = vrot.slane %v2743_v37, 2 }
 0x4b4   :  { %v2141_v34 = vsub.f32 %v11582_v7, %v2140_v18  ;;  %v2149_v48 = vsub.f32 %v2067_v35, %v11599_v39  ;;  %9992 = vmatmul.mubr.f32.vlgmr.msra.gmra.mxu1 %v11599_v39  ;;  %v2772_v58 = vsel %vm2046_vm8, %v2771_v36, %v2770_v40  ;;  %v2782_v59 = vsel %vm2040_vm6, %v2781_v42, %v2780_v50 }
 0x4b5   :  { %10006 = vmatpush3.msra.mxu1 %v11505_v51  ;;  %10013 = vmatprep.mubr.f32.mxu1 %v2140_v18  ;;  %v2784_v44 = vsel %vm2043_vm7, %v2783_v47, %v2782_v59  ;;  %v2787_v60 = vrot.slane %v2744_v45, 1  ;;  %v2774_v8 = vsel %vm2049_vm9, %v2773_v49, %v2772_v58 }
 0x4b6   :  { %v2142_v43 = vand.u32 4294901760, %v2141_v34  ;;  %v2150_v3 = vand.u32 4294901760, %v2149_v48  ;;  %10007 = vmatprep.subr.mxu1 %v11507_v52  ;;  %v2786_v62 = vsel %vm2046_vm8, %v2785_v55, %v2784_v44  ;;  %v2789_v12 = vsel %vm114_vm0, %v2774_v8, 0 }
 0x4b7   :  { %10008 = vmatpush3.msra.mxu1 %v11507_v52  ;;  %v2788_v11 = vsel %vm2049_vm9, %v2787_v60, %v2786_v62  ;;  %v11626_v14 = vand.u32 4294901760, %v2789_v12 }
 0x4b8   :  { %9980 = vmatprep.mubr.f32.mxu0 %v2142_v43  ;;  %v2151_v63 = vsub.f32 %v2149_v48, %v2150_v3  ;;  %10009 = vmatprep.subr.mxu1 %v11509_v53  ;;  %v2791_v13 = vsel %vm114_vm0, %v2788_v11, 0 }
 0x4b9   :  { %10010 = vmatpush3.msra.mxu1 %v11509_v53  ;;  %v11632_v15 = vand.u32 4294901760, %v2791_v13 }
 0x4ba   :  { %v2152_v10 = vand.u32 4294901760, %v2151_v63  ;;  %10011 = vmatprep.subr.mxu1 %v11511_v56 }
 0x4bb   :  { %10012 = vmatpush3.msra.mxu1 %v11511_v56  ;;  %v2873_v16 = vsub.f32 %v2791_v13, %v11632_v15 }
 0x4bc   :  { %9981 = vmatmul.mubr.f32.vlgmr.msra.gmra.mxu0 %v2152_v10  ;;  %10027 = vmatprep.subr.mxu1 %v11505_v51 }
 0x4bd   :  { %9995 = vmatpush3.msra.mxu0 %v11515_v0  ;;  %10002 = vmatprep.mubr.f32.mxu0 %v11582_v7  ;;  %v11639_v7 = vsub.f32 %v2789_v12, %v11626_v14  ;;  %v2874_v57 = vand.u32 4294901760, %v2873_v16 }
 0x4be   :  { %9996 = vmatprep.subr.mxu0 %v11518_v1  ;;  %10014 = vmatmul.mubr.f32.vlgmr.msra.gmra.mxu1 %v2150_v3 }
 0x4bf   :  { %9997 = vmatpush3.msra.mxu0 %v11518_v1  ;;  %10028 = vmatpush3.msra.mxu1 %v11505_v51  ;;  %v2864_v17 = vand.u32 4294901760, %v11639_v7 }
 0x4c0   :  { %9998 = vmatprep.subr.mxu0 %v11521_v2  ;;  %10029 = vmatprep.subr.mxu1 %v11507_v52 }
 0x4c1   :  { %9999 = vmatpush3.msra.mxu0 %v11521_v2  ;;  %10030 = vmatpush3.msra.mxu1 %v11507_v52  ;;  %v2865_v18 = vsub.f32 %v11639_v7, %v2864_v17 }
 0x4c2   :  { %10000 = vmatprep.subr.mxu0 %v11525_v61  ;;  %10031 = vmatprep.subr.mxu1 %v11509_v53 }
 0x4c3   :  { %10001 = vmatpush3.msra.mxu0 %v11525_v61  ;;  %10032 = vmatpush3.msra.mxu1 %v11509_v53  ;;  %v2866_v19 = vand.u32 4294901760, %v2865_v18 }
 0x4c4   :  { %10003 = vmatmul.mubr.f32.vlgmr.msra.gmra.mxu0 %v2149_v48  ;;  %10016 = vmatprep.subr.mxu0 %v11528_v4 }
 0x4c5   :  { %10017 = vmatpush3.msra.mxu0 %v11528_v4  ;;  %10033 = vmatprep.subr.mxu1 %v11511_v56 }
 0x4c6   :  { %10018 = vmatprep.subr.mxu0 %v11532_v5  ;;  %10024 = vmatprep.mubr.f32.mxu0 %v11575_v54 }
 0x4c7   :  { %10019 = vmatpush3.msra.mxu0 %v11532_v5  ;;  %10034 = vmatpush3.msra.mxu1 %v11511_v56 }
 0x4c8   :  { %10020 = vmatprep.subr.mxu0 %v11535_v6  ;;  %10035 = vmatprep.mubr.f32.mxu1 %v11575_v54  ;;  %v2875_v54 = vsub.f32 %v2873_v16, %v2874_v57 }
 0x4c9   :  { %10021 = vmatpush3.msra.mxu0 %v11535_v6  ;;  %10049 = vmatprep.subr.mxu1 %v11554_v27 }
 0x4ca   :  { %10022 = vmatprep.subr.mxu0 %v11539_v9  ;;  %10036 = vmatmul.mubr.f32.vlgmr.msra.gmra.mxu1 %v11599_v39 }
 0x4cb   :  { %10023 = vmatpush3.msra.mxu0 %v11539_v9  ;;  %10050 = vmatpush3.msra.mxu1 %v11554_v27  ;;  %v2876_v27 = vand.u32 4294901760, %v2875_v54 }
 0x4cc   :  { %10025 = vmatmul.mubr.f32.vlgmr.msra.gmra.mxu0 %v11599_v39  ;;  %10038 = vmatprep.subr.mxu0 %v11505_v51 }
 0x4cd   :  { %10039 = vmatpush3.msra.mxu0 %v11505_v51  ;;  %10051 = vmatprep.subr.mxu1 %v11556_v28 }
 0x4ce   :  { %10040 = vmatprep.subr.mxu0 %v11507_v52  ;;  %10052 = vmatpush3.msra.mxu1 %v11556_v28 }
 0x4cf   :  { %10041 = vmatpush3.msra.mxu0 %v11507_v52  ;;  %10053 = vmatprep.subr.mxu1 %v11558_v29 }
 0x4d0   :  { %10042 = vmatprep.subr.mxu0 %v11509_v53  ;;  %10054 = vmatpush3.msra.mxu1 %v11558_v29 }
 0x4d1   :  { %10043 = vmatpush3.msra.mxu0 %v11509_v53  ;;  %10055 = vmatprep.subr.mxu1 %v11562_v32 }
 0x4d2   :  { %10044 = vmatprep.subr.mxu0 %v11511_v56  ;;  %10046 = vmatprep.mubr.f32.mxu0 %v2866_v19 }
 0x4d3   :  { %10045 = vmatpush3.msra.mxu0 %v11511_v56  ;;  %10056 = vmatpush3.msra.mxu1 %v11562_v32 }
 0x4d4   :  { %10047 = vmatmul.mubr.f32.vlgmr.msra.gmra.mxu0 %v2876_v27  ;;  %10057 = vmatprep.mubr.f32.mxu1 %v11626_v14 }
 0x4d5   :  { %10060 = vmatprep.subr.mxu0 %v11515_v0  ;;  %10071 = vmatprep.subr.mxu1 %v11505_v51 }
 0x4d6   :  { %10058 = vmatmul.mubr.f32.vlgmr.msra.gmra.mxu1 %v11632_v15  ;;  %10061 = vmatpush3.msra.mxu0 %v11515_v0  ;;  %v11721_v0 = vld [vmem:[#allocation12 + $0x18] sm:$0xff] }
 0x4d7   :  { %10072 = vmatpush3.msra.mxu1 %v11505_v51  ;;  %10062 = vmatprep.subr.mxu0 %v11518_v1 }
 0x4d8   :  { %10073 = vmatprep.subr.mxu1 %v11507_v52  ;;  %10063 = vmatpush3.msra.mxu0 %v11518_v1 }
 0x4d9   :  { %10074 = vmatpush3.msra.mxu1 %v11507_v52  ;;  %10064 = vmatprep.subr.mxu0 %v11521_v2 }
 0x4da   :  { %10075 = vmatprep.subr.mxu1 %v11509_v53  ;;  %10065 = vmatpush3.msra.mxu0 %v11521_v2  ;;  %v11726_v2 = vld [vmem:[%s12768_s6] ss:$0 sm:$0xff] }
 0x4db   :  { %10076 = vmatpush3.msra.mxu1 %v11509_v53  ;;  %10066 = vmatprep.subr.mxu0 %v11525_v61 }
 0x4dc   :  { %10077 = vmatprep.subr.mxu1 %v11511_v56  ;;  %10067 = vmatpush3.msra.mxu0 %v11525_v61 }
 0x4dd   :  { %10068 = vmatprep.mubr.f32.mxu0 %v11639_v7  ;;  %10078 = vmatpush3.msra.mxu1 %v11511_v56 }
 0x4de   :  { %10069 = vmatmul.mubr.f32.vlgmr.msra.gmra.mxu0 %v2873_v16  ;;  %10079 = vmatprep.mubr.f32.mxu1 %v2864_v17 }
 0x4df   :  { %10082 = vmatprep.subr.mxu0 %v11528_v4  ;;  %10093 = vmatprep.subr.mxu1 %v11505_v51 }
 0x4e0   :  { %10080 = vmatmul.mubr.f32.vlgmr.msra.gmra.mxu1 %v2874_v57  ;;  %10083 = vmatpush3.msra.mxu0 %v11528_v4 }
 0x4e1   :  { %10094 = vmatpush3.msra.mxu1 %v11505_v51  ;;  %10084 = vmatprep.subr.mxu0 %v11532_v5  ;;  %v11715_v51 = vld [vmem:[#allocation12] sm:$0xff] }
 0x4e2   :  { %10095 = vmatprep.subr.mxu1 %v11507_v52  ;;  %10085 = vmatpush3.msra.mxu0 %v11532_v5 }
 0x4e3   :  { %10096 = vmatpush3.msra.mxu1 %v11507_v52  ;;  %10086 = vmatprep.subr.mxu0 %v11535_v6  ;;  %v11717_v52 = vld [vmem:[#allocation12 + $0x8] sm:$0xff] }
 0x4e4   :  { %10097 = vmatprep.subr.mxu1 %v11509_v53  ;;  %10087 = vmatpush3.msra.mxu0 %v11535_v6 }
 0x4e5   :  { %10098 = vmatpush3.msra.mxu1 %v11509_v53  ;;  %10088 = vmatprep.subr.mxu0 %v11539_v9  ;;  %v11719_v53 = vld [vmem:[#allocation12 + $0x10] sm:$0xff] }
 0x4e6   :  { %10099 = vmatprep.subr.mxu1 %v11511_v56  ;;  %10089 = vmatpush3.msra.mxu0 %v11539_v9 }
 0x4e7   :  { %10090 = vmatprep.mubr.f32.mxu0 %v11626_v14  ;;  %10100 = vmatpush3.msra.mxu1 %v11511_v56 }
 0x4e8   :  { %10101 = vmatprep.mubr.f32.mxu1 %v11626_v14  ;;  %10091 = vmatmul.mubr.f32.vlgmr.msra.gmra.mxu0 %v11632_v15 }
 0x4e9   :  { %10102 = vmatmul.mubr.f32.vlgmr.msra.gmra.mxu1 %v11632_v15 }
 0x574   :  { %v9993_v56 = vpop.f32.mrf.mxu1 }
 0x576   :  { %v2245_v5 = vpop.f32.mrf.mxu1 }
 0x57c   :  { %v9982_v1 = vpop.f32.mrf.mxu0 }
 0x57d   :  { %v2155_v4 = vadd.f32 %v9982_v1, %v11726_v2 }
 0x57e   :  { %v2144_v61 = vpop.f32.mrf.mxu0  ;;  %v10015_v28 = vpop.f32.mrf.mxu1 }
 0x57f   :  { %v2145_v6 = vadd.f32 %v11726_v2, %v2144_v61  ;;  %v2252_v29 = vadd.f32 %v9993_v56, %v2155_v4 }
 0x580   :  { %v2415_v23 = vpop.f32.mrf.mxu1 }
 0x581   :  { %v2246_v20 = vadd.f32 %v2245_v5, %v2145_v6 }
 0x584   :  { %v10004_v9 = vpop.f32.mrf.mxu0 }
 0x585   :  { %v2339_v22 = vadd.f32 %v10004_v9, %v2252_v29 }
 0x586   :  { %v2331_v32 = vpop.f32.mrf.mxu0 }
 0x587   :  { %v2332_v24 = vadd.f32 %v2331_v32, %v2246_v20  ;;  %v2424_v26 = vadd.f32 %v10015_v28, %v2339_v22 }
 0x589   :  { %v2416_v31 = vadd.f32 %v2415_v23, %v2332_v24 }
 0x58a   :  { %v10037_v25 = vpop.f32.mrf.mxu1 }
 0x58c   :  { %v10026_v30 = vpop.f32.mrf.mxu0  ;;  %v2587_v35 = vpop.f32.mrf.mxu1 }
 0x58d   :  { %v2513_v33 = vadd.f32 %v10026_v30, %v2424_v26 }
 0x58e   :  { %v2506_v34 = vpop.f32.mrf.mxu0 }
 0x58f   :  { %v2594_v36 = vadd.f32 %v10037_v25, %v2513_v33  ;;  %v2507_v37 = vadd.f32 %v2506_v34, %v2416_v31 }
 0x591   :  { %v2648_v38 = vcombine.high %v2594_v36, %v2594_v36  ;;  %v2655_v39 = vrot.slane %v2594_v36, %v11348_v21  ;;  %v2588_v40 = vadd.f32 %v2587_v35, %v2507_v37 }
 0x593   :  { %v2662_v41 = vrot.slane %v2648_v38, %v11348_v21  ;;  %v2663_v42 = vcombine.high %v2655_v39, %v2655_v39  ;;  %v2671_v43 = vrot.slane %v2655_v39, %v11348_v21  ;;  %9267 = vst.sshfl [vmem:[#allocation3 + $0x10] sm:$0x1 pattern:$0x73625140] %v2655_v39  ;;  %v2599_v45 = vcombine.high %v2588_v40, %v2588_v40 }
 0x594   :  { %v2606_v46 = vrot.slane %v2588_v40, %v11348_v21  ;;  %v10048_v11 = vpop.f32.mrf.mxu0 }
 0x595   :  { %v2664_v47 = vcombine.high %v2662_v41, %v2662_v41  ;;  %v2678_v48 = vrot.slane %v2662_v41, %v11348_v21  ;;  %v2685_v49 = vrot.slane %v2663_v42, %v11348_v21  ;;  %v2693_v50 = vcombine.high %v2671_v43, %v2671_v43  ;;  %9268 = vst.sshfl [vmem:[#allocation3 + $0x12] sm:$0x1 pattern:$0x73625140] %v2663_v42 }
 0x596   :  { %9269 = vst.sshfl [vmem:[#allocation3 + $0x18] sm:$0x1 pattern:$0x73625140] %v2662_v41  ;;  %v2613_v55 = vrot.slane %v2599_v45, %v11348_v21  ;;  %v2614_v58 = vcombine.high %v2606_v46, %v2606_v46  ;;  %v2622_v59 = vrot.slane %v2606_v46, %v11348_v21  ;;  %v10059_v16 = vpop.f32.mrf.mxu1  ;;  %v2868_v17 = vpop.f32.mrf.mxu0  ;;  %v2879_v57 = vadd.f32 %v10048_v11, %v11726_v2 }
 0x597   :  { %9263 = vst.sshfl [vmem:[#allocation3] sm:$0x1 pattern:$0x73625140] %v2606_v46  ;;  %v2692_v3 = vrot.slane %v2664_v47, %v11348_v21  ;;  %v2694_v44 = vcombine.high %v2678_v48, %v2678_v48  ;;  %v2695_v60 = vcombine.high %v2685_v49, %v2685_v49  ;;  %2723 = vst [vmem:[#allocation3 + $0x14] sm:$0x1] %v2693_v50 }
 0x598   :  { %9270 = vst.sshfl [vmem:[#allocation3 + $0x1a] sm:$0x1 pattern:$0x73625140] %v2664_v47  ;;  %v2615_v62 = vcombine.high %v2613_v55, %v2613_v55  ;;  %v2629_v63 = vrot.slane %v2613_v55, %v11348_v21  ;;  %v2636_v8 = vrot.slane %v2614_v58, %v11348_v21  ;;  %v2644_v10 = vcombine.high %v2622_v59, %v2622_v59  ;;  %v2969_v19 = vpop.f32.mrf.mxu1 }
 0x599   :  { %9264 = vst.sshfl [vmem:[#allocation3 + $0x2] sm:$0x1 pattern:$0x73625140] %v2614_v58  ;;  %v2696_v12 = vcombine.high %v2692_v3, %v2692_v3  ;;  %2724 = vst [vmem:[#allocation3 + $0x16] sm:$0x1] %v2695_v60  ;;  %v2869_v54 = vadd.f32 %v11726_v2, %v2868_v17  ;;  %v2976_v27 = vadd.f32 %v10059_v16, %v2879_v57 }
 0x59a   :  { %9265 = vst.sshfl [vmem:[#allocation3 + $0x8] sm:$0x1 pattern:$0x73625140] %v2613_v55  ;;  %2727 = vst [vmem:[#allocation3 + $0x1c] sm:$0x1] %v2694_v44  ;;  %v2643_v13 = vrot.slane %v2615_v62, %v11348_v21  ;;  %v2645_v14 = vcombine.high %v2629_v63, %v2629_v63  ;;  %v2646_v15 = vcombine.high %v2636_v8, %v2636_v8 }
 0x59b   :  { %2715 = vst [vmem:[#allocation3 + $0x4] sm:$0x1] %v2644_v10  ;;  %9266 = vst.sshfl [vmem:[#allocation3 + $0xa] sm:$0x1 pattern:$0x73625140] %v2615_v62  ;;  %v2970_v61 = vadd.f32 %v2969_v19, %v2869_v54 }
 0x59c   :  { %2728 = vst [vmem:[#allocation3 + $0x1e] sm:$0x1] %v2696_v12  ;;  %v2647_v7 = vcombine.high %v2643_v13, %v2643_v13  ;;  %2716 = vst [vmem:[#allocation3 + $0x6] sm:$0x1] %v2646_v15  ;;  %v11756_v62 = vmov 0.0   ;;  %v11758_v63 = vmov 0.0  }
 0x59d   :  { %2719 = vst [vmem:[#allocation3 + $0xc] sm:$0x1] %v2645_v14 }
 0x59e   :  { %2720 = vst [vmem:[#allocation3 + $0xe] sm:$0x1] %v2647_v7  ;;  %v10070_v18 = vpop.f32.mrf.mxu0 }
 0x59f   :  { %v3063_v4 = vadd.f32 %v10070_v18, %v2976_v27 }
 0x5a0   :  { %v10081_v1 = vpop.f32.mrf.mxu1  ;;  %v3055_v56 = vpop.f32.mrf.mxu0 }
 0x5a1   :  { %v3056_v5 = vadd.f32 %v3055_v56, %v2970_v61  ;;  %v3148_v9 = vadd.f32 %v10081_v1, %v3063_v4 }
 0x5a2   :  { %v3139_v6 = vpop.f32.mrf.mxu1 }
 0x5a3   :  { %v3140_v29 = vadd.f32 %v3139_v6, %v3056_v5 }
 0x5a8   :  { %v10092_v28 = vpop.f32.mrf.mxu0 }
 0x5a9   :  { %v3237_v32 = vadd.f32 %v10092_v28, %v3148_v9  ;;  %v10103_v20 = vpop.f32.mrf.mxu1 }
 0x5aa   :  { %v3230_v22 = vpop.f32.mrf.mxu0 }
 0x5ab   :  { %v3318_v23 = vadd.f32 %v10103_v20, %v3237_v32  ;;  %v3231_v24 = vadd.f32 %v3230_v22, %v3140_v29  ;;  %v3311_v25 = vpop.f32.mrf.mxu1 }
 0x5ad   :  { %v3372_v26 = vcombine.high %v3318_v23, %v3318_v23  ;;  %v3379_v2 = vrot.slane %v3318_v23, %v11348_v21  ;;  %v3312_v30 = vadd.f32 %v3311_v25, %v3231_v24 }
 0x5af   :  { %v3386_v31 = vrot.slane %v3372_v26, %v11348_v21  ;;  %v3387_v33 = vcombine.high %v3379_v2, %v3379_v2  ;;  %v3395_v34 = vrot.slane %v3379_v2, %v11348_v21  ;;  %9275 = vst.sshfl [vmem:[#allocation3 + $0x11] sm:$0x1 pattern:$0x73625140] %v3379_v2  ;;  %v3323_v35 = vcombine.high %v3312_v30, %v3312_v30 }
 0x5b0   :  { %v3330_v36 = vrot.slane %v3312_v30, %v11348_v21 }
 0x5b1   :  { %v3388_v37 = vcombine.high %v3386_v31, %v3386_v31  ;;  %v3402_v38 = vrot.slane %v3386_v31, %v11348_v21  ;;  %v3409_v39 = vrot.slane %v3387_v33, %v11348_v21  ;;  %v3417_v40 = vcombine.high %v3395_v34, %v3395_v34  ;;  %9276 = vst.sshfl [vmem:[#allocation3 + $0x13] sm:$0x1 pattern:$0x73625140] %v3387_v33 }
 0x5b2   :  { %9277 = vst.sshfl [vmem:[#allocation3 + $0x19] sm:$0x1 pattern:$0x73625140] %v3386_v31  ;;  %v3337_v41 = vrot.slane %v3323_v35, %v11348_v21  ;;  %v3338_v42 = vcombine.high %v3330_v36, %v3330_v36  ;;  %v3346_v43 = vrot.slane %v3330_v36, %v11348_v21 }
 0x5b3   :  { %9271 = vst.sshfl [vmem:[#allocation3 + $0x1] sm:$0x1 pattern:$0x73625140] %v3330_v36  ;;  %v3416_v45 = vrot.slane %v3388_v37, %v11348_v21  ;;  %v3418_v46 = vcombine.high %v3402_v38, %v3402_v38  ;;  %v3419_v47 = vcombine.high %v3409_v39, %v3409_v39  ;;  %3447 = vst [vmem:[#allocation3 + $0x15] sm:$0x1] %v3417_v40 }
 0x5b4   :  { %9278 = vst.sshfl [vmem:[#allocation3 + $0x1b] sm:$0x1 pattern:$0x73625140] %v3388_v37  ;;  %v3339_v48 = vcombine.high %v3337_v41, %v3337_v41  ;;  %v3353_v49 = vrot.slane %v3337_v41, %v11348_v21  ;;  %v3360_v50 = vrot.slane %v3338_v42, %v11348_v21  ;;  %v3368_v55 = vcombine.high %v3346_v43, %v3346_v43 }
 0x5b5   :  { %9272 = vst.sshfl [vmem:[#allocation3 + $0x3] sm:$0x1 pattern:$0x73625140] %v3338_v42  ;;  %v3420_v58 = vcombine.high %v3416_v45, %v3416_v45  ;;  %3448 = vst [vmem:[#allocation3 + $0x17] sm:$0x1] %v3419_v47 }
 0x5b6   :  { %9273 = vst.sshfl [vmem:[#allocation3 + $0x9] sm:$0x1 pattern:$0x73625140] %v3337_v41  ;;  %3451 = vst [vmem:[#allocation3 + $0x1d] sm:$0x1] %v3418_v46  ;;  %v3367_v59 = vrot.slane %v3339_v48, %v11348_v21  ;;  %v3369_v3 = vcombine.high %v3353_v49, %v3353_v49  ;;  %v3370_v44 = vcombine.high %v3360_v50, %v3360_v50 }
 0x5b7   :  { %3439 = vst [vmem:[#allocation3 + $0x5] sm:$0x1] %v3368_v55  ;;  %9274 = vst.sshfl [vmem:[#allocation3 + $0xb] sm:$0x1 pattern:$0x73625140] %v3339_v48 }
 0x5b8   :  { %3452 = vst [vmem:[#allocation3 + $0x1f] sm:$0x1] %v3420_v58  ;;  %v3371_v60 = vcombine.high %v3367_v59, %v3367_v59  ;;  %3440 = vst [vmem:[#allocation3 + $0x7] sm:$0x1] %v3370_v44 }
 0x5b9   :  { %3443 = vst [vmem:[#allocation3 + $0xd] sm:$0x1] %v3369_v3 }
 0x5ba   :  { %3444 = vst [vmem:[#allocation3 + $0xf] sm:$0x1] %v3371_v60 }
 0x5bb LB: > { %v3498_v8 = vand.u32 4294901760, %v11721_v0  ;;  %v11771_v10 = vand.u32 4294901760, %v11719_v53  ;;  %v11044_v11 = vmov 0.0   ;;  %v11775_v12 = vand.u32 4294901760, %v11717_v52  ;;  %s11045_s22 = smov 32   ;;  %s9279_s23 = sshll.u32 %s11006_s21, 1  ;;  %s11006_s21 = sphi %s11760_s21, %s3462_s21   ;;  %v11002_v63 = vphi %v11758_v63, %v3982_v63   ;;  %v10998_v62 = vphi %v11756_v62, %v3976_v62  }
 0x5bc   : > { %10115 = vmatprep.subr.mxu1 %v11044_v11  ;;  %v11778_v13 = vand.u32 4294901760, %v11715_v51  ;;  %10104 = vmatprep.subr.mxu0 %v11044_v11  ;;  %vm11046_vm10 = vmmov 0   ;;  %s3466_s24 = scalar_lea.vmem [#allocation3], %s9279_s23  ;;  %s11047_s1 = smov 64  }
 0x5bd   : > { %3469 = vrot.lane.b32.xlu0 %v11002_v63, %s11045_s22  ;;  %v11783_v14 = vsub.f32 %v11721_v0, %v3498_v8  ;;  %v11787_v15 = vsub.f32 %v11719_v53, %v11771_v10  ;;  %10123 = vmatprep.mubr.msk.f32.mxu1 %vm11046_vm10, %v11044_v11  ;;  %v11793_v7 = vsub.f32 %v11717_v52, %v11775_v12  ;;  %s3987_s25 = scalar_lea.vmem [#allocation2], %s9279_s23  ;;  %s3462_s21 = sadd.s32 1, %s11006_s21  }
 0x5be   : > { %v11797_v16 = vsub.f32 %v11715_v51, %v11778_v13  ;;  %10105 = vmatpush3.msra.mxu0 %v3498_v8  ;;  %10112 = vmatprep.mubr.msk.f32.mxu0 %vm11046_vm10, %v11044_v11  ;;  %p3459_p12 = scmp.ge.s32.totalorder %s3462_s21, 16  }
 0x5bf   : > { %v3579_v17 = vand.u32 4294901760, %v11783_v14  ;;  %v3586_v57 = vand.u32 4294901760, %v11787_v15  ;;  %10106 = vmatprep.subr.mxu0 %v11044_v11  ;;  %v3593_v18 = vand.u32 4294901760, %v11793_v7  ;;  %s12135_s27 = smov (%p3459_p12), 0  }
 0x5c0   : > { %v3600_v54 = vand.u32 4294901760, %v11797_v16  ;;  %10107 = vmatpush3.msra.mxu0 %v11771_v10 }
 0x5c1   : > { %v3580_v19 = vsub.f32 %v11783_v14, %v3579_v17  ;;  %v3587_v27 = vsub.f32 %v11787_v15, %v3586_v57  ;;  %10108 = vmatprep.subr.mxu0 %v11044_v11  ;;  %v3594_v1 = vsub.f32 %v11793_v7, %v3593_v18  ;;  %v3467_v42 = vld [vmem:[%s3466_s24] sm:$0x3] }
 0x5c2   : > { %10109 = vmatpush3.msra.mxu0 %v11775_v12  ;;  %v3601_v4 = vsub.f32 %v11797_v16, %v3600_v54 }
 0x5c3   : > { %v3581_v56 = vand.u32 4294901760, %v3580_v19  ;;  %v3588_v61 = vand.u32 4294901760, %v3587_v27  ;;  %10110 = vmatprep.subr.mxu0 %v11044_v11  ;;  %v3595_v5 = vand.u32 4294901760, %v3594_v1 }
 0x5c4   : > { %10111 = vmatpush3.msra.mxu0 %v11778_v13  ;;  %v3602_v6 = vand.u32 4294901760, %v3601_v4 }
 0x5c5   : > { %10116 = vmatpush3.msra.mxu1 %v3581_v56  ;;  %10126 = vmatprep.subr.mxu0 %v11044_v11 }
 0x5c6   : > { %10117 = vmatprep.subr.mxu1 %v11044_v11 }
 0x5c7   : > { %10118 = vmatpush3.msra.mxu1 %v3588_v61 }
 0x5c8   : > { %10119 = vmatprep.subr.mxu1 %v11044_v11 }
 0x5c9   : > { %10120 = vmatpush3.msra.mxu1 %v3595_v5 }
 0x5ca   : > { %10121 = vmatprep.subr.mxu1 %v11044_v11 }
 0x5cb   : > { %10122 = vmatpush3.msra.mxu1 %v3602_v6 }
 0x5cc   : > { %10137 = vmatprep.subr.mxu1 %v11044_v11 }
 0x62f   : > { %v3470_v9 = vpop.permute.xlu0 %3469 }
 0x630   : > { %v3471_v28 = vsel %vm114_vm0, %v3470_v9, 0 }
 0x631   : > { %v3542_v29 = vand.u32 4294901760, %v3471_v28 }
 0x633   : > { %v3543_v32 = vsub.f32 %v3471_v28, %v3542_v29  ;;  %10124 = vmatmul.mubr.f32.vlgmr.msra.gmra.mxu1 %v3542_v29 }
 0x634   : > { %10138 = vmatpush3.msra.mxu1 %v3498_v8  ;;  %10145 = vmatprep.mubr.msk.f32.mxu1 %vm11046_vm10, %v11044_v11 }
 0x635   : > { %v3544_v20 = vand.u32 4294901760, %v3543_v32  ;;  %10139 = vmatprep.subr.mxu1 %v11044_v11 }
 0x636   : > { %10140 = vmatpush3.msra.mxu1 %v11771_v10 }
 0x637   : > { %10141 = vmatprep.subr.mxu1 %v11044_v11  ;;  %v3545_v22 = vsub.f32 %v3543_v32, %v3544_v20 }
 0x638   : > { %10142 = vmatpush3.msra.mxu1 %v11775_v12 }
 0x639   : > { %10143 = vmatprep.subr.mxu1 %v11044_v11  ;;  %v3546_v23 = vand.u32 4294901760, %v3545_v22 }
 0x63a   : > { %10144 = vmatpush3.msra.mxu1 %v11778_v13 }
 0x63b   : > { %10146 = vmatmul.mubr.f32.vlgmr.msra.gmra.mxu1 %v3544_v20  ;;  %10159 = vmatprep.subr.mxu1 %v11044_v11 }
 0x63c   : > { %10113 = vmatmul.mubr.f32.vlgmr.msra.gmra.mxu0 %v3546_v23  ;;  %10160 = vmatpush3.msra.mxu1 %v3498_v8 }
 0x63d   : > { %10127 = vmatpush3.msra.mxu0 %v11783_v14  ;;  %10161 = vmatprep.subr.mxu1 %v11044_v11 }
 0x63e   : > { %10128 = vmatprep.subr.mxu0 %v11044_v11  ;;  %10162 = vmatpush3.msra.mxu1 %v11771_v10 }
 0x63f   : > { %10129 = vmatpush3.msra.mxu0 %v11787_v15  ;;  %10163 = vmatprep.subr.mxu1 %v11044_v11 }
 0x640   : > { %10130 = vmatprep.subr.mxu0 %v11044_v11  ;;  %10164 = vmatpush3.msra.mxu1 %v11775_v12  ;;  %v3993_v12 = vld [vmem:[#allocation10 + $0x30] sm:$0xff] (%p3459_p12) }
 0x641   : > { %10131 = vmatpush3.msra.mxu0 %v11793_v7  ;;  %10165 = vmatprep.subr.mxu1 %v11044_v11  ;;  %v11887_v15 = vand.u32 (%p3459_p12), 4294901760, %v3993_v12 }
 0x642   : > { %10132 = vmatprep.subr.mxu0 %v11044_v11  ;;  %10134 = vmatprep.mubr.msk.f32.mxu0 %vm11046_vm10, %v11044_v11 }
 0x643   : > { %10133 = vmatpush3.msra.mxu0 %v11797_v16  ;;  %10166 = vmatpush3.msra.mxu1 %v11778_v13  ;;  %v3992_v13 = vld [vmem:[#allocation10 + $0x28] sm:$0xff] (%p3459_p12)  ;;  %v3991_v16 = vld [vmem:[#allocation10 + $0x20] sm:$0xff] (%p3459_p12)  ;;  %v11898_v51 = vsub.f32 (%p3459_p12), %v3993_v12, %v11887_v15 }
 0x644   : > { %10167 = vmatprep.mubr.msk.f32.mxu1 %vm11046_vm10, %v11044_v11  ;;  %10135 = vmatmul.mubr.f32.vlgmr.msra.gmra.mxu0 %v3543_v32  ;;  %v11889_v7 = vand.u32 (%p3459_p12), 4294901760, %v3992_v13 }
 0x645   : > { %10148 = vmatprep.subr.mxu0 %v11044_v11  ;;  %10168 = vmatmul.mubr.f32.vlgmr.msra.gmra.mxu1 %v3542_v29  ;;  %v11912_v5 = vand.u32 (%p3459_p12), 4294901760, %v11898_v51 }
 0x646   : > { %10149 = vmatpush3.msra.mxu0 %v3579_v17  ;;  %10156 = vmatprep.mubr.msk.f32.mxu0 %vm11046_vm10, %v11044_v11  ;;  %v11901_v52 = vsub.f32 (%p3459_p12), %v3992_v13, %v11889_v7 }
 0x647   : > { %10150 = vmatprep.subr.mxu0 %v11044_v11 }
 0x648   : > { %10151 = vmatpush3.msra.mxu0 %v3586_v57  ;;  %v11891_v57 = vand.u32 (%p3459_p12), 4294901760, %v3991_v16  ;;  %v11915_v6 = vand.u32 (%p3459_p12), 4294901760, %v11901_v52 }
 0x649   : > { %10152 = vmatprep.subr.mxu0 %v11044_v11 }
 0x64a   : > { %10153 = vmatpush3.msra.mxu0 %v3593_v18  ;;  %v11905_v27 = vsub.f32 (%p3459_p12), %v3991_v16, %v11891_v57 }
 0x64b   : > { %10154 = vmatprep.subr.mxu0 %v11044_v11  ;;  %v3994_v11 = vld [vmem:[#allocation10 + $0x38] sm:$0xff] (%p3459_p12) }
 0x64c   : > { %10155 = vmatpush3.msra.mxu0 %v3600_v54  ;;  %v11885_v14 = vand.u32 (%p3459_p12), 4294901760, %v3994_v11 }
 0x64d   : > { %10157 = vmatmul.mubr.f32.vlgmr.msra.gmra.mxu0 %v3542_v29  ;;  %v11919_v29 = vand.u32 (%p3459_p12), 4294901760, %v11905_v27 }
 0x64e   :  { %10170 = vmatprep.subr.mxu0 (%p3459_p12), %v11885_v14  ;;  %v11895_v19 = vsub.f32 (%p3459_p12), %v3994_v11, %v11885_v14 }
 0x64f   :  { %10171 = vmatpush3.msra.mxu0 (%p3459_p12), %v11885_v14 }
 0x650   :  { %v11908_v4 = vand.u32 (%p3459_p12), 4294901760, %v11895_v19  ;;  %10172 = vmatprep.subr.mxu0 (%p3459_p12), %v11887_v15 }
 0x651   :  { %10173 = vmatpush3.msra.mxu0 (%p3459_p12), %v11887_v15 }
 0x652   :  { %v4184_v23 = vsub.f32 (%p3459_p12), %v11895_v19, %v11908_v4  ;;  %10174 = vmatprep.subr.mxu0 (%p3459_p12), %v11889_v7 }
 0x653   :  { %10175 = vmatpush3.msra.mxu0 (%p3459_p12), %v11889_v7 }
 0x654   :  { %10176 = vmatprep.subr.mxu0 (%p3459_p12), %v11891_v57 }
 0x655   :  { %10177 = vmatpush3.msra.mxu0 (%p3459_p12), %v11891_v57 }
 0x656   :  { %10192 = vmatprep.subr.mxu0 (%p3459_p12), %v11895_v19 }
 0x6f3   : > { %v3639_v24 = vpop.f32.mrf.mxu1 }
 0x6f5   : > { %v10125_v25 = vpop.f32.mrf.mxu1 }
 0x6f6   :  { %v4198_v25 = vsub.f32 (%p3459_p12), %v11901_v52, %v11915_v6 }
 0x6fb   : > { %v3796_v26 = vpop.f32.mrf.mxu1 }
 0x6fc   : > { %v3548_v2 = vpop.f32.mrf.mxu0 }
 0x6fd   : > { %v10147_v30 = vpop.f32.mrf.mxu1  ;;  %v3640_v35 = vadd.f32 %v3639_v24, %v3548_v2  ;;  %v4191_v24 = vsub.f32 (%p3459_p12), %v11898_v51, %v11912_v5 }
 0x6fe   : > { %v10114_v31 = vpop.f32.mrf.mxu0 }
 0x704   : > { %v3719_v33 = vpop.f32.mrf.mxu0 }
 0x705   : > { %v3954_v34 = vpop.f32.mrf.mxu1  ;;  %v3720_v38 = vadd.f32 %v3719_v33, %v3640_v35 }
 0x706   : > { %v10136_v36 = vpop.f32.mrf.mxu0 }
 0x707   : > { %v10169_v37 = vpop.f32.mrf.mxu1  ;;  %v3797_v39 = vadd.f32 %v3796_v26, %v3720_v38 }
 0x70d   : > { %v3879_v40 = vpop.f32.mrf.mxu0 }
 0x70e   : > { %v3880_v41 = vadd.f32 %v3879_v40, %v3797_v39  ;;  %v11934_v40 = vand.u32 (%p3459_p12), 4294901760, %v4184_v23 }
 0x70f   : > { %v10158_v43 = vpop.f32.mrf.mxu0 }
 0x710   : > { %v3955_v45 = vadd.f32 %v3954_v34, %v3880_v41  ;;  %v4205_v34 = vsub.f32 (%p3459_p12), %v11905_v27, %v11919_v29  ;;  %v11936_v41 = vand.u32 (%p3459_p12), 4294901760, %v4191_v24  ;;  %10181 = vmatprep.subr.mxu1 (%p3459_p12), %v11934_v40 }
 0x711   :  { %10182 = vmatpush3.msra.mxu1 (%p3459_p12), %v11934_v40 }
 0x712   : > { %v3958_v46 = vadd.f32 %v3955_v45, %v3467_v42  ;;  %v11938_v42 = vand.u32 (%p3459_p12), 4294901760, %v4198_v25  ;;  %10183 = vmatprep.subr.mxu1 (%p3459_p12), %v11936_v41 }
 0x713   :  { %10184 = vmatpush3.msra.mxu1 (%p3459_p12), %v11936_v41 }
 0x714   : > { %10783 = vtanh.f32 %v3958_v46  ;;  %v3959_v48 = vsub.f32 0.0, %v3958_v46  ;;  %v11942_v46 = vand.u32 (%p3459_p12), 4294901760, %v4205_v34  ;;  %10185 = vmatprep.subr.mxu1 (%p3459_p12), %v11938_v42 }
 0x715   :  { %10186 = vmatpush3.msra.mxu1 (%p3459_p12), %v11938_v42 }
 0x716   : > { %v3960_v49 = vmul.f32 1.442695, %v3959_v48  ;;  %10187 = vmatprep.subr.mxu1 (%p3459_p12), %v11942_v46 }
 0x717   :  { %10188 = vmatpush3.msra.mxu1 (%p3459_p12), %v11942_v46 }
 0x718   : > { %10785 = vpow2.f32 %v3960_v49  ;;  %10203 = vmatprep.subr.mxu1 (%p3459_p12), %v11885_v14 }
 0x721   : > { %v10784_v47 = vpop.eup %10783 }
 0x722   : > { %3968 = vrot.lane.b32.xlu0 %v10784_v47, %s11047_s1 }
 0x725   : > { %v10786_v50 = vpop.eup %10785 }
 0x726   : > { %v3962_v55 = vadd.f32 1.0, %v10786_v50 }
 0x728   : > { %10787 = vrcp.f32 %v3962_v55 }
 0x735   : > { %v10788_v58 = vpop.eup %10787 }
 0x736   : > { %v3966_v44 = vmul.f32 %v10998_v62, %v10788_v58 }
 0x794   : > { %v3969_v59 = vpop.permute.xlu0 %3968 }
 0x795   : > { %v3971_v3 = vmul.f32 %v10788_v58, %v3969_v59 }
 0x797   : > { %3973 = vrot.lane.b32.xlu1 %v3971_v3, %s11045_s22 }
 0x809   : > { %v3974_v60 = vpop.permute.xlu1 %3973 }
 0x80a   : > { %v3976_v62 = vadd.f32 %v3974_v60, %v3966_v44  }
 0x80c   : > { %10789 = vtanh.f32 %v3976_v62 }
 0x819   : > { %v10790_v63 = vpop.eup %10789 }
 0x81a   : > { %3979 = vrot.lane.b32.xlu1 %v10790_v63, %s11047_s1 }
 0x88c   : > { %v3980_v8 = vpop.permute.xlu1 %3979 }
 0x88d   : > { %v3982_v63 = vmul.f32 %v10788_v58, %v3980_v8  }
 0x88f   : > { %3984 = vrot.lane.b32.xlu0 %v3982_v63, %s11045_s22 }
 0x8fe   :  { %3461 = sbr.rel (!%p3459_p12) target bundleno = 1467 (0x5bb), region = 130 }
 0x901   : > { %v3985_v10 = vpop.permute.xlu0 %3984 }
 0x902   : > { %3989 = vst.msk [vmem:[%s3987_s25] sm:$0x3] %vm1985_vm2, %v3985_v10 }
 0x909   :  { %v3997_v17 = vld [vmem:[#allocation2] sm:$0x1]  ;;  %v3998_v18 = vld [vmem:[#allocation2 + $0x2] sm:$0x1]  ;;  %v3999_v54 = vld [vmem:[#allocation2 + $0x4] sm:$0x1] }
 0x90a   :  { %v4000_v53 = vld [vmem:[#allocation2 + $0x6] sm:$0x1]  ;;  %v4001_v0 = vld [vmem:[#allocation2 + $0x8] sm:$0x1]  ;;  %v4002_v62 = vld [vmem:[#allocation2 + $0xa] sm:$0x1] }
 0x90b   :  { %v4003_v1 = vld [vmem:[#allocation2 + $0xc] sm:$0x1]  ;;  %v4035_v56 = vrot.slane %v3998_v18, 7  ;;  %v4037_v61 = vrot.slane %v3999_v54, 6  ;;  %v4004_v9 = vld [vmem:[#allocation2 + $0xe] sm:$0x1] }
 0x90c   :  { %v4039_v28 = vrot.slane %v4000_v53, 5  ;;  %v4041_v20 = vrot.slane %v4001_v0, 4  ;;  %v4043_v22 = vrot.slane %v4002_v62, 3  ;;  %v4005_v2 = vld [vmem:[#allocation2 + $0x10] sm:$0x1]  ;;  %v4045_v36 = vrot.slane %v4003_v1, 2 }
 0x90d   :  { %v4036_v32 = vsel %vm2031_vm3, %v4035_v56, %v3997_v17  ;;  %v4006_v30 = vld [vmem:[#allocation2 + $0x12] sm:$0x1]  ;;  %v4007_v31 = vld [vmem:[#allocation2 + $0x14] sm:$0x1]  ;;  %v4008_v33 = vld [vmem:[#allocation2 + $0x16] sm:$0x1] }
 0x90e   :  { %v4038_v26 = vsel %vm2034_vm4, %v4037_v61, %v4036_v32  ;;  %v4047_v37 = vrot.slane %v4004_v9, 1  ;;  %v4009_v38 = vld [vmem:[#allocation2 + $0x18] sm:$0x1]  ;;  %v4010_v39 = vld [vmem:[#allocation2 + $0x1a] sm:$0x1]  ;;  %v4049_v49 = vrot.slane %v4006_v30, 7 }
 0x90f   :  { %v4040_v35 = vsel %vm2037_vm5, %v4039_v28, %v4038_v26  ;;  %v4011_v45 = vld [vmem:[#allocation2 + $0x1c] sm:$0x1]  ;;  %v4012_v48 = vld [vmem:[#allocation2 + $0x1e] sm:$0x1]  ;;  %v4051_v50 = vrot.slane %v4007_v31, 6  ;;  %v4053_v58 = vrot.slane %v4008_v33, 5 }
 0x910   :  { %v4042_v43 = vsel %vm2040_vm6, %v4041_v20, %v4040_v35  ;;  %v4055_v59 = vrot.slane %v4009_v38, 4  ;;  %v4727_v3 = vld [vmem:[#allocation2 + $0x1] sm:$0x1]  ;;  %v4728_v44 = vld [vmem:[#allocation2 + $0x3] sm:$0x1]  ;;  %v4050_v63 = vsel %vm2031_vm3, %v4049_v49, %v4005_v2  ;;  %v4057_v8 = vrot.slane %v4010_v39, 3 }
 0x911   :  { %v4044_v47 = vsel %vm2043_vm7, %v4043_v22, %v4042_v43  ;;  %v4059_v10 = vrot.slane %v4011_v45, 2  ;;  %v4729_v11 = vld [vmem:[#allocation2 + $0x5] sm:$0x1]  ;;  %v4730_v12 = vld [vmem:[#allocation2 + $0x7] sm:$0x1]  ;;  %v4052_v16 = vsel %vm2034_vm4, %v4051_v50, %v4050_v63  ;;  %v4759_v54 = vrot.slane %v4728_v44, 7 }
 0x912   :  { %v4046_v55 = vsel %vm2046_vm8, %v4045_v36, %v4044_v47  ;;  %v4731_v17 = vld [vmem:[#allocation2 + $0x9] sm:$0x1]  ;;  %v4732_v18 = vld [vmem:[#allocation2 + $0xb] sm:$0x1]  ;;  %v4054_v0 = vsel %vm2037_vm5, %v4053_v58, %v4052_v16  ;;  %v4061_v62 = vrot.slane %v4012_v48, 1  ;;  %v4761_v1 = vrot.slane %v4729_v11, 6 }
 0x913   :  { %v4048_v60 = vsel %vm2049_vm9, %v4047_v37, %v4046_v55  ;;  %v4056_v56 = vsel %vm2040_vm6, %v4055_v59, %v4054_v0  ;;  %v4733_v61 = vld [vmem:[#allocation2 + $0xd] sm:$0x1]  ;;  %v4760_v9 = vsel %vm2031_vm3, %v4759_v54, %v4727_v3  ;;  %v4763_v28 = vrot.slane %v4730_v12, 5  ;;  %v4736_v20 = vld [vmem:[#allocation2 + $0x13] sm:$0x1] }
 0x914   :  { %v4063_v13 = vsel %vm114_vm0, %v4048_v60, 0  ;;  %v4765_v32 = vrot.slane %v4731_v17, 4  ;;  %v4058_v23 = vsel %vm2043_vm7, %v4057_v8, %v4056_v56  ;;  %v4762_v24 = vsel %vm2034_vm4, %v4761_v1, %v4760_v9  ;;  %v4737_v26 = vld [vmem:[#allocation2 + $0x15] sm:$0x1]  ;;  %v4738_v2 = vld [vmem:[#allocation2 + $0x17] sm:$0x1] }
 0x915   :  { %v11956_v53 = vand.u32 4294901760, %v4063_v13  ;;  %v4767_v25 = vrot.slane %v4732_v18, 3  ;;  %v4060_v30 = vsel %vm2046_vm8, %v4059_v10, %v4058_v23  ;;  %v4764_v31 = vsel %vm2037_vm5, %v4763_v28, %v4762_v24  ;;  %v4735_v33 = vld [vmem:[#allocation2 + $0x11] sm:$0x1]  ;;  %v4739_v37 = vld [vmem:[#allocation2 + $0x19] sm:$0x1] }
 0x916   :  { %v4062_v35 = vsel %vm2049_vm9, %v4061_v62, %v4060_v30  ;;  %v4766_v36 = vsel %vm2040_vm6, %v4765_v32, %v4764_v31  ;;  %v4740_v38 = vld [vmem:[#allocation2 + $0x1b] sm:$0x1]  ;;  %v4773_v39 = vrot.slane %v4736_v20, 7  ;;  %v4734_v45 = vld [vmem:[#allocation2 + $0xf] sm:$0x1]  ;;  %v4769_v47 = vrot.slane %v4733_v61, 2 }
 0x917   :  { %v4137_v22 = vsub.f32 %v4063_v13, %v11956_v53  ;;  %10189 = vmatprep.mubr.f32.mxu1 %v11956_v53  ;;  %v4065_v43 = vsel %vm114_vm0, %v4062_v35, 0  ;;  %v4775_v48 = vrot.slane %v4737_v26, 6  ;;  %v4777_v49 = vrot.slane %v4738_v2, 5  ;;  %v4741_v59 = vld [vmem:[#allocation2 + $0x1d] sm:$0x1] }
 0x918   :  { %v11975_v55 = vand.u32 4294901760, %v4065_v43  ;;  %v4768_v58 = vsel %vm2043_vm7, %v4767_v25, %v4766_v36  ;;  %v4774_v3 = vsel %vm2031_vm3, %v4773_v39, %v4735_v33  ;;  %v4742_v44 = vld [vmem:[#allocation2 + $0x1f] sm:$0x1]  ;;  %v4779_v63 = vrot.slane %v4739_v37, 4 }
 0x919   :  { %v4138_v34 = vand.u32 4294901760, %v4137_v22  ;;  %v4776_v60 = vsel %vm2034_vm4, %v4775_v48, %v4774_v3  ;;  %v4781_v8 = vrot.slane %v4740_v38, 3  ;;  %v4771_v12 = vrot.slane %v4734_v45, 1 }
 0x91a   :  { %v4147_v11 = vsub.f32 %v4065_v43, %v11975_v55  ;;  %10190 = vmatmul.mubr.f32.vlgmr.msra.gmra.mxu1 %v11975_v55  ;;  %v4778_v13 = vsel %vm2037_vm5, %v4777_v49, %v4776_v60  ;;  %v4770_v16 = vsel %vm2046_vm8, %v4769_v47, %v4768_v58  ;;  %v4783_v18 = vrot.slane %v4741_v59, 2 }
 0x91b   :  { %v4139_v50 = vsub.f32 %v4137_v22, %v4138_v34  ;;  %10204 = vmatpush3.msra.mxu1 %v11885_v14  ;;  %10211 = vmatprep.mubr.f32.mxu1 %v4138_v34  ;;  %v4780_v17 = vsel %vm2040_vm6, %v4779_v63, %v4778_v13  ;;  %v4785_v62 = vrot.slane %v4742_v44, 1  ;;  %v4772_v61 = vsel %vm2049_vm9, %v4771_v12, %v4770_v16 }
 0x91c   :  { %v4148_v54 = vand.u32 4294901760, %v4147_v11  ;;  %10205 = vmatprep.subr.mxu1 %v11887_v15  ;;  %v4782_v0 = vsel %vm2043_vm7, %v4781_v8, %v4780_v17  ;;  %v4787_v32 = vsel %vm114_vm0, %v4772_v61, 0 }
 0x91d   :  { %v4140_v10 = vand.u32 4294901760, %v4139_v50  ;;  %10206 = vmatpush3.msra.mxu1 %v11887_v15  ;;  %v4784_v1 = vsel %vm2046_vm8, %v4783_v18, %v4782_v0  ;;  %v12001_v23 = vand.u32 4294901760, %v4787_v32 }
 0x91e   :  { %v4149_v56 = vsub.f32 %v4147_v11, %v4148_v54  ;;  %10207 = vmatprep.subr.mxu1 %v11889_v7  ;;  %v4786_v28 = vsel %vm2049_vm9, %v4785_v62, %v4784_v1 }
 0x91f   :  { %10178 = vmatprep.mubr.f32.mxu0 %v4140_v10  ;;  %10208 = vmatpush3.msra.mxu1 %v11889_v7  ;;  %v4789_v20 = vsel %vm114_vm0, %v4786_v28, 0 }
 0x920   :  { %v4150_v9 = vand.u32 4294901760, %v4149_v56  ;;  %10209 = vmatprep.subr.mxu1 %v11891_v57  ;;  %v12007_v24 = vand.u32 4294901760, %v4789_v20 }
 0x921   :  { %10210 = vmatpush3.msra.mxu1 %v11891_v57 }
 0x922   :  { %10179 = vmatmul.mubr.f32.vlgmr.msra.gmra.mxu0 %v4150_v9  ;;  %10225 = vmatprep.subr.mxu1 %v11885_v14  ;;  %v4871_v25 = vsub.f32 %v4789_v20, %v12007_v24 }
 0x923   :  { %10193 = vmatpush3.msra.mxu0 %v11895_v19  ;;  %10200 = vmatprep.mubr.f32.mxu0 %v4137_v22  ;;  %v12014_v22 = vsub.f32 %v4787_v32, %v12001_v23 }
 0x924   :  { %10194 = vmatprep.subr.mxu0 %v11898_v51  ;;  %10212 = vmatmul.mubr.f32.vlgmr.msra.gmra.mxu1 %v4148_v54  ;;  %v4872_v2 = vand.u32 4294901760, %v4871_v25 }
 0x925   :  { %10195 = vmatpush3.msra.mxu0 %v11898_v51  ;;  %10226 = vmatpush3.msra.mxu1 %v11885_v14  ;;  %v4862_v26 = vand.u32 4294901760, %v12014_v22 }
 0x926   :  { %10196 = vmatprep.subr.mxu0 %v11901_v52  ;;  %10227 = vmatprep.subr.mxu1 %v11887_v15 }
 0x927   :  { %10197 = vmatpush3.msra.mxu0 %v11901_v52  ;;  %10228 = vmatpush3.msra.mxu1 %v11887_v15  ;;  %v4863_v30 = vsub.f32 %v12014_v22, %v4862_v26 }
 0x928   :  { %10198 = vmatprep.subr.mxu0 %v11905_v27  ;;  %10229 = vmatprep.subr.mxu1 %v11889_v7 }
 0x929   :  { %10199 = vmatpush3.msra.mxu0 %v11905_v27  ;;  %10230 = vmatpush3.msra.mxu1 %v11889_v7  ;;  %v4864_v31 = vand.u32 4294901760, %v4863_v30 }
 0x92a   :  { %10201 = vmatmul.mubr.f32.vlgmr.msra.gmra.mxu0 %v4147_v11  ;;  %10214 = vmatprep.subr.mxu0 %v11908_v4 }
 0x92b   :  { %10215 = vmatpush3.msra.mxu0 %v11908_v4  ;;  %10231 = vmatprep.subr.mxu1 %v11891_v57 }
 0x92c   :  { %10216 = vmatprep.subr.mxu0 %v11912_v5  ;;  %10222 = vmatprep.mubr.f32.mxu0 %v11956_v53 }
 0x92d   :  { %10217 = vmatpush3.msra.mxu0 %v11912_v5  ;;  %10232 = vmatpush3.msra.mxu1 %v11891_v57 }
 0x92e   :  { %10218 = vmatprep.subr.mxu0 %v11915_v6  ;;  %10233 = vmatprep.mubr.f32.mxu1 %v11956_v53  ;;  %v4873_v53 = vsub.f32 %v4871_v25, %v4872_v2 }
 0x92f   :  { %10219 = vmatpush3.msra.mxu0 %v11915_v6  ;;  %10247 = vmatprep.subr.mxu1 %v11934_v40 }
 0x930   :  { %10220 = vmatprep.subr.mxu0 %v11919_v29  ;;  %10234 = vmatmul.mubr.f32.vlgmr.msra.gmra.mxu1 %v11975_v55 }
 0x931   :  { %10221 = vmatpush3.msra.mxu0 %v11919_v29  ;;  %10248 = vmatpush3.msra.mxu1 %v11934_v40  ;;  %v4874_v40 = vand.u32 4294901760, %v4873_v53 }
 0x932   :  { %10223 = vmatmul.mubr.f32.vlgmr.msra.gmra.mxu0 %v11975_v55  ;;  %10236 = vmatprep.subr.mxu0 %v11885_v14 }
 0x933   :  { %10237 = vmatpush3.msra.mxu0 %v11885_v14  ;;  %10249 = vmatprep.subr.mxu1 %v11936_v41 }
 0x934   :  { %10238 = vmatprep.subr.mxu0 %v11887_v15  ;;  %10250 = vmatpush3.msra.mxu1 %v11936_v41 }
 0x935   :  { %10239 = vmatpush3.msra.mxu0 %v11887_v15  ;;  %10251 = vmatprep.subr.mxu1 %v11938_v42 }
 0x936   :  { %10240 = vmatprep.subr.mxu0 %v11889_v7  ;;  %10252 = vmatpush3.msra.mxu1 %v11938_v42 }
 0x937   :  { %10241 = vmatpush3.msra.mxu0 %v11889_v7  ;;  %10253 = vmatprep.subr.mxu1 %v11942_v46 }
 0x938   :  { %10242 = vmatprep.subr.mxu0 %v11891_v57  ;;  %10244 = vmatprep.mubr.f32.mxu0 %v4864_v31 }
 0x939   :  { %10243 = vmatpush3.msra.mxu0 %v11891_v57  ;;  %10254 = vmatpush3.msra.mxu1 %v11942_v46 }
 0x93a   :  { %10245 = vmatmul.mubr.f32.vlgmr.msra.gmra.mxu0 %v4874_v40  ;;  %10255 = vmatprep.mubr.f32.mxu1 %v12001_v23 }
 0x93b   :  { %10258 = vmatprep.subr.mxu0 %v11895_v19  ;;  %10269 = vmatprep.subr.mxu1 %v11885_v14 }
 0x93c   :  { %10256 = vmatmul.mubr.f32.vlgmr.msra.gmra.mxu1 %v12007_v24  ;;  %10259 = vmatpush3.msra.mxu0 %v11895_v19  ;;  %v12096_v19 = vld [vmem:[#allocation12 + $0x38] sm:$0xff] }
 0x93d   :  { %10270 = vmatpush3.msra.mxu1 %v11885_v14  ;;  %10260 = vmatprep.subr.mxu0 %v11898_v51 }
 0x93e   :  { %10271 = vmatprep.subr.mxu1 %v11887_v15  ;;  %10261 = vmatpush3.msra.mxu0 %v11898_v51 }
 0x93f   :  { %10272 = vmatpush3.msra.mxu1 %v11887_v15  ;;  %10262 = vmatprep.subr.mxu0 %v11901_v52 }
 0x940   :  { %10273 = vmatprep.subr.mxu1 %v11889_v7  ;;  %10263 = vmatpush3.msra.mxu0 %v11901_v52  ;;  %v12101_v52 = vld [vmem:[%s12768_s6 + $0x1] ss:$0 sm:$0xff] }
 0x941   :  { %10274 = vmatpush3.msra.mxu1 %v11889_v7  ;;  %10264 = vmatprep.subr.mxu0 %v11905_v27 }
 0x942   :  { %10275 = vmatprep.subr.mxu1 %v11891_v57  ;;  %10265 = vmatpush3.msra.mxu0 %v11905_v27 }
 0x943   :  { %10266 = vmatprep.mubr.f32.mxu0 %v12014_v22  ;;  %10276 = vmatpush3.msra.mxu1 %v11891_v57 }
 0x944   :  { %10267 = vmatmul.mubr.f32.vlgmr.msra.gmra.mxu0 %v4871_v25  ;;  %10277 = vmatprep.mubr.f32.mxu1 %v4862_v26 }
 0x945   :  { %10280 = vmatprep.subr.mxu0 %v11908_v4  ;;  %10291 = vmatprep.subr.mxu1 %v11885_v14 }
 0x946   :  { %10278 = vmatmul.mubr.f32.vlgmr.msra.gmra.mxu1 %v4872_v2  ;;  %10281 = vmatpush3.msra.mxu0 %v11908_v4 }
 0x947   :  { %10292 = vmatpush3.msra.mxu1 %v11885_v14  ;;  %10282 = vmatprep.subr.mxu0 %v11912_v5  ;;  %v12090_v14 = vld [vmem:[#allocation12 + $0x20] sm:$0xff] }
 0x948   :  { %10293 = vmatprep.subr.mxu1 %v11887_v15  ;;  %10283 = vmatpush3.msra.mxu0 %v11912_v5 }
 0x949   :  { %10294 = vmatpush3.msra.mxu1 %v11887_v15  ;;  %10284 = vmatprep.subr.mxu0 %v11915_v6  ;;  %v12092_v15 = vld [vmem:[#allocation12 + $0x28] sm:$0xff] }
 0x94a   :  { %10295 = vmatprep.subr.mxu1 %v11889_v7  ;;  %10285 = vmatpush3.msra.mxu0 %v11915_v6 }
 0x94b   :  { %10296 = vmatpush3.msra.mxu1 %v11889_v7  ;;  %10286 = vmatprep.subr.mxu0 %v11919_v29  ;;  %v12094_v7 = vld [vmem:[#allocation12 + $0x30] sm:$0xff] }
 0x94c   :  { %10297 = vmatprep.subr.mxu1 %v11891_v57  ;;  %10287 = vmatpush3.msra.mxu0 %v11919_v29 }
 0x94d   :  { %10288 = vmatprep.mubr.f32.mxu0 %v12001_v23  ;;  %10298 = vmatpush3.msra.mxu1 %v11891_v57 }
 0x94e   :  { %10299 = vmatprep.mubr.f32.mxu1 %v12001_v23  ;;  %10289 = vmatmul.mubr.f32.vlgmr.msra.gmra.mxu0 %v12007_v24 }
 0x94f   :  { %10300 = vmatmul.mubr.f32.vlgmr.msra.gmra.mxu1 %v12007_v24 }
 0x9da   :  { %v10191_v57 = vpop.f32.mrf.mxu1 }
 0x9dc   :  { %v4243_v5 = vpop.f32.mrf.mxu1 }
 0x9e2   :  { %v10180_v51 = vpop.f32.mrf.mxu0 }
 0x9e3   :  { %v4153_v4 = vadd.f32 %v10180_v51, %v12101_v52 }
 0x9e4   :  { %v4142_v27 = vpop.f32.mrf.mxu0  ;;  %v10213_v41 = vpop.f32.mrf.mxu1 }
 0x9e5   :  { %v4143_v6 = vadd.f32 %v12101_v52, %v4142_v27  ;;  %v4250_v42 = vadd.f32 %v10191_v57, %v4153_v4 }
 0x9e6   :  { %v4413_v35 = vpop.f32.mrf.mxu1 }
 0x9e7   :  { %v4244_v33 = vadd.f32 %v4243_v5, %v4143_v6 }
 0x9ea   :  { %v10202_v29 = vpop.f32.mrf.mxu0 }
 0x9eb   :  { %v4337_v34 = vadd.f32 %v10202_v29, %v4250_v42 }
 0x9ec   :  { %v4329_v46 = vpop.f32.mrf.mxu0 }
 0x9ed   :  { %v4330_v36 = vadd.f32 %v4329_v46, %v4244_v33  ;;  %v4422_v38 = vadd.f32 %v10213_v41, %v4337_v34 }
 0x9ef   :  { %v4414_v43 = vadd.f32 %v4413_v35, %v4330_v36 }
 0x9f0   :  { %v10235_v37 = vpop.f32.mrf.mxu1 }
 0x9f2   :  { %v10224_v39 = vpop.f32.mrf.mxu0  ;;  %v4585_v48 = vpop.f32.mrf.mxu1 }
 0x9f3   :  { %v4511_v45 = vadd.f32 %v10224_v39, %v4422_v38 }
 0x9f4   :  { %v4504_v47 = vpop.f32.mrf.mxu0 }
 0x9f5   :  { %v4592_v49 = vadd.f32 %v10235_v37, %v4511_v45  ;;  %v4505_v50 = vadd.f32 %v4504_v47, %v4414_v43 }
 0x9f7   :  { %v4646_v55 = vcombine.high %v4592_v49, %v4592_v49  ;;  %v4653_v58 = vrot.slane %v4592_v49, %v11348_v21  ;;  %v4586_v59 = vadd.f32 %v4585_v48, %v4505_v50 }
 0x9f9   :  { %v4660_v3 = vrot.slane %v4646_v55, %v11348_v21  ;;  %v4661_v44 = vcombine.high %v4653_v58, %v4653_v58  ;;  %v4669_v60 = vrot.slane %v4653_v58, %v11348_v21  ;;  %9286 = vst.sshfl [vmem:[#allocation3 + $0x10] sm:$0x1 pattern:$0x73625140] %v4653_v58  ;;  %v4597_v63 = vcombine.high %v4586_v59, %v4586_v59 }
 0x9fa   :  { %v4604_v8 = vrot.slane %v4586_v59, %v11348_v21  ;;  %v10246_v28 = vpop.f32.mrf.mxu0 }
 0x9fb   :  { %v4662_v10 = vcombine.high %v4660_v3, %v4660_v3  ;;  %v4676_v11 = vrot.slane %v4660_v3, %v11348_v21  ;;  %v4683_v12 = vrot.slane %v4661_v44, %v11348_v21  ;;  %v4691_v13 = vcombine.high %v4669_v60, %v4669_v60  ;;  %9287 = vst.sshfl [vmem:[#allocation3 + $0x12] sm:$0x1 pattern:$0x73625140] %v4661_v44 }
 0x9fc   :  { %9288 = vst.sshfl [vmem:[#allocation3 + $0x18] sm:$0x1 pattern:$0x73625140] %v4660_v3  ;;  %v4611_v16 = vrot.slane %v4597_v63, %v11348_v21  ;;  %v4612_v17 = vcombine.high %v4604_v8, %v4604_v8  ;;  %v4620_v18 = vrot.slane %v4604_v8, %v11348_v21  ;;  %v10257_v25 = vpop.f32.mrf.mxu1  ;;  %v4866_v26 = vpop.f32.mrf.mxu0  ;;  %v4877_v2 = vadd.f32 %v10246_v28, %v12101_v52 }
 0x9fd   :  { %9282 = vst.sshfl [vmem:[#allocation3] sm:$0x1 pattern:$0x73625140] %v4604_v8  ;;  %v4690_v54 = vrot.slane %v4662_v10, %v11348_v21  ;;  %v4692_v0 = vcombine.high %v4676_v11, %v4676_v11  ;;  %v4693_v62 = vcombine.high %v4683_v12, %v4683_v12  ;;  %4721 = vst [vmem:[#allocation3 + $0x14] sm:$0x1] %v4691_v13 }
 0x9fe   :  { %9289 = vst.sshfl [vmem:[#allocation3 + $0x1a] sm:$0x1 pattern:$0x73625140] %v4662_v10  ;;  %v4613_v1 = vcombine.high %v4611_v16, %v4611_v16  ;;  %v4627_v56 = vrot.slane %v4611_v16, %v11348_v21  ;;  %v4634_v61 = vrot.slane %v4612_v17, %v11348_v21  ;;  %v4642_v9 = vcombine.high %v4620_v18, %v4620_v18  ;;  %v4967_v31 = vpop.f32.mrf.mxu1 }
 0x9ff   :  { %9283 = vst.sshfl [vmem:[#allocation3 + $0x2] sm:$0x1 pattern:$0x73625140] %v4612_v17  ;;  %v4694_v32 = vcombine.high %v4690_v54, %v4690_v54  ;;  %4722 = vst [vmem:[#allocation3 + $0x16] sm:$0x1] %v4693_v62  ;;  %v4867_v53 = vadd.f32 %v12101_v52, %v4866_v26  ;;  %v4974_v40 = vadd.f32 %v10257_v25, %v4877_v2 }
 0xa00   :  { %9284 = vst.sshfl [vmem:[#allocation3 + $0x8] sm:$0x1 pattern:$0x73625140] %v4611_v16  ;;  %4725 = vst [vmem:[#allocation3 + $0x1c] sm:$0x1] %v4692_v0  ;;  %v4641_v20 = vrot.slane %v4613_v1, %v11348_v21  ;;  %v4643_v23 = vcombine.high %v4627_v56, %v4627_v56  ;;  %v4644_v24 = vcombine.high %v4634_v61, %v4634_v61 }
 0xa01   :  { %4713 = vst [vmem:[#allocation3 + $0x4] sm:$0x1] %v4642_v9  ;;  %9285 = vst.sshfl [vmem:[#allocation3 + $0xa] sm:$0x1 pattern:$0x73625140] %v4613_v1  ;;  %v4968_v27 = vadd.f32 %v4967_v31, %v4867_v53 }
 0xa02   :  { %4726 = vst [vmem:[#allocation3 + $0x1e] sm:$0x1] %v4694_v32  ;;  %v4645_v22 = vcombine.high %v4641_v20, %v4641_v20  ;;  %4714 = vst [vmem:[#allocation3 + $0x6] sm:$0x1] %v4644_v24  ;;  %v12131_v1 = vmov 0.0   ;;  %v12133_v56 = vmov 0.0  }
 0xa03   :  { %4717 = vst [vmem:[#allocation3 + $0xc] sm:$0x1] %v4643_v23 }
 0xa04   :  { %4718 = vst [vmem:[#allocation3 + $0xe] sm:$0x1] %v4645_v22  ;;  %v10268_v30 = vpop.f32.mrf.mxu0 }
 0xa05   :  { %v5061_v4 = vadd.f32 %v10268_v30, %v4974_v40 }
 0xa06   :  { %v10279_v51 = vpop.f32.mrf.mxu1  ;;  %v5053_v57 = vpop.f32.mrf.mxu0 }
 0xa07   :  { %v5054_v5 = vadd.f32 %v5053_v57, %v4968_v27  ;;  %v5146_v29 = vadd.f32 %v10279_v51, %v5061_v4 }
 0xa08   :  { %v5137_v6 = vpop.f32.mrf.mxu1 }
 0xa09   :  { %v5138_v42 = vadd.f32 %v5137_v6, %v5054_v5 }
 0xa0e   :  { %v10290_v41 = vpop.f32.mrf.mxu0 }
 0xa0f   :  { %v5235_v46 = vadd.f32 %v10290_v41, %v5146_v29  ;;  %v10301_v33 = vpop.f32.mrf.mxu1 }
 0xa10   :  { %v5228_v34 = vpop.f32.mrf.mxu0 }
 0xa11   :  { %v5316_v35 = vadd.f32 %v10301_v33, %v5235_v46  ;;  %v5229_v36 = vadd.f32 %v5228_v34, %v5138_v42  ;;  %v5309_v37 = vpop.f32.mrf.mxu1 }
 0xa13   :  { %v5370_v38 = vcombine.high %v5316_v35, %v5316_v35  ;;  %v5377_v52 = vrot.slane %v5316_v35, %v11348_v21  ;;  %v5310_v39 = vadd.f32 %v5309_v37, %v5229_v36 }
 0xa15   :  { %v5384_v43 = vrot.slane %v5370_v38, %v11348_v21  ;;  %v5385_v45 = vcombine.high %v5377_v52, %v5377_v52  ;;  %v5393_v47 = vrot.slane %v5377_v52, %v11348_v21  ;;  %9294 = vst.sshfl [vmem:[#allocation3 + $0x11] sm:$0x1 pattern:$0x73625140] %v5377_v52  ;;  %v5321_v48 = vcombine.high %v5310_v39, %v5310_v39 }
 0xa16   :  { %v5328_v49 = vrot.slane %v5310_v39, %v11348_v21 }
 0xa17   :  { %v5386_v50 = vcombine.high %v5384_v43, %v5384_v43  ;;  %v5400_v55 = vrot.slane %v5384_v43, %v11348_v21  ;;  %v5407_v58 = vrot.slane %v5385_v45, %v11348_v21  ;;  %v5415_v59 = vcombine.high %v5393_v47, %v5393_v47  ;;  %9295 = vst.sshfl [vmem:[#allocation3 + $0x13] sm:$0x1 pattern:$0x73625140] %v5385_v45 }
 0xa18   :  { %9296 = vst.sshfl [vmem:[#allocation3 + $0x19] sm:$0x1 pattern:$0x73625140] %v5384_v43  ;;  %v5335_v3 = vrot.slane %v5321_v48, %v11348_v21  ;;  %v5336_v44 = vcombine.high %v5328_v49, %v5328_v49  ;;  %v5344_v60 = vrot.slane %v5328_v49, %v11348_v21 }
 0xa19   :  { %9290 = vst.sshfl [vmem:[#allocation3 + $0x1] sm:$0x1 pattern:$0x73625140] %v5328_v49  ;;  %v5414_v63 = vrot.slane %v5386_v50, %v11348_v21  ;;  %v5416_v8 = vcombine.high %v5400_v55, %v5400_v55  ;;  %v5417_v10 = vcombine.high %v5407_v58, %v5407_v58  ;;  %5445 = vst [vmem:[#allocation3 + $0x15] sm:$0x1] %v5415_v59 }
 0xa1a   :  { %9297 = vst.sshfl [vmem:[#allocation3 + $0x1b] sm:$0x1 pattern:$0x73625140] %v5386_v50  ;;  %v5337_v11 = vcombine.high %v5335_v3, %v5335_v3  ;;  %v5351_v12 = vrot.slane %v5335_v3, %v11348_v21  ;;  %v5358_v13 = vrot.slane %v5336_v44, %v11348_v21  ;;  %v5366_v16 = vcombine.high %v5344_v60, %v5344_v60 }
 0xa1b   :  { %9291 = vst.sshfl [vmem:[#allocation3 + $0x3] sm:$0x1 pattern:$0x73625140] %v5336_v44  ;;  %v5418_v17 = vcombine.high %v5414_v63, %v5414_v63  ;;  %5446 = vst [vmem:[#allocation3 + $0x17] sm:$0x1] %v5417_v10 }
 0xa1c   :  { %9292 = vst.sshfl [vmem:[#allocation3 + $0x9] sm:$0x1 pattern:$0x73625140] %v5335_v3  ;;  %5449 = vst [vmem:[#allocation3 + $0x1d] sm:$0x1] %v5416_v8  ;;  %v5365_v18 = vrot.slane %v5337_v11, %v11348_v21  ;;  %v5367_v54 = vcombine.high %v5351_v12, %v5351_v12  ;;  %v5368_v0 = vcombine.high %v5358_v13, %v5358_v13 }
 0xa1d   :  { %5437 = vst [vmem:[#allocation3 + $0x5] sm:$0x1] %v5366_v16  ;;  %9293 = vst.sshfl [vmem:[#allocation3 + $0xb] sm:$0x1 pattern:$0x73625140] %v5337_v11 }
 0xa1e   :  { %5450 = vst [vmem:[#allocation3 + $0x1f] sm:$0x1] %v5418_v17  ;;  %v5369_v62 = vcombine.high %v5365_v18, %v5365_v18  ;;  %5438 = vst [vmem:[#allocation3 + $0x7] sm:$0x1] %v5368_v0 }
 0xa1f   :  { %5441 = vst [vmem:[#allocation3 + $0xd] sm:$0x1] %v5367_v54 }
 0xa20   :  { %5442 = vst [vmem:[#allocation3 + $0xf] sm:$0x1] %v5369_v62 }
 0xa21 LB: > { %v5497_v61 = vand.u32 4294901760, %v12096_v19  ;;  %v12146_v9 = vand.u32 4294901760, %v12094_v7  ;;  %v11048_v28 = vmov 0.0   ;;  %v12150_v32 = vand.u32 4294901760, %v12092_v15  ;;  %s11049_s28 = smov 32   ;;  %s9298_s29 = sshll.u32 %s11018_s27, 1  ;;  %s11018_s27 = sphi %s12135_s27, %s5461_s27   ;;  %v11014_v56 = vphi %v12133_v56, %v5981_v56   ;;  %v11010_v1 = vphi %v12131_v1, %v5975_v1  }
 0xa22   : > { %10313 = vmatprep.subr.mxu1 %v11048_v28  ;;  %v12153_v20 = vand.u32 4294901760, %v12090_v14  ;;  %10302 = vmatprep.subr.mxu0 %v11048_v28  ;;  %vm11050_vm11 = vmmov 0   ;;  %s5465_s30 = scalar_lea.vmem [#allocation3], %s9298_s29  ;;  %s11051_s10 = smov 64  }
 0xa23   : > { %5468 = vrot.lane.b32.xlu0 %v11014_v56, %s11049_s28  ;;  %v12158_v23 = vsub.f32 %v12096_v19, %v5497_v61  ;;  %v12162_v24 = vsub.f32 %v12094_v7, %v12146_v9  ;;  %10321 = vmatprep.mubr.msk.f32.mxu1 %vm11050_vm11, %v11048_v28  ;;  %v12168_v22 = vsub.f32 %v12092_v15, %v12150_v32  ;;  %s5986_s0 = scalar_lea.vmem [#allocation2], %s9298_s29  ;;  %s5461_s27 = sadd.s32 1, %s11018_s27  }
 0xa24   : > { %v12172_v25 = vsub.f32 %v12090_v14, %v12153_v20  ;;  %10303 = vmatpush3.msra.mxu0 %v5497_v61  ;;  %10310 = vmatprep.mubr.msk.f32.mxu0 %vm11050_vm11, %v11048_v28  ;;  %p5458_p13 = scmp.ge.s32.totalorder %s5461_s27, 16  }
 0xa25   : > { %v5578_v26 = vand.u32 4294901760, %v12158_v23  ;;  %v5585_v2 = vand.u32 4294901760, %v12162_v24  ;;  %10304 = vmatprep.subr.mxu0 %v11048_v28  ;;  %v5592_v30 = vand.u32 4294901760, %v12168_v22 }
 0xa26   : > { %v5599_v53 = vand.u32 4294901760, %v12172_v25  ;;  %10305 = vmatpush3.msra.mxu0 %v12146_v9 }
 0xa27   : > { %v5579_v31 = vsub.f32 %v12158_v23, %v5578_v26  ;;  %v5586_v40 = vsub.f32 %v12162_v24, %v5585_v2  ;;  %10306 = vmatprep.subr.mxu0 %v11048_v28  ;;  %v5593_v51 = vsub.f32 %v12168_v22, %v5592_v30  ;;  %v5466_v44 = vld [vmem:[%s5465_s30] sm:$0x3] }
 0xa28   : > { %10307 = vmatpush3.msra.mxu0 %v12150_v32  ;;  %v5600_v4 = vsub.f32 %v12172_v25, %v5599_v53 }
 0xa29   : > { %v5580_v57 = vand.u32 4294901760, %v5579_v31  ;;  %v5587_v27 = vand.u32 4294901760, %v5586_v40  ;;  %10308 = vmatprep.subr.mxu0 %v11048_v28  ;;  %v5594_v5 = vand.u32 4294901760, %v5593_v51 }
 0xa2a   : > { %10309 = vmatpush3.msra.mxu0 %v12153_v20  ;;  %v5601_v6 = vand.u32 4294901760, %v5600_v4 }
 0xa2b   : > { %10314 = vmatpush3.msra.mxu1 %v5580_v57  ;;  %10324 = vmatprep.subr.mxu0 %v11048_v28 }
 0xa2c   : > { %10315 = vmatprep.subr.mxu1 %v11048_v28 }
 0xa2d   : > { %10316 = vmatpush3.msra.mxu1 %v5587_v27 }
 0xa2e   : > { %10317 = vmatprep.subr.mxu1 %v11048_v28 }
 0xa2f   : > { %10318 = vmatpush3.msra.mxu1 %v5594_v5 }
 0xa30   : > { %10319 = vmatprep.subr.mxu1 %v11048_v28 }
 0xa31   : > { %10320 = vmatpush3.msra.mxu1 %v5601_v6 }
 0xa32   : > { %10335 = vmatprep.subr.mxu1 %v11048_v28 }
 0xa95   : > { %v5469_v29 = vpop.permute.xlu0 %5468 }
 0xa96   : > { %v5470_v41 = vsel %vm114_vm0, %v5469_v29, 0 }
 0xa97   : > { %v5541_v42 = vand.u32 4294901760, %v5470_v41 }
 0xa99   : > { %v5542_v46 = vsub.f32 %v5470_v41, %v5541_v42  ;;  %10322 = vmatmul.mubr.f32.vlgmr.msra.gmra.mxu1 %v5541_v42 }
 0xa9a   : > { %10336 = vmatpush3.msra.mxu1 %v5497_v61  ;;  %10343 = vmatprep.mubr.msk.f32.mxu1 %vm11050_vm11, %v11048_v28 }
 0xa9b   : > { %v5543_v33 = vand.u32 4294901760, %v5542_v46  ;;  %10337 = vmatprep.subr.mxu1 %v11048_v28 }
 0xa9c   : > { %10338 = vmatpush3.msra.mxu1 %v12146_v9 }
 0xa9d   : > { %10339 = vmatprep.subr.mxu1 %v11048_v28  ;;  %v5544_v34 = vsub.f32 %v5542_v46, %v5543_v33 }
 0xa9e   : > { %10340 = vmatpush3.msra.mxu1 %v12150_v32 }
 0xa9f   : > { %10341 = vmatprep.subr.mxu1 %v11048_v28  ;;  %v5545_v35 = vand.u32 4294901760, %v5544_v34 }
 0xaa0   : > { %10342 = vmatpush3.msra.mxu1 %v12153_v20 }
 0xaa1   : > { %10344 = vmatmul.mubr.f32.vlgmr.msra.gmra.mxu1 %v5543_v33  ;;  %10357 = vmatprep.subr.mxu1 %v11048_v28 }
 0xaa2   : > { %10311 = vmatmul.mubr.f32.vlgmr.msra.gmra.mxu0 %v5545_v35  ;;  %10358 = vmatpush3.msra.mxu1 %v5497_v61 }
 0xaa3   : > { %10325 = vmatpush3.msra.mxu0 %v12158_v23  ;;  %10359 = vmatprep.subr.mxu1 %v11048_v28 }
 0xaa4   : > { %10326 = vmatprep.subr.mxu0 %v11048_v28  ;;  %10360 = vmatpush3.msra.mxu1 %v12146_v9 }
 0xaa5   : > { %10327 = vmatpush3.msra.mxu0 %v12162_v24  ;;  %10361 = vmatprep.subr.mxu1 %v11048_v28 }
 0xaa6   : > { %10328 = vmatprep.subr.mxu0 %v11048_v28  ;;  %10362 = vmatpush3.msra.mxu1 %v12150_v32  ;;  %v5992_v32 = vld [vmem:[#allocation10 + $0x50] sm:$0xff] (%p5458_p13) }
 0xaa7   : > { %10329 = vmatpush3.msra.mxu0 %v12168_v22  ;;  %10363 = vmatprep.subr.mxu1 %v11048_v28  ;;  %v12262_v24 = vand.u32 (%p5458_p13), 4294901760, %v5992_v32 }
 0xaa8   : > { %10330 = vmatprep.subr.mxu0 %v11048_v28  ;;  %10332 = vmatprep.mubr.msk.f32.mxu0 %vm11050_vm11, %v11048_v28 }
 0xaa9   : > { %10331 = vmatpush3.msra.mxu0 %v12172_v25  ;;  %10364 = vmatpush3.msra.mxu1 %v12153_v20  ;;  %v5991_v20 = vld [vmem:[#allocation10 + $0x48] sm:$0xff] (%p5458_p13)  ;;  %v5990_v25 = vld [vmem:[#allocation10 + $0x40] sm:$0xff] (%p5458_p13)  ;;  %v12273_v14 = vsub.f32 (%p5458_p13), %v5992_v32, %v12262_v24 }
 0xaaa   : > { %10365 = vmatprep.mubr.msk.f32.mxu1 %vm11050_vm11, %v11048_v28  ;;  %10333 = vmatmul.mubr.f32.vlgmr.msra.gmra.mxu0 %v5542_v46  ;;  %v12264_v22 = vand.u32 (%p5458_p13), 4294901760, %v5991_v20 }
 0xaab   : > { %10346 = vmatprep.subr.mxu0 %v11048_v28  ;;  %10366 = vmatmul.mubr.f32.vlgmr.msra.gmra.mxu1 %v5541_v42  ;;  %v12287_v5 = vand.u32 (%p5458_p13), 4294901760, %v12273_v14 }
 0xaac   : > { %10347 = vmatpush3.msra.mxu0 %v5578_v26  ;;  %10354 = vmatprep.mubr.msk.f32.mxu0 %vm11050_vm11, %v11048_v28  ;;  %v12276_v15 = vsub.f32 (%p5458_p13), %v5991_v20, %v12264_v22 }
 0xaad   : > { %10348 = vmatprep.subr.mxu0 %v11048_v28 }
 0xaae   : > { %10349 = vmatpush3.msra.mxu0 %v5585_v2  ;;  %v12266_v2 = vand.u32 (%p5458_p13), 4294901760, %v5990_v25  ;;  %v12290_v6 = vand.u32 (%p5458_p13), 4294901760, %v12276_v15 }
 0xaaf   : > { %10350 = vmatprep.subr.mxu0 %v11048_v28 }
 0xab0   : > { %10351 = vmatpush3.msra.mxu0 %v5592_v30  ;;  %v12280_v40 = vsub.f32 (%p5458_p13), %v5990_v25, %v12266_v2 }
 0xab1   : > { %10352 = vmatprep.subr.mxu0 %v11048_v28  ;;  %v5993_v28 = vld [vmem:[#allocation10 + $0x58] sm:$0xff] (%p5458_p13) }
 0xab2   : > { %10353 = vmatpush3.msra.mxu0 %v5599_v53  ;;  %v12260_v23 = vand.u32 (%p5458_p13), 4294901760, %v5993_v28 }
 0xab3   : > { %10355 = vmatmul.mubr.f32.vlgmr.msra.gmra.mxu0 %v5541_v42  ;;  %v12294_v42 = vand.u32 (%p5458_p13), 4294901760, %v12280_v40 }
 0xab4   :  { %10368 = vmatprep.subr.mxu0 (%p5458_p13), %v12260_v23  ;;  %v12270_v31 = vsub.f32 (%p5458_p13), %v5993_v28, %v12260_v23 }
 0xab5   :  { %10369 = vmatpush3.msra.mxu0 (%p5458_p13), %v12260_v23 }
 0xab6   :  { %v12283_v4 = vand.u32 (%p5458_p13), 4294901760, %v12270_v31  ;;  %10370 = vmatprep.subr.mxu0 (%p5458_p13), %v12262_v24 }
 0xab7   :  { %10371 = vmatpush3.msra.mxu0 (%p5458_p13), %v12262_v24 }
 0xab8   :  { %v6183_v35 = vsub.f32 (%p5458_p13), %v12270_v31, %v12283_v4  ;;  %10372 = vmatprep.subr.mxu0 (%p5458_p13), %v12264_v22 }
 0xab9   :  { %10373 = vmatpush3.msra.mxu0 (%p5458_p13), %v12264_v22 }
 0xaba   :  { %10374 = vmatprep.subr.mxu0 (%p5458_p13), %v12266_v2 }
 0xabb   :  { %10375 = vmatpush3.msra.mxu0 (%p5458_p13), %v12266_v2 }
 0xabc   :  { %10390 = vmatprep.subr.mxu0 (%p5458_p13), %v12270_v31 }
 0xb59   : > { %v5638_v36 = vpop.f32.mrf.mxu1 }
 0xb5b   : > { %v10323_v37 = vpop.f32.mrf.mxu1 }
 0xb5c   :  { %v6197_v37 = vsub.f32 (%p5458_p13), %v12276_v15, %v12290_v6 }
 0xb61   : > { %v5795_v38 = vpop.f32.mrf.mxu1 }
 0xb62   : > { %v5547_v52 = vpop.f32.mrf.mxu0 }
 0xb63   : > { %v10345_v39 = vpop.f32.mrf.mxu1  ;;  %v5639_v48 = vadd.f32 %v5638_v36, %v5547_v52  ;;  %v6190_v36 = vsub.f32 (%p5458_p13), %v12273_v14, %v12287_v5 }
 0xb64   : > { %v10312_v43 = vpop.f32.mrf.mxu0 }
 0xb6a   : > { %v5718_v45 = vpop.f32.mrf.mxu0 }
 0xb6b   : > { %v5953_v47 = vpop.f32.mrf.mxu1  ;;  %v5719_v55 = vadd.f32 %v5718_v45, %v5639_v48 }
 0xb6c   : > { %v10334_v49 = vpop.f32.mrf.mxu0 }
 0xb6d   : > { %v10367_v50 = vpop.f32.mrf.mxu1  ;;  %v5796_v58 = vadd.f32 %v5795_v38, %v5719_v55 }
 0xb73   : > { %v5878_v59 = vpop.f32.mrf.mxu0 }
 0xb74   : > { %v5879_v3 = vadd.f32 %v5878_v59, %v5796_v58  ;;  %v12309_v59 = vand.u32 (%p5458_p13), 4294901760, %v6183_v35 }
 0xb75   : > { %v10356_v60 = vpop.f32.mrf.mxu0 }
 0xb76   : > { %v5954_v63 = vadd.f32 %v5953_v47, %v5879_v3  ;;  %v6204_v47 = vsub.f32 (%p5458_p13), %v12280_v40, %v12294_v42  ;;  %v12311_v3 = vand.u32 (%p5458_p13), 4294901760, %v6190_v36  ;;  %10379 = vmatprep.subr.mxu1 (%p5458_p13), %v12309_v59 }
 0xb77   :  { %10380 = vmatpush3.msra.mxu1 (%p5458_p13), %v12309_v59 }
 0xb78   : > { %v5957_v8 = vadd.f32 %v5954_v63, %v5466_v44  ;;  %v12313_v44 = vand.u32 (%p5458_p13), 4294901760, %v6197_v37  ;;  %10381 = vmatprep.subr.mxu1 (%p5458_p13), %v12311_v3 }
 0xb79   :  { %10382 = vmatpush3.msra.mxu1 (%p5458_p13), %v12311_v3 }
 0xb7a   : > { %10791 = vtanh.f32 %v5957_v8  ;;  %v5958_v11 = vsub.f32 0.0, %v5957_v8  ;;  %v12317_v8 = vand.u32 (%p5458_p13), 4294901760, %v6204_v47  ;;  %10383 = vmatprep.subr.mxu1 (%p5458_p13), %v12313_v44 }
 0xb7b   :  { %10384 = vmatpush3.msra.mxu1 (%p5458_p13), %v12313_v44 }
 0xb7c   : > { %v5959_v12 = vmul.f32 1.442695, %v5958_v11  ;;  %10385 = vmatprep.subr.mxu1 (%p5458_p13), %v12317_v8 }
 0xb7d   :  { %10386 = vmatpush3.msra.mxu1 (%p5458_p13), %v12317_v8 }
 0xb7e   : > { %10793 = vpow2.f32 %v5959_v12  ;;  %10401 = vmatprep.subr.mxu1 (%p5458_p13), %v12260_v23 }
 0xb87   : > { %v10792_v10 = vpop.eup %10791 }
 0xb88   : > { %5967 = vrot.lane.b32.xlu0 %v10792_v10, %s11051_s10 }
 0xb8b   : > { %v10794_v13 = vpop.eup %10793 }
 0xb8c   : > { %v5961_v16 = vadd.f32 1.0, %v10794_v13 }
 0xb8e   : > { %10795 = vrcp.f32 %v5961_v16 }
 0xb9b   : > { %v10796_v17 = vpop.eup %10795 }
 0xb9c   : > { %v5965_v0 = vmul.f32 %v11010_v1, %v10796_v17 }
 0xbfa   : > { %v5968_v18 = vpop.permute.xlu0 %5967 }
 0xbfb   : > { %v5970_v54 = vmul.f32 %v10796_v17, %v5968_v18 }
 0xbfd   : > { %5972 = vrot.lane.b32.xlu1 %v5970_v54, %s11049_s28 }
 0xc6f   : > { %v5973_v62 = vpop.permute.xlu1 %5972 }
 0xc70   : > { %v5975_v1 = vadd.f32 %v5973_v62, %v5965_v0  }
 0xc72   : > { %10797 = vtanh.f32 %v5975_v1 }
 0xc7f   : > { %v10798_v56 = vpop.eup %10797 }
 0xc80   : > { %5978 = vrot.lane.b32.xlu1 %v10798_v56, %s11051_s10 }
 0xcf2   : > { %v5979_v61 = vpop.permute.xlu1 %5978 }
 0xcf3   : > { %v5981_v56 = vmul.f32 %v10796_v17, %v5979_v61  }
 0xcf5   : > { %5983 = vrot.lane.b32.xlu0 %v5981_v56, %s11049_s28 }
 0xd64   :  { %5460 = sbr.rel (!%p5458_p13) target bundleno = 2593 (0xa21), region = 141 }
 0xd67   : > { %v5984_v9 = vpop.permute.xlu0 %5983 }
 0xd68   : > { %5988 = vst.msk [vmem:[%s5986_s0] sm:$0x3] %vm1985_vm2, %v5984_v9 }
 0xd6f   :  { %v5996_v26 = vld [vmem:[#allocation2] sm:$0x1]  ;;  %v5997_v30 = vld [vmem:[#allocation2 + $0x2] sm:$0x1]  ;;  %v5998_v53 = vld [vmem:[#allocation2 + $0x4] sm:$0x1] }
 0xd70   :  { %v5999_v7 = vld [vmem:[#allocation2 + $0x6] sm:$0x1]  ;;  %v6000_v19 = vld [vmem:[#allocation2 + $0x8] sm:$0x1]  ;;  %v6001_v1 = vld [vmem:[#allocation2 + $0xa] sm:$0x1] }
 0xd71   :  { %v6002_v51 = vld [vmem:[#allocation2 + $0xc] sm:$0x1]  ;;  %v6034_v57 = vrot.slane %v5997_v30, 7  ;;  %v6036_v27 = vrot.slane %v5998_v53, 6  ;;  %v6003_v29 = vld [vmem:[#allocation2 + $0xe] sm:$0x1] }
 0xd72   :  { %v6038_v41 = vrot.slane %v5999_v7, 5  ;;  %v6040_v33 = vrot.slane %v6000_v19, 4  ;;  %v6042_v34 = vrot.slane %v6001_v1, 3  ;;  %v6004_v52 = vld [vmem:[#allocation2 + $0x10] sm:$0x1]  ;;  %v6044_v49 = vrot.slane %v6002_v51, 2 }
 0xd73   :  { %v6035_v46 = vsel %vm2031_vm3, %v6034_v57, %v5996_v26  ;;  %v6005_v39 = vld [vmem:[#allocation2 + $0x12] sm:$0x1]  ;;  %v6006_v43 = vld [vmem:[#allocation2 + $0x14] sm:$0x1]  ;;  %v6007_v45 = vld [vmem:[#allocation2 + $0x16] sm:$0x1] }
 0xd74   :  { %v6037_v38 = vsel %vm2034_vm4, %v6036_v27, %v6035_v46  ;;  %v6046_v50 = vrot.slane %v6003_v29, 1  ;;  %v6008_v55 = vld [vmem:[#allocation2 + $0x18] sm:$0x1]  ;;  %v6009_v58 = vld [vmem:[#allocation2 + $0x1a] sm:$0x1]  ;;  %v6048_v12 = vrot.slane %v6005_v39, 7 }
 0xd75   :  { %v6039_v48 = vsel %vm2037_vm5, %v6038_v41, %v6037_v38  ;;  %v6010_v63 = vld [vmem:[#allocation2 + $0x1c] sm:$0x1]  ;;  %v6011_v11 = vld [vmem:[#allocation2 + $0x1e] sm:$0x1]  ;;  %v6050_v13 = vrot.slane %v6006_v43, 6  ;;  %v6052_v17 = vrot.slane %v6007_v45, 5 }
 0xd76   :  { %v6041_v60 = vsel %vm2040_vm6, %v6040_v33, %v6039_v48  ;;  %v6054_v18 = vrot.slane %v6008_v55, 4  ;;  %v6726_v54 = vld [vmem:[#allocation2 + $0x1] sm:$0x1]  ;;  %v6727_v0 = vld [vmem:[#allocation2 + $0x3] sm:$0x1]  ;;  %v6049_v56 = vsel %vm2031_vm3, %v6048_v12, %v6004_v52  ;;  %v6056_v61 = vrot.slane %v6009_v58, 3 }
 0xd77   :  { %v6043_v10 = vsel %vm2043_vm7, %v6042_v34, %v6041_v60  ;;  %v6058_v9 = vrot.slane %v6010_v63, 2  ;;  %v6728_v28 = vld [vmem:[#allocation2 + $0x5] sm:$0x1]  ;;  %v6729_v32 = vld [vmem:[#allocation2 + $0x7] sm:$0x1]  ;;  %v6051_v25 = vsel %vm2034_vm4, %v6050_v13, %v6049_v56  ;;  %v6758_v53 = vrot.slane %v6727_v0, 7 }
 0xd78   :  { %v6045_v16 = vsel %vm2046_vm8, %v6044_v49, %v6043_v10  ;;  %v6730_v26 = vld [vmem:[#allocation2 + $0x9] sm:$0x1]  ;;  %v6731_v30 = vld [vmem:[#allocation2 + $0xb] sm:$0x1]  ;;  %v6053_v19 = vsel %vm2037_vm5, %v6052_v17, %v6051_v25  ;;  %v6060_v1 = vrot.slane %v6011_v11, 1  ;;  %v6760_v51 = vrot.slane %v6728_v28, 6 }
 0xd79   :  { %v6047_v62 = vsel %vm2049_vm9, %v6046_v50, %v6045_v16  ;;  %v6055_v57 = vsel %vm2040_vm6, %v6054_v18, %v6053_v19  ;;  %v6732_v27 = vld [vmem:[#allocation2 + $0xd] sm:$0x1]  ;;  %v6759_v29 = vsel %vm2031_vm3, %v6758_v53, %v6726_v54  ;;  %v6762_v41 = vrot.slane %v6729_v32, 5  ;;  %v6735_v33 = vld [vmem:[#allocation2 + $0x13] sm:$0x1] }
 0xd7a   :  { %v6062_v20 = vsel %vm114_vm0, %v6047_v62, 0  ;;  %v6764_v46 = vrot.slane %v6730_v26, 4  ;;  %v6057_v35 = vsel %vm2043_vm7, %v6056_v61, %v6055_v57  ;;  %v6761_v36 = vsel %vm2034_vm4, %v6760_v51, %v6759_v29  ;;  %v6736_v38 = vld [vmem:[#allocation2 + $0x15] sm:$0x1]  ;;  %v6737_v52 = vld [vmem:[#allocation2 + $0x17] sm:$0x1] }
 0xd7b   :  { %v12331_v7 = vand.u32 4294901760, %v6062_v20  ;;  %v6766_v37 = vrot.slane %v6731_v30, 3  ;;  %v6059_v39 = vsel %vm2046_vm8, %v6058_v9, %v6057_v35  ;;  %v6763_v43 = vsel %vm2037_vm5, %v6762_v41, %v6761_v36  ;;  %v6734_v45 = vld [vmem:[#allocation2 + $0x11] sm:$0x1]  ;;  %v6738_v50 = vld [vmem:[#allocation2 + $0x19] sm:$0x1] }
 0xd7c   :  { %v6061_v48 = vsel %vm2049_vm9, %v6060_v1, %v6059_v39  ;;  %v6765_v49 = vsel %vm2040_vm6, %v6764_v46, %v6763_v43  ;;  %v6739_v55 = vld [vmem:[#allocation2 + $0x1b] sm:$0x1]  ;;  %v6772_v58 = vrot.slane %v6735_v33, 7  ;;  %v6733_v63 = vld [vmem:[#allocation2 + $0xf] sm:$0x1]  ;;  %v6768_v10 = vrot.slane %v6732_v27, 2 }
 0xd7d   :  { %v6136_v34 = vsub.f32 %v6062_v20, %v12331_v7  ;;  %10387 = vmatprep.mubr.f32.mxu1 %v12331_v7  ;;  %v6064_v60 = vsel %vm114_vm0, %v6061_v48, 0  ;;  %v6774_v11 = vrot.slane %v6736_v38, 6  ;;  %v6776_v12 = vrot.slane %v6737_v52, 5  ;;  %v6740_v18 = vld [vmem:[#allocation2 + $0x1d] sm:$0x1] }
 0xd7e   :  { %v12350_v16 = vand.u32 4294901760, %v6064_v60  ;;  %v6767_v17 = vsel %vm2043_vm7, %v6766_v37, %v6765_v49  ;;  %v6773_v54 = vsel %vm2031_vm3, %v6772_v58, %v6734_v45  ;;  %v6741_v0 = vld [vmem:[#allocation2 + $0x1f] sm:$0x1]  ;;  %v6778_v56 = vrot.slane %v6738_v50, 4 }
 0xd7f   :  { %v6137_v47 = vand.u32 4294901760, %v6136_v34  ;;  %v6775_v62 = vsel %vm2034_vm4, %v6774_v11, %v6773_v54  ;;  %v6780_v61 = vrot.slane %v6739_v55, 3  ;;  %v6770_v32 = vrot.slane %v6733_v63, 1 }
 0xd80   :  { %v6146_v28 = vsub.f32 %v6064_v60, %v12350_v16  ;;  %10388 = vmatmul.mubr.f32.vlgmr.msra.gmra.mxu1 %v12350_v16  ;;  %v6777_v20 = vsel %vm2037_vm5, %v6776_v12, %v6775_v62  ;;  %v6769_v25 = vsel %vm2046_vm8, %v6768_v10, %v6767_v17  ;;  %v6782_v30 = vrot.slane %v6740_v18, 2 }
 0xd81   :  { %v6138_v13 = vsub.f32 %v6136_v34, %v6137_v47  ;;  %10402 = vmatpush3.msra.mxu1 %v12260_v23  ;;  %10409 = vmatprep.mubr.f32.mxu1 %v6137_v47  ;;  %v6779_v26 = vsel %vm2040_vm6, %v6778_v56, %v6777_v20  ;;  %v6784_v1 = vrot.slane %v6741_v0, 1  ;;  %v6771_v27 = vsel %vm2049_vm9, %v6770_v32, %v6769_v25 }
 0xd82   :  { %v6147_v53 = vand.u32 4294901760, %v6146_v28  ;;  %10403 = vmatprep.subr.mxu1 %v12262_v24  ;;  %v6781_v19 = vsel %vm2043_vm7, %v6780_v61, %v6779_v26  ;;  %v6786_v46 = vsel %vm114_vm0, %v6771_v27, 0 }
 0xd83   :  { %v6139_v9 = vand.u32 4294901760, %v6138_v13  ;;  %10404 = vmatpush3.msra.mxu1 %v12262_v24  ;;  %v6783_v51 = vsel %vm2046_vm8, %v6782_v30, %v6781_v19  ;;  %v12376_v35 = vand.u32 4294901760, %v6786_v46 }
 0xd84   :  { %v6148_v57 = vsub.f32 %v6146_v28, %v6147_v53  ;;  %10405 = vmatprep.subr.mxu1 %v12264_v22  ;;  %v6785_v41 = vsel %vm2049_vm9, %v6784_v1, %v6783_v51 }
 0xd85   :  { %10376 = vmatprep.mubr.f32.mxu0 %v6139_v9  ;;  %10406 = vmatpush3.msra.mxu1 %v12264_v22  ;;  %v6788_v33 = vsel %vm114_vm0, %v6785_v41, 0 }
 0xd86   :  { %v6149_v29 = vand.u32 4294901760, %v6148_v57  ;;  %10407 = vmatprep.subr.mxu1 %v12266_v2  ;;  %v12382_v36 = vand.u32 4294901760, %v6788_v33 }
 0xd87   :  { %10408 = vmatpush3.msra.mxu1 %v12266_v2 }
 0xd88   :  { %10377 = vmatmul.mubr.f32.vlgmr.msra.gmra.mxu0 %v6149_v29  ;;  %10423 = vmatprep.subr.mxu1 %v12260_v23  ;;  %v6870_v37 = vsub.f32 %v6788_v33, %v12382_v36 }
 0xd89   :  { %10391 = vmatpush3.msra.mxu0 %v12270_v31  ;;  %10398 = vmatprep.mubr.f32.mxu0 %v6136_v34  ;;  %v12389_v34 = vsub.f32 %v6786_v46, %v12376_v35 }
 0xd8a   :  { %10392 = vmatprep.subr.mxu0 %v12273_v14  ;;  %10410 = vmatmul.mubr.f32.vlgmr.msra.gmra.mxu1 %v6147_v53  ;;  %v6871_v52 = vand.u32 4294901760, %v6870_v37 }
 0xd8b   :  { %10393 = vmatpush3.msra.mxu0 %v12273_v14  ;;  %10424 = vmatpush3.msra.mxu1 %v12260_v23  ;;  %v6861_v38 = vand.u32 4294901760, %v12389_v34 }
 0xd8c   :  { %10394 = vmatprep.subr.mxu0 %v12276_v15  ;;  %10425 = vmatprep.subr.mxu1 %v12262_v24 }
 0xd8d   :  { %10395 = vmatpush3.msra.mxu0 %v12276_v15  ;;  %10426 = vmatpush3.msra.mxu1 %v12262_v24  ;;  %v6862_v39 = vsub.f32 %v12389_v34, %v6861_v38 }
 0xd8e   :  { %10396 = vmatprep.subr.mxu0 %v12280_v40  ;;  %10427 = vmatprep.subr.mxu1 %v12264_v22 }
 0xd8f   :  { %10397 = vmatpush3.msra.mxu0 %v12280_v40  ;;  %10428 = vmatpush3.msra.mxu1 %v12264_v22  ;;  %v6863_v43 = vand.u32 4294901760, %v6862_v39 }
 0xd90   :  { %10399 = vmatmul.mubr.f32.vlgmr.msra.gmra.mxu0 %v6146_v28  ;;  %10412 = vmatprep.subr.mxu0 %v12283_v4 }
 0xd91   :  { %10413 = vmatpush3.msra.mxu0 %v12283_v4  ;;  %10429 = vmatprep.subr.mxu1 %v12266_v2 }
 0xd92   :  { %10414 = vmatprep.subr.mxu0 %v12287_v5  ;;  %10420 = vmatprep.mubr.f32.mxu0 %v12331_v7 }
 0xd93   :  { %10415 = vmatpush3.msra.mxu0 %v12287_v5  ;;  %10430 = vmatpush3.msra.mxu1 %v12266_v2 }
 0xd94   :  { %10416 = vmatprep.subr.mxu0 %v12290_v6  ;;  %10431 = vmatprep.mubr.f32.mxu1 %v12331_v7  ;;  %v6872_v7 = vsub.f32 %v6870_v37, %v6871_v52 }
 0xd95   :  { %10417 = vmatpush3.msra.mxu0 %v12290_v6  ;;  %10445 = vmatprep.subr.mxu1 %v12309_v59 }
 0xd96   :  { %10418 = vmatprep.subr.mxu0 %v12294_v42  ;;  %10432 = vmatmul.mubr.f32.vlgmr.msra.gmra.mxu1 %v12350_v16 }
 0xd97   :  { %10419 = vmatpush3.msra.mxu0 %v12294_v42  ;;  %10446 = vmatpush3.msra.mxu1 %v12309_v59  ;;  %v6873_v59 = vand.u32 4294901760, %v6872_v7 }
 0xd98   :  { %10421 = vmatmul.mubr.f32.vlgmr.msra.gmra.mxu0 %v12350_v16  ;;  %10434 = vmatprep.subr.mxu0 %v12260_v23 }
 0xd99   :  { %10435 = vmatpush3.msra.mxu0 %v12260_v23  ;;  %10447 = vmatprep.subr.mxu1 %v12311_v3 }
 0xd9a   :  { %10436 = vmatprep.subr.mxu0 %v12262_v24  ;;  %10448 = vmatpush3.msra.mxu1 %v12311_v3 }
 0xd9b   :  { %10437 = vmatpush3.msra.mxu0 %v12262_v24  ;;  %10449 = vmatprep.subr.mxu1 %v12313_v44 }
 0xd9c   :  { %10438 = vmatprep.subr.mxu0 %v12264_v22  ;;  %10450 = vmatpush3.msra.mxu1 %v12313_v44 }
 0xd9d   :  { %10439 = vmatpush3.msra.mxu0 %v12264_v22  ;;  %10451 = vmatprep.subr.mxu1 %v12317_v8 }
 0xd9e   :  { %10440 = vmatprep.subr.mxu0 %v12266_v2  ;;  %10442 = vmatprep.mubr.f32.mxu0 %v6863_v43 }
 0xd9f   :  { %10441 = vmatpush3.msra.mxu0 %v12266_v2  ;;  %10452 = vmatpush3.msra.mxu1 %v12317_v8 }
 0xda0   :  { %10443 = vmatmul.mubr.f32.vlgmr.msra.gmra.mxu0 %v6873_v59  ;;  %10453 = vmatprep.mubr.f32.mxu1 %v12376_v35 }
 0xda1   :  { %10456 = vmatprep.subr.mxu0 %v12270_v31  ;;  %10467 = vmatprep.subr.mxu1 %v12260_v23 }
 0xda2   :  { %10454 = vmatmul.mubr.f32.vlgmr.msra.gmra.mxu1 %v12382_v36  ;;  %10457 = vmatpush3.msra.mxu0 %v12270_v31  ;;  %v12471_v31 = vld [vmem:[#allocation12 + $0x58] sm:$0xff] }
 0xda3   :  { %10468 = vmatpush3.msra.mxu1 %v12260_v23  ;;  %10458 = vmatprep.subr.mxu0 %v12273_v14 }
 0xda4   :  { %10469 = vmatprep.subr.mxu1 %v12262_v24  ;;  %10459 = vmatpush3.msra.mxu0 %v12273_v14 }
 0xda5   :  { %10470 = vmatpush3.msra.mxu1 %v12262_v24  ;;  %10460 = vmatprep.subr.mxu0 %v12276_v15 }
 0xda6   :  { %10471 = vmatprep.subr.mxu1 %v12264_v22  ;;  %10461 = vmatpush3.msra.mxu0 %v12276_v15  ;;  %v12476_v15 = vld [vmem:[%s12768_s6 + $0x2] ss:$0 sm:$0xff]  ;;  %s12510_s6 = smov 0  }
 0xda7   :  { %10472 = vmatpush3.msra.mxu1 %v12264_v22  ;;  %10462 = vmatprep.subr.mxu0 %v12280_v40 }
 0xda8   :  { %10473 = vmatprep.subr.mxu1 %v12266_v2  ;;  %10463 = vmatpush3.msra.mxu0 %v12280_v40 }
 0xda9   :  { %10464 = vmatprep.mubr.f32.mxu0 %v12389_v34  ;;  %10474 = vmatpush3.msra.mxu1 %v12266_v2 }
 0xdaa   :  { %10465 = vmatmul.mubr.f32.vlgmr.msra.gmra.mxu0 %v6870_v37  ;;  %10475 = vmatprep.mubr.f32.mxu1 %v6861_v38 }
 0xdab   :  { %10478 = vmatprep.subr.mxu0 %v12283_v4  ;;  %10489 = vmatprep.subr.mxu1 %v12260_v23 }
 0xdac   :  { %10476 = vmatmul.mubr.f32.vlgmr.msra.gmra.mxu1 %v6871_v52  ;;  %10479 = vmatpush3.msra.mxu0 %v12283_v4 }
 0xdad   :  { %10490 = vmatpush3.msra.mxu1 %v12260_v23  ;;  %10480 = vmatprep.subr.mxu0 %v12287_v5  ;;  %v12465_v23 = vld [vmem:[#allocation12 + $0x40] sm:$0xff] }
 0xdae   :  { %10491 = vmatprep.subr.mxu1 %v12262_v24  ;;  %10481 = vmatpush3.msra.mxu0 %v12287_v5 }
 0xdaf   :  { %10492 = vmatpush3.msra.mxu1 %v12262_v24  ;;  %10482 = vmatprep.subr.mxu0 %v12290_v6  ;;  %v12467_v24 = vld [vmem:[#allocation12 + $0x48] sm:$0xff] }
 0xdb0   :  { %10493 = vmatprep.subr.mxu1 %v12264_v22  ;;  %10483 = vmatpush3.msra.mxu0 %v12290_v6 }
 0xdb1   :  { %10494 = vmatpush3.msra.mxu1 %v12264_v22  ;;  %10484 = vmatprep.subr.mxu0 %v12294_v42  ;;  %v12469_v22 = vld [vmem:[#allocation12 + $0x50] sm:$0xff] }
 0xdb2   :  { %10495 = vmatprep.subr.mxu1 %v12266_v2  ;;  %10485 = vmatpush3.msra.mxu0 %v12294_v42 }
 0xdb3   :  { %10486 = vmatprep.mubr.f32.mxu0 %v12376_v35  ;;  %10496 = vmatpush3.msra.mxu1 %v12266_v2 }
 0xdb4   :  { %10497 = vmatprep.mubr.f32.mxu1 %v12376_v35  ;;  %10487 = vmatmul.mubr.f32.vlgmr.msra.gmra.mxu0 %v12382_v36 }
 0xdb5   :  { %10498 = vmatmul.mubr.f32.vlgmr.msra.gmra.mxu1 %v12382_v36 }
 0xe40   :  { %v10389_v2 = vpop.f32.mrf.mxu1 }
 0xe42   :  { %v6242_v5 = vpop.f32.mrf.mxu1 }
 0xe48   :  { %v10378_v14 = vpop.f32.mrf.mxu0 }
 0xe49   :  { %v6152_v4 = vadd.f32 %v10378_v14, %v12476_v15 }
 0xe4a   :  { %v6141_v40 = vpop.f32.mrf.mxu0  ;;  %v10411_v3 = vpop.f32.mrf.mxu1 }
 0xe4b   :  { %v6142_v6 = vadd.f32 %v12476_v15, %v6141_v40  ;;  %v6249_v44 = vadd.f32 %v10389_v2, %v6152_v4 }
 0xe4c   :  { %v6412_v48 = vpop.f32.mrf.mxu1 }
 0xe4d   :  { %v6243_v45 = vadd.f32 %v6242_v5, %v6142_v6 }
 0xe50   :  { %v10400_v42 = vpop.f32.mrf.mxu0 }
 0xe51   :  { %v6336_v47 = vadd.f32 %v10400_v42, %v6249_v44 }
 0xe52   :  { %v6328_v8 = vpop.f32.mrf.mxu0 }
 0xe53   :  { %v6329_v49 = vadd.f32 %v6328_v8, %v6243_v45  ;;  %v6421_v55 = vadd.f32 %v10411_v3, %v6336_v47 }
 0xe55   :  { %v6413_v60 = vadd.f32 %v6412_v48, %v6329_v49 }
 0xe56   :  { %v10433_v50 = vpop.f32.mrf.mxu1 }
 0xe58   :  { %v10422_v58 = vpop.f32.mrf.mxu0  ;;  %v6584_v11 = vpop.f32.mrf.mxu1 }
 0xe59   :  { %v6510_v63 = vadd.f32 %v10422_v58, %v6421_v55 }
 0xe5a   :  { %v6503_v10 = vpop.f32.mrf.mxu0 }
 0xe5b   :  { %v6591_v12 = vadd.f32 %v10433_v50, %v6510_v63  ;;  %v6504_v13 = vadd.f32 %v6503_v10, %v6413_v60 }
 0xe5d   :  { %v6645_v16 = vcombine.high %v6591_v12, %v6591_v12  ;;  %v6652_v17 = vrot.slane %v6591_v12, %v11348_v21  ;;  %v6585_v18 = vadd.f32 %v6584_v11, %v6504_v13 }
 0xe5f   :  { %v6659_v54 = vrot.slane %v6645_v16, %v11348_v21  ;;  %v6660_v0 = vcombine.high %v6652_v17, %v6652_v17  ;;  %v6668_v62 = vrot.slane %v6652_v17, %v11348_v21  ;;  %9305 = vst.sshfl [vmem:[#allocation3 + $0x10] sm:$0x1 pattern:$0x73625140] %v6652_v17  ;;  %v6596_v56 = vcombine.high %v6585_v18, %v6585_v18 }
 0xe60   :  { %v6603_v61 = vrot.slane %v6585_v18, %v11348_v21  ;;  %v10444_v41 = vpop.f32.mrf.mxu0 }
 0xe61   :  { %v6661_v9 = vcombine.high %v6659_v54, %v6659_v54  ;;  %v6675_v28 = vrot.slane %v6659_v54, %v11348_v21  ;;  %v6682_v32 = vrot.slane %v6660_v0, %v11348_v21  ;;  %v6690_v20 = vcombine.high %v6668_v62, %v6668_v62  ;;  %9306 = vst.sshfl [vmem:[#allocation3 + $0x12] sm:$0x1 pattern:$0x73625140] %v6660_v0 }
 0xe62   :  { %9307 = vst.sshfl [vmem:[#allocation3 + $0x18] sm:$0x1 pattern:$0x73625140] %v6659_v54  ;;  %v6610_v25 = vrot.slane %v6596_v56, %v11348_v21  ;;  %v6611_v26 = vcombine.high %v6603_v61, %v6603_v61  ;;  %v6619_v30 = vrot.slane %v6603_v61, %v11348_v21  ;;  %v10455_v37 = vpop.f32.mrf.mxu1  ;;  %v6865_v38 = vpop.f32.mrf.mxu0  ;;  %v6876_v52 = vadd.f32 %v10444_v41, %v12476_v15 }
 0xe63   :  { %9301 = vst.sshfl [vmem:[#allocation3] sm:$0x1 pattern:$0x73625140] %v6603_v61  ;;  %v6689_v53 = vrot.slane %v6661_v9, %v11348_v21  ;;  %v6691_v19 = vcombine.high %v6675_v28, %v6675_v28  ;;  %v6692_v1 = vcombine.high %v6682_v32, %v6682_v32  ;;  %6720 = vst [vmem:[#allocation3 + $0x14] sm:$0x1] %v6690_v20 }
 0xe64   :  { %9308 = vst.sshfl [vmem:[#allocation3 + $0x1a] sm:$0x1 pattern:$0x73625140] %v6661_v9  ;;  %v6612_v51 = vcombine.high %v6610_v25, %v6610_v25  ;;  %v6626_v57 = vrot.slane %v6610_v25, %v11348_v21  ;;  %v6633_v27 = vrot.slane %v6611_v26, %v11348_v21  ;;  %v6641_v29 = vcombine.high %v6619_v30, %v6619_v30  ;;  %v6966_v43 = vpop.f32.mrf.mxu1 }
 0xe65   :  { %9302 = vst.sshfl [vmem:[#allocation3 + $0x2] sm:$0x1 pattern:$0x73625140] %v6611_v26  ;;  %v6693_v46 = vcombine.high %v6689_v53, %v6689_v53  ;;  %6721 = vst [vmem:[#allocation3 + $0x16] sm:$0x1] %v6692_v1  ;;  %v6866_v7 = vadd.f32 %v12476_v15, %v6865_v38  ;;  %v6973_v59 = vadd.f32 %v10455_v37, %v6876_v52 }
 0xe66   :  { %9303 = vst.sshfl [vmem:[#allocation3 + $0x8] sm:$0x1 pattern:$0x73625140] %v6610_v25  ;;  %6724 = vst [vmem:[#allocation3 + $0x1c] sm:$0x1] %v6691_v19  ;;  %v6640_v33 = vrot.slane %v6612_v51, %v11348_v21  ;;  %v6642_v35 = vcombine.high %v6626_v57, %v6626_v57  ;;  %v6643_v36 = vcombine.high %v6633_v27, %v6633_v27 }
 0xe67   :  { %6712 = vst [vmem:[#allocation3 + $0x4] sm:$0x1] %v6641_v29  ;;  %9304 = vst.sshfl [vmem:[#allocation3 + $0xa] sm:$0x1 pattern:$0x73625140] %v6612_v51  ;;  %v6967_v40 = vadd.f32 %v6966_v43, %v6866_v7 }
 0xe68   :  { %6725 = vst [vmem:[#allocation3 + $0x1e] sm:$0x1] %v6693_v46  ;;  %v6644_v34 = vcombine.high %v6640_v33, %v6640_v33  ;;  %6713 = vst [vmem:[#allocation3 + $0x6] sm:$0x1] %v6643_v36  ;;  %v12506_v51 = vmov 0.0   ;;  %v12508_v57 = vmov 0.0  }
 0xe69   :  { %6716 = vst [vmem:[#allocation3 + $0xc] sm:$0x1] %v6642_v35 }
 0xe6a   :  { %6717 = vst [vmem:[#allocation3 + $0xe] sm:$0x1] %v6644_v34  ;;  %v10466_v39 = vpop.f32.mrf.mxu0 }
 0xe6b   :  { %v7060_v4 = vadd.f32 %v10466_v39, %v6973_v59 }
 0xe6c   :  { %v10477_v14 = vpop.f32.mrf.mxu1  ;;  %v7052_v2 = vpop.f32.mrf.mxu0 }
 0xe6d   :  { %v7053_v5 = vadd.f32 %v7052_v2, %v6967_v40  ;;  %v7145_v42 = vadd.f32 %v10477_v14, %v7060_v4 }
 0xe6e   :  { %v7136_v6 = vpop.f32.mrf.mxu1 }
 0xe6f   :  { %v7137_v44 = vadd.f32 %v7136_v6, %v7053_v5 }
 0xe74   :  { %v10488_v3 = vpop.f32.mrf.mxu0 }
 0xe75   :  { %v7234_v8 = vadd.f32 %v10488_v3, %v7145_v42  ;;  %v10499_v45 = vpop.f32.mrf.mxu1 }
 0xe76   :  { %v7227_v47 = vpop.f32.mrf.mxu0 }
 0xe77   :  { %v7315_v48 = vadd.f32 %v10499_v45, %v7234_v8  ;;  %v7228_v49 = vadd.f32 %v7227_v47, %v7137_v44  ;;  %v7308_v50 = vpop.f32.mrf.mxu1 }
 0xe79   :  { %v7369_v55 = vcombine.high %v7315_v48, %v7315_v48  ;;  %v7376_v15 = vrot.slane %v7315_v48, %v11348_v21  ;;  %v7309_v58 = vadd.f32 %v7308_v50, %v7228_v49 }
 0xe7b   :  { %v7383_v60 = vrot.slane %v7369_v55, %v11348_v21  ;;  %v7384_v63 = vcombine.high %v7376_v15, %v7376_v15  ;;  %v7392_v10 = vrot.slane %v7376_v15, %v11348_v21  ;;  %9313 = vst.sshfl [vmem:[#allocation3 + $0x11] sm:$0x1 pattern:$0x73625140] %v7376_v15  ;;  %v7320_v11 = vcombine.high %v7309_v58, %v7309_v58 }
 0xe7c   :  { %v7327_v12 = vrot.slane %v7309_v58, %v11348_v21 }
 0xe7d   :  { %v7385_v13 = vcombine.high %v7383_v60, %v7383_v60  ;;  %v7399_v16 = vrot.slane %v7383_v60, %v11348_v21  ;;  %v7406_v17 = vrot.slane %v7384_v63, %v11348_v21  ;;  %v7414_v18 = vcombine.high %v7392_v10, %v7392_v10  ;;  %9314 = vst.sshfl [vmem:[#allocation3 + $0x13] sm:$0x1 pattern:$0x73625140] %v7384_v63 }
 0xe7e   :  { %9315 = vst.sshfl [vmem:[#allocation3 + $0x19] sm:$0x1 pattern:$0x73625140] %v7383_v60  ;;  %v7334_v54 = vrot.slane %v7320_v11, %v11348_v21  ;;  %v7335_v0 = vcombine.high %v7327_v12, %v7327_v12  ;;  %v7343_v62 = vrot.slane %v7327_v12, %v11348_v21 }
 0xe7f   :  { %9309 = vst.sshfl [vmem:[#allocation3 + $0x1] sm:$0x1 pattern:$0x73625140] %v7327_v12  ;;  %v7413_v56 = vrot.slane %v7385_v13, %v11348_v21  ;;  %v7415_v61 = vcombine.high %v7399_v16, %v7399_v16  ;;  %v7416_v9 = vcombine.high %v7406_v17, %v7406_v17  ;;  %7444 = vst [vmem:[#allocation3 + $0x15] sm:$0x1] %v7414_v18 }
 0xe80   :  { %9316 = vst.sshfl [vmem:[#allocation3 + $0x1b] sm:$0x1 pattern:$0x73625140] %v7385_v13  ;;  %v7336_v28 = vcombine.high %v7334_v54, %v7334_v54  ;;  %v7350_v32 = vrot.slane %v7334_v54, %v11348_v21  ;;  %v7357_v20 = vrot.slane %v7335_v0, %v11348_v21  ;;  %v7365_v25 = vcombine.high %v7343_v62, %v7343_v62 }
 0xe81   :  { %9310 = vst.sshfl [vmem:[#allocation3 + $0x3] sm:$0x1 pattern:$0x73625140] %v7335_v0  ;;  %v7417_v26 = vcombine.high %v7413_v56, %v7413_v56  ;;  %7445 = vst [vmem:[#allocation3 + $0x17] sm:$0x1] %v7416_v9 }
 0xe82   :  { %9311 = vst.sshfl [vmem:[#allocation3 + $0x9] sm:$0x1 pattern:$0x73625140] %v7334_v54  ;;  %7448 = vst [vmem:[#allocation3 + $0x1d] sm:$0x1] %v7415_v61  ;;  %v7364_v30 = vrot.slane %v7336_v28, %v11348_v21  ;;  %v7366_v53 = vcombine.high %v7350_v32, %v7350_v32  ;;  %v7367_v19 = vcombine.high %v7357_v20, %v7357_v20 }
 0xe83   :  { %7436 = vst [vmem:[#allocation3 + $0x5] sm:$0x1] %v7365_v25  ;;  %9312 = vst.sshfl [vmem:[#allocation3 + $0xb] sm:$0x1 pattern:$0x73625140] %v7336_v28 }
 0xe84   :  { %7449 = vst [vmem:[#allocation3 + $0x1f] sm:$0x1] %v7417_v26  ;;  %v7368_v1 = vcombine.high %v7364_v30, %v7364_v30  ;;  %7437 = vst [vmem:[#allocation3 + $0x7] sm:$0x1] %v7367_v19 }
 0xe85   :  { %7440 = vst [vmem:[#allocation3 + $0xd] sm:$0x1] %v7366_v53 }
 0xe86   :  { %7441 = vst [vmem:[#allocation3 + $0xf] sm:$0x1] %v7368_v1 }
 0xe87 LB: > { %v7496_v21 = vand.u32 4294901760, %v12471_v31  ;;  %v12521_v27 = vand.u32 4294901760, %v12469_v22  ;;  %v11052_v29 = vmov 0.0   ;;  %v12525_v41 = vand.u32 4294901760, %v12467_v24  ;;  %s11053_s5 = smov 32   ;;  %s9317_s3 = sshll.u32 %s11030_s6, 1  ;;  %s11030_s6 = sphi %s12510_s6, %s7460_s6   ;;  %v11026_v57 = vphi %v12508_v57, %v7980_v57   ;;  %v11022_v51 = vphi %v12506_v51, %v7974_v51  }
 0xe88   : > { %10511 = vmatprep.subr.mxu1 %v11052_v29  ;;  %v12528_v46 = vand.u32 4294901760, %v12465_v23  ;;  %10500 = vmatprep.subr.mxu0 %v11052_v29  ;;  %vm11054_vm12 = vmmov 0   ;;  %s7464_s12 = scalar_lea.vmem [#allocation3], %s9317_s3  ;;  %s11055_s13 = smov 64  }
 0xe89   : > { %7467 = vrot.lane.b32.xlu0 %v11026_v57, %s11053_s5  ;;  %v12533_v33 = vsub.f32 %v12471_v31, %v7496_v21  ;;  %v12537_v35 = vsub.f32 %v12469_v22, %v12521_v27  ;;  %10519 = vmatprep.mubr.msk.f32.mxu1 %vm11054_vm12, %v11052_v29  ;;  %v12543_v36 = vsub.f32 %v12467_v24, %v12525_v41  ;;  %s7985_s16 = scalar_lea.vmem [#allocation2], %s9317_s3  ;;  %s7460_s6 = sadd.s32 1, %s11030_s6  }
 0xe8a   : > { %v12547_v34 = vsub.f32 %v12465_v23, %v12528_v46  ;;  %10501 = vmatpush3.msra.mxu0 %v7496_v21  ;;  %10508 = vmatprep.mubr.msk.f32.mxu0 %vm11054_vm12, %v11052_v29  ;;  %p7457_p0 = scmp.ge.s32.totalorder %s7460_s6, 16  }
 0xe8b   : > { %v7577_v37 = vand.u32 4294901760, %v12533_v33  ;;  %v7584_v38 = vand.u32 4294901760, %v12537_v35  ;;  %10502 = vmatprep.subr.mxu0 %v11052_v29  ;;  %v7591_v52 = vand.u32 4294901760, %v12543_v36  ;;  %v7991_v23 = vld [vmem:[%s12769_s7] sm:$0xff] (%p7457_p0)  ;;  %vm7988_vm13 = vcmask (%p7457_p0), 982016   ;;  %s11059_s24 = smov (%p7457_p0), 82  }
 0xe8c   : > { %v7598_v39 = vand.u32 4294901760, %v12547_v34  ;;  %10503 = vmatpush3.msra.mxu0 %v12521_v27  ;;  %vm8585_vm14 = vcmask (%p7457_p0), 310448   ;;  %vm9162_vm15 = vcmask (%p7457_p0), 802448   ;;  %s11060_s1 = smov (%p7457_p0), [#allocation13]  }
 0xe8d   : > { %v7578_v7 = vsub.f32 %v12533_v33, %v7577_v37  ;;  %v7585_v43 = vsub.f32 %v12537_v35, %v7584_v38  ;;  %10504 = vmatprep.subr.mxu0 %v11052_v29  ;;  %v7592_v59 = vsub.f32 %v12543_v36, %v7591_v52  ;;  %v7465_v54 = vld [vmem:[%s7464_s12] sm:$0x3]  ;;  %s9170_s25 = sshll.u32 (%p7457_p0), %s11060_s1, 4  ;;  %s9171_s25 = int_to_ptr.vmem [resolvable:$true] %s9170_s25 }
 0xe8e   : > { %10505 = vmatpush3.msra.mxu0 %v12525_v41  ;;  %v7599_v40 = vsub.f32 %v12547_v34, %v7598_v39  ;;  %s10908_s26 = scalar_lea.vmem (%p7457_p0), %s9171_s25, 256  ;;  %p10913_p2 = scmp.lt.s32.totalorder (%p7457_p0), %s9171_s25, %s9171_s25 }
 0xe8f   : > { %v7579_v14 = vand.u32 4294901760, %v7578_v7  ;;  %v7586_v2 = vand.u32 4294901760, %v7585_v43  ;;  %10506 = vmatprep.subr.mxu0 %v11052_v29  ;;  %v7593_v4 = vand.u32 4294901760, %v7592_v59  ;;  %p10909_p1 = scmp.ne.s32.totalorder (%p7457_p0), %s9171_s25, %s10908_s26  ;;  %p10914_p3 = scmp.lt.s32.totalorder (%p7457_p0), %s10908_s26, %s10908_s26 }
 0xe90   : > { %10507 = vmatpush3.msra.mxu0 %v12528_v46  ;;  %v7600_v5 = vand.u32 4294901760, %v7599_v40 }
 0xe91   : > { %10512 = vmatpush3.msra.mxu1 %v7579_v14  ;;  %10522 = vmatprep.subr.mxu0 %v11052_v29  ;;  %p10915_p4 = por (%p7457_p0), %p10914_p3, %p10913_p2 }
 0xe92   : > { %10513 = vmatprep.subr.mxu1 %v11052_v29 }
 0xe93   : > { %10514 = vmatpush3.msra.mxu1 %v7586_v2  ;;  %p10916_p5 = pnand (%p7457_p0), %p10915_p4, %p10909_p1 }
 0xe94   : > { %10515 = vmatprep.subr.mxu1 %v11052_v29 }
 0xe95   : > { %10516 = vmatpush3.msra.mxu1 %v7593_v4 }
 0xe96   : > { %10517 = vmatprep.subr.mxu1 %v11052_v29 }
 0xe97   : > { %10518 = vmatpush3.msra.mxu1 %v7600_v5 }
 0xe98   : > { %10533 = vmatprep.subr.mxu1 %v11052_v29 }
 0xefb   : > { %v7468_v6 = vpop.permute.xlu0 %7467 }
 0xefc   : > { %v7469_v42 = vsel %vm114_vm0, %v7468_v6, 0 }
 0xefd   : > { %v7540_v3 = vand.u32 4294901760, %v7469_v42 }
 0xeff   : > { %v7541_v44 = vsub.f32 %v7469_v42, %v7540_v3  ;;  %10520 = vmatmul.mubr.f32.vlgmr.msra.gmra.mxu1 %v7540_v3 }
 0xf00   : > { %10534 = vmatpush3.msra.mxu1 %v7496_v21  ;;  %10541 = vmatprep.mubr.msk.f32.mxu1 %vm11054_vm12, %v11052_v29 }
 0xf01   : > { %v7542_v8 = vand.u32 4294901760, %v7541_v44  ;;  %10535 = vmatprep.subr.mxu1 %v11052_v29 }
 0xf02   : > { %10536 = vmatpush3.msra.mxu1 %v12521_v27 }
 0xf03   : > { %10537 = vmatprep.subr.mxu1 %v11052_v29  ;;  %v7543_v45 = vsub.f32 %v7541_v44, %v7542_v8 }
 0xf04   : > { %10538 = vmatpush3.msra.mxu1 %v12525_v41 }
 0xf05   : > { %10539 = vmatprep.subr.mxu1 %v11052_v29  ;;  %v7544_v47 = vand.u32 4294901760, %v7543_v45 }
 0xf06   : > { %10540 = vmatpush3.msra.mxu1 %v12528_v46 }
 0xf07   : > { %10542 = vmatmul.mubr.f32.vlgmr.msra.gmra.mxu1 %v7542_v8  ;;  %10555 = vmatprep.subr.mxu1 %v11052_v29 }
 0xf08   : > { %10509 = vmatmul.mubr.f32.vlgmr.msra.gmra.mxu0 %v7544_v47  ;;  %10556 = vmatpush3.msra.mxu1 %v7496_v21 }
 0xf09   : > { %10523 = vmatpush3.msra.mxu0 %v12533_v33  ;;  %10557 = vmatprep.subr.mxu1 %v11052_v29 }
 0xf0a   : > { %10524 = vmatprep.subr.mxu0 %v11052_v29  ;;  %10558 = vmatpush3.msra.mxu1 %v12521_v27 }
 0xf0b   : > { %10525 = vmatpush3.msra.mxu0 %v12537_v35  ;;  %10559 = vmatprep.subr.mxu1 %v11052_v29 }
 0xf0c   : > { %10526 = vmatprep.subr.mxu0 %v11052_v29  ;;  %10560 = vmatpush3.msra.mxu1 %v12525_v41 }
 0xf0d   : > { %10527 = vmatpush3.msra.mxu0 %v12543_v36  ;;  %10561 = vmatprep.subr.mxu1 %v11052_v29 }
 0xf0e   : > { %10528 = vmatprep.subr.mxu0 %v11052_v29  ;;  %10530 = vmatprep.mubr.msk.f32.mxu0 %vm11054_vm12, %v11052_v29 }
 0xf0f   : > { %10529 = vmatpush3.msra.mxu0 %v12547_v34  ;;  %10562 = vmatpush3.msra.mxu1 %v12528_v46 }
 0xf10   : > { %10563 = vmatprep.mubr.msk.f32.mxu1 %vm11054_vm12, %v11052_v29  ;;  %10531 = vmatmul.mubr.f32.vlgmr.msra.gmra.mxu0 %v7541_v44 }
 0xf11   : > { %10544 = vmatprep.subr.mxu0 %v11052_v29  ;;  %10564 = vmatmul.mubr.f32.vlgmr.msra.gmra.mxu1 %v7540_v3 }
 0xf12   : > { %10545 = vmatpush3.msra.mxu0 %v7577_v37  ;;  %10552 = vmatprep.mubr.msk.f32.mxu0 %vm11054_vm12, %v11052_v29 }
 0xf13   : > { %10546 = vmatprep.subr.mxu0 %v11052_v29 }
 0xf14   : > { %10547 = vmatpush3.msra.mxu0 %v7584_v38 }
 0xf15   : > { %10548 = vmatprep.subr.mxu0 %v11052_v29 }
 0xf16   : > { %10549 = vmatpush3.msra.mxu0 %v7591_v52 }
 0xf17   : > { %10550 = vmatprep.subr.mxu0 %v11052_v29 }
 0xf18   : > { %10551 = vmatpush3.msra.mxu0 %v7598_v39 }
 0xf19   : > { %10553 = vmatmul.mubr.f32.vlgmr.msra.gmra.mxu0 %v7540_v3 }
 0xfbf   : > { %v7637_v48 = vpop.f32.mrf.mxu1 }
 0xfc1   : > { %v10521_v49 = vpop.f32.mrf.mxu1 }
 0xfc2   :  { %v7992_v49 = vld [vmem:[%s12769_s7 + $0x8] sm:$0xff] (%p7457_p0) }
 0xfc7   : > { %v7794_v50 = vpop.f32.mrf.mxu1 }
 0xfc8   : > { %v7546_v55 = vpop.f32.mrf.mxu0 }
 0xfc9   : > { %v10543_v15 = vpop.f32.mrf.mxu1  ;;  %v7638_v10 = vadd.f32 %v7637_v48, %v7546_v55 }
 0xfca   : > { %v10510_v58 = vpop.f32.mrf.mxu0 }
 0xfd0   : > { %v7717_v60 = vpop.f32.mrf.mxu0 }
 0xfd1   : > { %v7952_v63 = vpop.f32.mrf.mxu1  ;;  %v7718_v13 = vadd.f32 %v7717_v60, %v7638_v10 }
 0xfd2   : > { %v10532_v11 = vpop.f32.mrf.mxu0 }
 0xfd3   : > { %v10565_v12 = vpop.f32.mrf.mxu1  ;;  %v7795_v16 = vadd.f32 %v7794_v50, %v7718_v13  ;;  %v8069_v13 = vsel (%p7457_p0), %vm114_vm0, %v7992_v49, 0 }
 0xfd4   :  { %v8066_v12 = vsel (%p7457_p0), %vm114_vm0, %v7991_v23, 0 }
 0xfd9   : > { %v7877_v17 = vpop.f32.mrf.mxu0 }
 0xfda   : > { %v7878_v18 = vadd.f32 %v7877_v17, %v7795_v16 }
 0xfdb   : > { %v10554_v0 = vpop.f32.mrf.mxu0 }
 0xfdc   : > { %v7953_v62 = vadd.f32 %v7952_v63, %v7878_v18  ;;  %v12655_v0 = vand.u32 (%p7457_p0), 4294901760, %v8069_v13 }
 0xfde   : > { %v7956_v56 = vadd.f32 %v7953_v62, %v7465_v54  ;;  %v12653_v54 = vand.u32 (%p7457_p0), 4294901760, %v8066_v12 }
 0xfe0   : > { %10799 = vtanh.f32 %v7956_v56  ;;  %v7957_v9 = vsub.f32 0.0, %v7956_v56  ;;  %10577 = vmatprep.mubr.f32.mxu1 (%p7457_p0), %v12653_v54 }
 0xfe2   : > { %v7958_v28 = vmul.f32 1.442695, %v7957_v9 }
 0xfe4   : > { %10801 = vpow2.f32 %v7958_v28 }
 0xfed   : > { %v10800_v61 = vpop.eup %10799 }
 0xfee   : > { %7966 = vrot.lane.b32.xlu0 %v10800_v61, %s11055_s13 }
 0xff1   : > { %v10802_v32 = vpop.eup %10801 }
 0xff2   : > { %v7960_v20 = vadd.f32 1.0, %v10802_v32 }
 0xff4   : > { %10803 = vrcp.f32 %v7960_v20 }
0x1001   : > { %v10804_v25 = vpop.eup %10803 }
0x1002   : > { %v7964_v53 = vmul.f32 %v11022_v51, %v10804_v25 }
0x1060   : > { %v7967_v26 = vpop.permute.xlu0 %7966 }
0x1061   : > { %v7969_v30 = vmul.f32 %v10804_v25, %v7967_v26  ;;  %v12663_v26 = vsub.f32 (%p7457_p0), %v8066_v12, %v12653_v54 }
0x1063   : > { %7971 = vrot.lane.b32.xlu1 %v7969_v30, %s11053_s5  ;;  %v12666_v30 = vsub.f32 (%p7457_p0), %v8069_v13, %v12655_v0 }
0x10d5   : > { %v7972_v19 = vpop.permute.xlu1 %7971 }
0x10d6   : > { %v7974_v51 = vadd.f32 %v7972_v19, %v7964_v53  }
0x10d8   : > { %10805 = vtanh.f32 %v7974_v51 }
0x10e5   : > { %v10806_v1 = vpop.eup %10805 }
0x10e6   : > { %7977 = vrot.lane.b32.xlu1 %v10806_v1, %s11055_s13 }
0x1158   : > { %v7978_v57 = vpop.permute.xlu1 %7977 }
0x1159   : > { %v7980_v57 = vmul.f32 %v10804_v25, %v7978_v57  }
0x115b   : > { %7982 = vrot.lane.b32.xlu0 %v7980_v57, %s11053_s5 }
0x11ca   :  { %7459 = sbr.rel (!%p7457_p0) target bundleno = 3719 (0xe87), region = 152 }
0x11cd   : > { %v7983_v21 = vpop.permute.xlu0 %7982 }
0x11ce   : > { %7987 = vst.msk [vmem:[%s7985_s16] sm:$0x3] %vm1985_vm2, %v7983_v21 }
0x11d5   :  { %v8003_v27 = vld [vmem:[#allocation2 + $0x10] sm:$0x1]  ;;  %v8004_v29 = vld [vmem:[#allocation2 + $0x12] sm:$0x1]  ;;  %v8005_v41 = vld [vmem:[#allocation2 + $0x14] sm:$0x1] }
0x11d6   :  { %v8006_v46 = vld [vmem:[#allocation2 + $0x16] sm:$0x1]  ;;  %v8007_v33 = vld [vmem:[#allocation2 + $0x18] sm:$0x1]  ;;  %v8008_v35 = vld [vmem:[#allocation2 + $0x1a] sm:$0x1] }
0x11d7   :  { %v8009_v36 = vld [vmem:[#allocation2 + $0x1c] sm:$0x1]  ;;  %v8010_v34 = vld [vmem:[#allocation2 + $0x1e] sm:$0x1]  ;;  %v8051_v37 = vrot.slane %v8004_v29, 7  ;;  %v8053_v38 = vrot.slane %v8005_v41, 6 }
0x11d8   :  { %v8055_v52 = vrot.slane %v8006_v46, 5  ;;  %v8057_v39 = vrot.slane %v8007_v33, 4  ;;  %v8059_v7 = vrot.slane %v8008_v35, 3  ;;  %v8061_v43 = vrot.slane %v8009_v36, 2  ;;  %v7995_v59 = vld [vmem:[#allocation2] sm:$0x1] }
0x11d9   :  { %v8052_v14 = vsel %vm2031_vm3, %v8051_v37, %v8003_v27  ;;  %v8063_v2 = vrot.slane %v8010_v34, 1  ;;  %v7996_v40 = vld [vmem:[#allocation2 + $0x2] sm:$0x1]  ;;  %v7997_v4 = vld [vmem:[#allocation2 + $0x4] sm:$0x1]  ;;  %v12675_v33 = vand.u32 4294901760, %v12663_v26 }
0x11da   :  { %v8054_v24 = vsel %vm2034_vm4, %v8053_v38, %v8052_v14  ;;  %v7998_v22 = vld [vmem:[#allocation2 + $0x6] sm:$0x1]  ;;  %v7999_v31 = vld [vmem:[#allocation2 + $0x8] sm:$0x1]  ;;  %v8000_v51 = vld [vmem:[#allocation2 + $0xa] sm:$0x1] }
0x11db   :  { %v8056_v5 = vsel %vm2037_vm5, %v8055_v52, %v8054_v24  ;;  %v8001_v6 = vld [vmem:[#allocation2 + $0xc] sm:$0x1]  ;;  %v8002_v42 = vld [vmem:[#allocation2 + $0xe] sm:$0x1]  ;;  %v8037_v3 = vrot.slane %v7996_v40, 7  ;;  %v8039_v44 = vrot.slane %v7997_v4, 6  ;;  %v8145_v14 = vsub.f32 %v12663_v26, %v12675_v33 }
0x11dc   :  { %v8058_v8 = vsel %vm2040_vm6, %v8057_v39, %v8056_v5  ;;  %v8041_v45 = vrot.slane %v7998_v22, 5  ;;  %v8043_v47 = vrot.slane %v7999_v31, 4  ;;  %v8045_v48 = vrot.slane %v8000_v51, 3  ;;  %v8597_v60 = vld [vmem:[#allocation2 + $0x13] sm:$0x1] }
0x11dd   :  { %v8060_v50 = vsel %vm2043_vm7, %v8059_v7, %v8058_v8  ;;  %v8038_v55 = vsel %vm2031_vm3, %v8037_v3, %v7995_v59  ;;  %v8047_v15 = vrot.slane %v8001_v6, 2  ;;  %v8049_v58 = vrot.slane %v8002_v42, 1  ;;  %v8598_v63 = vld [vmem:[#allocation2 + $0x15] sm:$0x1]  ;;  %v8596_v16 = vld [vmem:[#allocation2 + $0x11] sm:$0x1] }
0x11de   :  { %v8062_v10 = vsel %vm2046_vm8, %v8061_v43, %v8060_v50  ;;  %v8040_v11 = vsel %vm2034_vm4, %v8039_v44, %v8038_v55  ;;  %v8599_v62 = vld [vmem:[#allocation2 + $0x17] sm:$0x1]  ;;  %v8600_v56 = vld [vmem:[#allocation2 + $0x19] sm:$0x1]  ;;  %v8634_v28 = vrot.slane %v8597_v60, 7  ;;  %v8636_v32 = vrot.slane %v8598_v63, 6 }
0x11df   :  { %v8064_v17 = vsel %vm2049_vm9, %v8063_v2, %v8062_v10  ;;  %v8042_v18 = vsel %vm2037_vm5, %v8041_v45, %v8040_v11  ;;  %v8601_v53 = vld [vmem:[#allocation2 + $0x1b] sm:$0x1]  ;;  %v8602_v19 = vld [vmem:[#allocation2 + $0x1d] sm:$0x1]  ;;  %v8603_v57 = vld [vmem:[#allocation2 + $0x1f] sm:$0x1] }
0x11e0   :  { %v8073_v61 = vsel %vm114_vm0, %v8064_v17, 0  ;;  %v8044_v9 = vsel %vm2040_vm6, %v8043_v47, %v8042_v18  ;;  %v8635_v21 = vsel %vm2031_vm3, %v8634_v28, %v8596_v16  ;;  %v8638_v27 = vrot.slane %v8599_v62, 5  ;;  %v8589_v36 = vld [vmem:[#allocation2 + $0x3] sm:$0x1]  ;;  %v8590_v34 = vld [vmem:[#allocation2 + $0x5] sm:$0x1] }
0x11e1   :  { %v12659_v20 = vand.u32 4294901760, %v8073_v61  ;;  %v8046_v25 = vsel %vm2043_vm7, %v8045_v48, %v8044_v9  ;;  %v8640_v29 = vrot.slane %v8600_v56, 4  ;;  %v12678_v35 = vand.u32 4294901760, %v12666_v30  ;;  %v8588_v7 = vld [vmem:[#allocation2 + $0x1] sm:$0x1] }
0x11e2   :  { %v8048_v1 = vsel %vm2046_vm8, %v8047_v15, %v8046_v25  ;;  %v8637_v38 = vsel %vm2034_vm4, %v8636_v32, %v8635_v21  ;;  %v8642_v52 = vrot.slane %v8601_v53, 3  ;;  %v8644_v39 = vrot.slane %v8602_v19, 2  ;;  %v8591_v40 = vld [vmem:[#allocation2 + $0x7] sm:$0x1]  ;;  %v8592_v4 = vld [vmem:[#allocation2 + $0x9] sm:$0x1] }
0x11e3   :  { %10566 = vmatprep.subr.mxu0 %v12659_v20  ;;  %v8050_v41 = vsel %vm2049_vm9, %v8049_v58, %v8048_v1  ;;  %v8192_v46 = vsub.f32 %v8073_v61, %v12659_v20  ;;  %v8155_v2 = vsub.f32 %v12666_v30, %v12678_v35  ;;  %v8639_v23 = vsel %vm2037_vm5, %v8638_v27, %v8637_v38  ;;  %v8593_v3 = vld [vmem:[#allocation2 + $0xb] sm:$0x1]  ;;  %v8594_v44 = vld [vmem:[#allocation2 + $0xd] sm:$0x1]  ;;  %v8595_v45 = vld [vmem:[#allocation2 + $0xf] sm:$0x1] }
0x11e4   :  { %10567 = vmatpush3.xpose.msra.mxu0 %v12659_v20  ;;  %v8071_v37 = vsel %vm114_vm0, %v8050_v41, 0  ;;  %v8646_v24 = vrot.slane %v8603_v57, 1  ;;  %v8620_v22 = vrot.slane %v8589_v36, 7  ;;  %v8622_v31 = vrot.slane %v8590_v34, 6  ;;  %v7993_v56 = vld [vmem:[%s12770_s8] sm:$0xff]  ;;  %v7994_v57 = vld [vmem:[%s12770_s8 + $0x8] sm:$0xff] }
0x11e5   :  { %v12683_v43 = vand.u32 4294901760, %v8071_v37  ;;  %v8193_v59 = vand.u32 4294901760, %v8192_v46  ;;  %v12691_v5 = vand.u32 4294901760, %v8145_v14  ;;  %v12693_v6 = vand.u32 4294901760, %v8155_v2  ;;  %s11058_s8 = smov 22  }
0x11e6   :  { %v8641_v8 = vsel %vm2040_vm6, %v8640_v29, %v8639_v23  ;;  %v8621_v47 = vsel %vm2031_vm3, %v8620_v22, %v8588_v7  ;;  %v8624_v48 = vrot.slane %v8591_v40, 5  ;;  %v8626_v49 = vrot.slane %v8592_v4, 4 }
0x11e7   :  { %10568 = vmatprep.subr.mxu0 %v12683_v43  ;;  %v8194_v51 = vsub.f32 %v8192_v46, %v8193_v59  ;;  %v8199_v42 = vsub.f32 %v8071_v37, %v12683_v43  ;;  %10570 = vmatprep.mubr.f32.mxu0 %v12691_v5  ;;  %v8643_v15 = vsel %vm2043_vm7, %v8642_v52, %v8641_v8  ;;  %v8628_v10 = vrot.slane %v8593_v3, 3 }
0x11e8   :  { %10569 = vmatpush3.xpose.msra.mxu0 %v12683_v43  ;;  %v8623_v58 = vsel %vm2034_vm4, %v8622_v31, %v8621_v47  ;;  %v8645_v60 = vsel %vm2046_vm8, %v8644_v39, %v8643_v15  ;;  %v8630_v11 = vrot.slane %v8594_v44, 2  ;;  %v8632_v17 = vrot.slane %v8595_v45, 1 }
0x11e9   :  { %v8195_v50 = vand.u32 4294901760, %v8194_v51  ;;  %10580 = vmatprep.subr.mxu0 %v8192_v46  ;;  %v8200_v55 = vand.u32 4294901760, %v8199_v42  ;;  %v8625_v63 = vsel %vm2037_vm5, %v8624_v48, %v8623_v58  ;;  %v8647_v13 = vsel %vm2049_vm9, %v8646_v24, %v8645_v60 }
0x11ea   :  { %v8627_v16 = vsel %vm2040_vm6, %v8626_v49, %v8625_v63  ;;  %v8650_v18 = vsel %vm114_vm0, %v8647_v13, 0  ;;  %v11056_v25 = vmov 0  }
0x11eb   :  { %10573 = vmatprep.subr.mxu1 %v8195_v50  ;;  %10571 = vmatmul.mubr.f32.vlgmr.msra.gmra.mxu0 %v12693_v6  ;;  %v8201_v12 = vsub.f32 %v8199_v42, %v8200_v55  ;;  %v8629_v62 = vsel %vm2043_vm7, %v8628_v10, %v8627_v16  ;;  %v12713_v9 = vand.u32 4294901760, %v8650_v18 }
0x11ec   :  { %10574 = vmatpush3.xpose.msra.mxu1 %v8195_v50  ;;  %10581 = vmatpush3.xpose.msra.mxu0 %v8192_v46  ;;  %v8631_v28 = vsel %vm2046_vm8, %v8630_v11, %v8629_v62 }
0x11ed   :  { %v8202_v61 = vand.u32 4294901760, %v8201_v12  ;;  %10582 = vmatprep.subr.mxu0 %v8199_v42  ;;  %10584 = vmatprep.mubr.f32.mxu0 %v12663_v26  ;;  %v8633_v32 = vsel %vm2049_vm9, %v8632_v17, %v8631_v28  ;;  %v8769_v1 = vsub.f32 %v8650_v18, %v12713_v9 }
0x11ee   :  { %10807 = vset.pattern.permute.xlu0 %v11056_v25  ;;  %v8648_v53 = vsel %vm114_vm0, %v8633_v32, 0 }
0x11ef   :  { %10575 = vmatprep.subr.mxu1 %v8202_v61  ;;  %8013 = vperm.xlu0 %10807, %v7993_v56   ;;  %v8684_v19 = vand.u32 4294901760, %v8648_v53  ;;  %v8770_v21 = vand.u32 4294901760, %v8769_v1 }
0x11f0   :  { %10576 = vmatpush3.xpose.msra.mxu1 %v8202_v61  ;;  %10583 = vmatpush3.xpose.msra.mxu0 %v8199_v42 }
0x11f1   :  { %10587 = vmatprep.subr.mxu1 %v12659_v20  ;;  %10594 = vmatprep.subr.mxu0 %v8193_v59  ;;  %v8776_v27 = vsub.f32 %v8648_v53, %v8684_v19  ;;  %v8771_v29 = vsub.f32 %v8769_v1, %v8770_v21 }
0x11f3   :  { %10578 = vmatmul.mubr.f32.vlgmr.msra.gmra.mxu1 %v12655_v0  ;;  %10585 = vmatmul.mubr.f32.vlgmr.msra.gmra.mxu0 %v12666_v30  ;;  %v8777_v41 = vand.u32 4294901760, %v8776_v27  ;;  %v8772_v46 = vand.u32 4294901760, %v8771_v29 }
0x11f4   :  { %10588 = vmatpush3.xpose.msra.mxu1 %v12659_v20  ;;  %10595 = vmatpush3.xpose.msra.mxu0 %v8193_v59 }
0x11f5   :  { %10589 = vmatprep.subr.mxu1 %v12683_v43  ;;  %10596 = vmatprep.subr.mxu0 %v8200_v55  ;;  %v8778_v36 = vsub.f32 %v8776_v27, %v8777_v41 }
0x11f6   :  { %10591 = vmatprep.mubr.f32.mxu1 %v12675_v33  ;;  %10598 = vmatprep.mubr.f32.mxu0 %v12653_v54 }
0x11f7   :  { %8018 = vperm.xlu0 %10807, %v7994_v57   ;;  %v8779_v34 = vand.u32 4294901760, %v8778_v36 }
0x11f8   :  { %10590 = vmatpush3.xpose.msra.mxu1 %v12683_v43  ;;  %10597 = vmatpush3.xpose.msra.mxu0 %v8200_v55 }
0x11f9   :  { %10601 = vmatprep.subr.mxu1 %v12659_v20  ;;  %10608 = vmatprep.subr.mxu0 %v12713_v9 }
0x11fb   :  { %10592 = vmatmul.mubr.f32.vlgmr.msra.gmra.mxu1 %v12678_v35  ;;  %10599 = vmatmul.mubr.f32.vlgmr.msra.gmra.mxu0 %v12655_v0 }
0x11fc   :  { %10602 = vmatpush3.xpose.msra.mxu1 %v12659_v20  ;;  %10609 = vmatpush3.xpose.msra.mxu0 %v12713_v9 }
0x11fd   :  { %10603 = vmatprep.subr.mxu1 %v12683_v43  ;;  %10610 = vmatprep.subr.mxu0 %v8684_v19 }
0x11fe   :  { %10605 = vmatprep.mubr.f32.mxu1 %v12653_v54  ;;  %10612 = vmatprep.mubr.f32.mxu0 %v12691_v5 }
0x1200   :  { %10604 = vmatpush3.xpose.msra.mxu1 %v12683_v43  ;;  %10611 = vmatpush3.xpose.msra.mxu0 %v8684_v19 }
0x1201   :  { %10615 = vmatprep.subr.mxu1 %v8772_v46  ;;  %10622 = vmatprep.subr.mxu0 %v8769_v1 }
0x1203   :  { %10606 = vmatmul.mubr.f32.vlgmr.msra.gmra.mxu1 %v12655_v0  ;;  %10613 = vmatmul.mubr.f32.vlgmr.msra.gmra.mxu0 %v12693_v6 }
0x1204   :  { %10616 = vmatpush3.xpose.msra.mxu1 %v8772_v46  ;;  %10623 = vmatpush3.xpose.msra.mxu0 %v8769_v1 }
0x1205   :  { %10617 = vmatprep.subr.mxu1 %v8779_v34  ;;  %10624 = vmatprep.subr.mxu0 %v8776_v27 }
0x1206   :  { %10619 = vmatprep.mubr.f32.mxu1 %v12653_v54  ;;  %10626 = vmatprep.mubr.f32.mxu0 %v12663_v26 }
0x1208   :  { %10618 = vmatpush3.xpose.msra.mxu1 %v8779_v34  ;;  %10625 = vmatpush3.xpose.msra.mxu0 %v8776_v27 }
0x1209   :  { %10629 = vmatprep.subr.mxu1 %v12713_v9  ;;  %10636 = vmatprep.subr.mxu0 %v8770_v21 }
0x120b   :  { %10620 = vmatmul.mubr.f32.vlgmr.msra.gmra.mxu1 %v12655_v0  ;;  %10627 = vmatmul.mubr.f32.vlgmr.msra.gmra.mxu0 %v12666_v30 }
0x120c   :  { %10630 = vmatpush3.xpose.msra.mxu1 %v12713_v9  ;;  %10637 = vmatpush3.xpose.msra.mxu0 %v8770_v21 }
0x120d   :  { %10631 = vmatprep.subr.mxu1 %v8684_v19  ;;  %10638 = vmatprep.subr.mxu0 %v8777_v41 }
0x120e   :  { %10633 = vmatprep.mubr.f32.mxu1 %v12675_v33  ;;  %10640 = vmatprep.mubr.f32.mxu0 %v12653_v54 }
0x1210   :  { %10632 = vmatpush3.xpose.msra.mxu1 %v8684_v19  ;;  %10639 = vmatpush3.xpose.msra.mxu0 %v8777_v41 }
0x1211   :  { %10643 = vmatprep.subr.mxu1 %v12713_v9 }
0x1213   :  { %10634 = vmatmul.mubr.f32.vlgmr.msra.gmra.mxu1 %v12678_v35  ;;  %10641 = vmatmul.mubr.f32.vlgmr.msra.gmra.mxu0 %v12655_v0  ;;  %v11057_v35 = vmov 0.0  }
0x1214   :  { %10644 = vmatpush3.xpose.msra.mxu1 %v12713_v9  ;;  %10647 = vmatprep.mubr.f32.mxu1 %v12653_v54  ;;  %7990 = vst.msk [vmem:[#allocation13 + $0x8] sm:$0xff] %vm7988_vm13, %v11057_v35  ;;  %7989 = vst.msk [vmem:[#allocation13] sm:$0xff] %vm7988_vm13, %v11057_v35 }
0x1215   :  { %10645 = vmatprep.subr.mxu1 %v8684_v19 }
0x1218   :  { %10646 = vmatpush3.xpose.msra.mxu1 %v8684_v19 }
0x121b   :  { %10648 = vmatmul.mubr.f32.vlgmr.msra.gmra.mxu1 %v12655_v0 }
0x126a   :  { %v8014_v20 = vpop.permute.xlu0 %8013 }
0x1272   :  { %v8019_v30 = vpop.permute.xlu0 %8018 }
0x12ab   :  { %v10572_v26 = vpop.f32.mrf.mxu0 }
0x12ac   :  { %v8159_v33 = vadd.f32 %v10572_v26, %v8019_v30 }
0x12ad   :  { %v8148_v37 = vpop.f32.mrf.mxu0 }
0x12ae   :  { %v8149_v52 = vadd.f32 %v8148_v37, %v8014_v20 }
0x12b3   :  { %v10579_v38 = vpop.f32.mrf.mxu1  ;;  %v10586_v43 = vpop.f32.mrf.mxu0 }
0x12b4   :  { %v8246_v39 = vadd.f32 %v10579_v38, %v8159_v33 }
0x12b5   :  { %v8239_v7 = vpop.f32.mrf.mxu1  ;;  %v8321_v2 = vpop.f32.mrf.mxu0 }
0x12b6   :  { %v8240_v54 = vadd.f32 %v8239_v7, %v8149_v52  ;;  %v8329_v14 = vadd.f32 %v10586_v43, %v8246_v39 }
0x12b8   :  { %v8322_v23 = vadd.f32 %v8321_v2, %v8240_v54 }
0x12bb   :  { %v10593_v59 = vpop.f32.mrf.mxu1  ;;  %v10600_v4 = vpop.f32.mrf.mxu0 }
0x12bc   :  { %v8412_v40 = vadd.f32 %v10593_v59, %v8329_v14 }
0x12bd   :  { %v8403_v0 = vpop.f32.mrf.mxu1  ;;  %v8488_v31 = vpop.f32.mrf.mxu0 }
0x12be   :  { %v8404_v24 = vadd.f32 %v8403_v0, %v8322_v23  ;;  %v8495_v22 = vadd.f32 %v10600_v4, %v8412_v40 }
0x12c0   :  { %v8489_v42 = vadd.f32 %v8488_v31, %v8404_v24 }
0x12c3   :  { %v10607_v51 = vpop.f32.mrf.mxu1  ;;  %v10614_v44 = vpop.f32.mrf.mxu0 }
0x12c4   :  { %v8574_v5 = vadd.f32 %v10607_v51, %v8495_v22  ;;  %v8736_v47 = vadd.f32 %v10614_v44, %v8019_v30 }
0x12c5   :  { %v8567_v6 = vpop.f32.mrf.mxu1  ;;  %v8725_v45 = vpop.f32.mrf.mxu0 }
0x12c6   :  { %8581 = vrot.lane.b32.xlu1 %v8574_v5, %s11058_s8  ;;  %v8568_v3 = vadd.f32 %v8567_v6, %v8489_v42  ;;  %v8726_v50 = vadd.f32 %v8725_v45, %v8014_v20 }
0x12ca   :  { %8579 = vrot.lane.b32.xlu1 %v8568_v3, %s11058_s8 }
0x12cb   :  { %v10621_v8 = vpop.f32.mrf.mxu1  ;;  %v10628_v49 = vpop.f32.mrf.mxu0 }
0x12cc   :  { %v8823_v55 = vadd.f32 %v10621_v8, %v8736_v47 }
0x12cd   :  { %v8816_v48 = vpop.f32.mrf.mxu1  ;;  %v8898_v58 = vpop.f32.mrf.mxu0 }
0x12ce   :  { %v8817_v15 = vadd.f32 %v8816_v48, %v8726_v50  ;;  %v8906_v63 = vadd.f32 %v10628_v49, %v8823_v55 }
0x12d0   :  { %v8899_v12 = vadd.f32 %v8898_v58, %v8817_v15 }
0x12d3   :  { %v10635_v60 = vpop.f32.mrf.mxu1  ;;  %v10642_v11 = vpop.f32.mrf.mxu0 }
0x12d4   :  { %v8989_v13 = vadd.f32 %v10635_v60, %v8906_v63 }
0x12d5   :  { %v8980_v10 = vpop.f32.mrf.mxu1  ;;  %v9065_v17 = vpop.f32.mrf.mxu0 }
0x12d6   :  { %v8981_v16 = vadd.f32 %v8980_v10, %v8899_v12  ;;  %v9072_v18 = vadd.f32 %v10642_v11, %v8989_v13 }
0x12d8   :  { %v9066_v56 = vadd.f32 %v9065_v17, %v8981_v16 }
0x12db   :  { %v10649_v62 = vpop.f32.mrf.mxu1 }
0x12dc   :  { %v9151_v61 = vadd.f32 %v10649_v62, %v9072_v18 }
0x12dd   :  { %v9144_v9 = vpop.f32.mrf.mxu1 }
0x12de   :  { %v9145_v28 = vadd.f32 %v9144_v9, %v9066_v56  ;;  %9158 = vrot.lane.b32.xlu1 %v9151_v61, %s11059_s24 }
0x12e0   :  { %9156 = vrot.lane.b32.xlu0 %v9145_v28, %s11059_s24 }
0x1338   :  { %v8582_v32 = vpop.permute.xlu1 %8581 }
0x1339   :  { %8587 = vst.msk [vmem:[#allocation13 + $0x8] sm:$0xff] %vm8585_vm14, %v8582_v32 }
0x133c   :  { %v8580_v25 = vpop.permute.xlu1 %8579 }
0x133d   :  { %8586 = vst.msk [vmem:[#allocation13] sm:$0xff] %vm8585_vm14, %v8580_v25 }
0x1350   :  { %v9159_v53 = vpop.permute.xlu1 %9158 }
0x1351   :  { %9164 = vst.msk [vmem:[#allocation13 + $0x8] sm:$0xff] %vm9162_vm15, %v9159_v53 }
0x1352   :  { %v9157_v19 = vpop.permute.xlu0 %9156 }
0x1353   :  { %9163 = vst.msk [vmem:[#allocation13] sm:$0xff] %vm9162_vm15, %v9157_v19 }
0x1354   :  { %10919 = shalt.err (!%p10916_p5)
}
0x1355   :  { %9176 = dma.vmem_to_hbm [thread:$0]  %s9171_s25, 256, %s12771_s9, [#allocation6], %s11034_s14, %s11034_s14, %s11035_s15  }
0x1356   :  { %10982 = dma.done.wait [#allocation6], 256  }
0x1357   :  { %10983 = vsyncadd [#allocation6], 4294967040 }
0x1358   :  { %9180 = vsyncpa [#allocation5], 1 }
0x1359   :  { %9181 = vsyncpa [#allocation8], 1 }
0x135a   :  { %9182 = vsyncpa [#allocation11], 1 }
0x135b   :  { %9183 = vsyncpa [#allocation6], 1 }

</bundles_post_ra>
